<compile_context>
chip_gen: v7x
topology: tpu7x:2x2x1
jax: 0.10.0
libtpu: 0.0.40
codegen_flags: <defaults>
</compile_context>

<pallas_src>
import functools

import jax
import jax.numpy as jnp
from jax.experimental import pallas as pl
from jax.experimental.pallas import tpu as pltpu

K = 7          # conv kernel size
P = K // 2     # padding
SUB = 8        # channels reduced per in-register sub-chunk


def spatial_attn_kernel(w_ref, b_ref, x_ref, o_ref,
                        max_acc, sum_acc, pad_ref,
                        *, C, sub, H, W, num_tiles, unroll):
    """Grid = (batch, channel_tile).

    w_ref   : SMEM (2*K*K,)   flattened conv weight (out_ch=1, [max, avg] order)
    b_ref   : SMEM (1,)       conv bias
    x_ref   : VMEM (1, TC, H*W) lane-dense input channel tile
    o_ref   : VMEM (1, 1, H, W) output tile (resident across the channel axis)
    max_acc : VMEM (sub, H*W)  running channel max (bf16 if input is bf16)
    sum_acc : VMEM (sub, H*W)  running channel sum (f32)
    pad_ref : VMEM (2, H+2P, W+2P) f32 zero-padded [max, avg] planes
    """
    c_idx = pl.program_id(1)
    _, TC, HW = x_ref.shape
    n_sub = TC // sub

    # Static tail bookkeeping (== TC / n_sub / 0 when C % TC == 0).
    last_valid = C - (num_tiles - 1) * TC
    n_full_last = last_valid // sub
    rem_last = last_valid - n_full_last * sub

    # ---- init (start of each batch element's channel loop) -----------------
    @pl.when(c_idx == 0)
    def _():
        max_acc[...] = jnp.full_like(max_acc, -jnp.inf)
        sum_acc[...] = jnp.zeros_like(sum_acc)
        # Conv pad buffer: borders must be zero; the finalize only rewrites
        # the interior, so zeroing here keeps it off the finalize path.
        pad_ref[...] = jnp.zeros_like(pad_ref)

    # ---- streamed channel reduction on lane-dense (sub, HW) chunks ---------
    def reduce_chunks(n_chunks):
        def body(s, carry):
            base = pl.multiple_of(s * sub, sub)
            xc = x_ref[0, pl.ds(base, sub)]                          # (sub, HW)
            max_acc[...] = jnp.maximum(max_acc[...], xc.astype(max_acc.dtype))
            sum_acc[...] = sum_acc[...] + xc.astype(jnp.float32)
            return carry
        jax.lax.fori_loop(0, n_chunks, body, 0, unroll=unroll)

    def reduce_last_tile():
        # Full sub-chunks of the last tile: unmasked.
        if n_full_last > 0:
            reduce_chunks(n_full_last)
        # At most one straddling sub-chunk needs masking (static row mask).
        if rem_last > 0:
            base = n_full_last * sub                                  # static
            xc = x_ref[0, base:base + sub]                            # (sub, HW)
            row = jax.lax.broadcasted_iota(jnp.int32, (sub, 1), 0)
            keep = row < rem_last
            neg_inf = jnp.full((), -jnp.inf, max_acc.dtype)
            mx = jnp.where(keep, xc.astype(max_acc.dtype), neg_inf)
            sm = jnp.where(keep, xc.astype(jnp.float32), 0.0)
            max_acc[...] = jnp.maximum(max_acc[...], mx)
            sum_acc[...] = sum_acc[...] + sm

    if last_valid == TC:
        # Every tile is full: no masking anywhere on the hot path.
        reduce_chunks(n_sub)
    else:
        @pl.when(c_idx < num_tiles - 1)
        def _():
            reduce_chunks(n_sub)

        @pl.when(c_idx == num_tiles - 1)
        def _():
            reduce_last_tile()

    # ---- finalize: 7x7 conv over the [max, avg] planes + sigmoid -----------
    @pl.when(c_idx == num_tiles - 1)
    def _():
        red_max = jnp.max(max_acc[...].astype(jnp.float32), axis=0,
                          keepdims=True)                              # (1, HW)
        red_avg = jnp.sum(sum_acc[...], axis=0, keepdims=True) * (1.0 / C)

        # Unflatten HW -> (H, W) into the zero-padded conv buffer, one (1, W)
        # row strip at a time (avoids an in-register lane->sublane reshape).
        for h in range(H):
            lo = h * W
            pad_ref[0, P + h:P + h + 1, P:P + W] = red_max[:, lo:lo + W]
            pad_ref[1, P + h:P + h + 1, P:P + W] = red_avg[:, lo:lo + W]

        # 7x7 cross-correlation; taps are read straight from the padded ref
        # (load unit handles the static sublane/lane offsets).  7 per-kh
        # partials kept live (v5e-friendly), then tree-summed.
        partials = []
        for kh in range(K):
            p = None
            for ch in range(2):
                for kw in range(K):
                    wv = w_ref[ch * K * K + kh * K + kw]              # SMEM scalar
                    t = wv * pad_ref[ch, kh:kh + H, kw:kw + W]        # (H, W)
                    p = t if p is None else p + t
            partials.append(p)
        while len(partials) > 1:
            nxt = [partials[i] + partials[i + 1]
                   for i in range(0, len(partials) - 1, 2)]
            if len(partials) % 2:
                nxt.append(partials[-1])
            partials = nxt
        acc = partials[0] + b_ref[0]

        o_ref[0, 0] = jax.nn.sigmoid(acc).astype(o_ref.dtype)


def _round_down(a, m):
    return (a // m) * m


def _pick_channel_tile(C, bytes_per_chan, target_tile_bytes):
    """Channel tile (tc) and sub-chunk (sub).  tc is a multiple of sub, and a
    divisor of C whenever that costs at most 2x in tile size (keeps channel
    masking entirely off the hot path)."""
    if C <= SUB:
        return C, C
    per = max(1, target_tile_bytes // bytes_per_chan)
    budget = max(SUB, _round_down(per, SUB))
    budget = min(budget, _round_down(C, SUB))
    if C % SUB == 0:
        t = budget
        while t >= SUB:
            if C % t == 0:
                if 2 * t >= budget:
                    return t, SUB
                break
            t -= SUB
    return budget, SUB


def spatial_attention(x, weight, bias, *, target_tile_bytes=8 * 1024 * 1024):
    """x: (B, C, H, W); weight: (1, 2, K, K); bias: (1,) -> (B, 1, H, W)."""
    B, C, H, W = x.shape
    HW = H * W
    w_flat = weight.reshape(-1).astype(jnp.float32)     # (2*K*K,)
    b = bias.reshape(-1).astype(jnp.float32)            # (1,)
    x_flat = x.reshape(B, C, HW)                        # free for contiguous NCHW

    bytes_per_chan = HW * x.dtype.itemsize
    tc, sub = _pick_channel_tile(C, bytes_per_chan, target_tile_bytes)
    n_c = pl.cdiv(C, tc)
    n_sub = tc // sub
    unroll = True if n_sub <= 4 else 2

    # Max is exact in bf16 -> keep the max path packed when the input is bf16
    # (v6e/v7x VPU); the sum path is always accumulated in f32.
    max_dtype = jnp.bfloat16 if x.dtype == jnp.bfloat16 else jnp.float32
    max_itemsize = 2 if max_dtype == jnp.bfloat16 else 4

    tile_bytes = tc * bytes_per_chan
    scratch_bytes = (sub * HW * 4 + sub * HW * max_itemsize
                     + 2 * (H + 2 * P) * (W + 2 * P) * 4)
    vmem_limit = int(min(max(2 * tile_bytes + scratch_bytes + (8 << 20),
                             48 << 20),
                         112 << 20))

    itemsize = x.dtype.itemsize
    cost = pl.CostEstimate(
        flops=int(B * HW * (2 * C + 2 * 2 * K * K)),
        transcendentals=int(B * HW),
        bytes_accessed=int(B * C * HW * itemsize + B * HW * itemsize
                           + w_flat.size * 4 + 4),
    )

    kernel = functools.partial(
        spatial_attn_kernel,
        C=C, sub=sub, H=H, W=W, num_tiles=int(n_c), unroll=unroll)

    return pl.pallas_call(
        kernel,
        out_shape=jax.ShapeDtypeStruct((B, 1, H, W), x.dtype),
        grid=(B, n_c),
        in_specs=[
            pl.BlockSpec(memory_space=pltpu.MemorySpace.SMEM),    # conv weight
            pl.BlockSpec(memory_space=pltpu.MemorySpace.SMEM),    # conv bias
            pl.BlockSpec((1, tc, HW), lambda bi, ci: (bi, ci, 0)),
        ],
        out_specs=pl.BlockSpec((1, 1, H, W), lambda bi, ci: (bi, 0, 0, 0)),
        scratch_shapes=[
            pltpu.VMEM((sub, HW), max_dtype),                     # running max
            pltpu.VMEM((sub, HW), jnp.float32),                   # running sum
            pltpu.VMEM((2, H + 2 * P, W + 2 * P), jnp.float32),   # padded planes
        ],
        compiler_params=pltpu.CompilerParams(
            dimension_semantics=("parallel", "arbitrary"),
            vmem_limit_bytes=vmem_limit),
        cost_estimate=cost,
    )(w_flat, b, x_flat)


def _reference(x, weight, bias):
    """Pure-JAX reference matching the PyTorch forward."""
    max_r = jnp.max(x, axis=1, keepdims=True)
    avg_r = jnp.mean(x, axis=1, keepdims=True)
    r = jnp.concatenate([max_r, avg_r], axis=1)           # (B, 2, H, W)
    out = jax.lax.conv_general_dilated(
        r, weight, window_strides=(1, 1), padding=((P, P), (P, P)),
        dimension_numbers=("NCHW", "OIHW", "NCHW"))
    out = out + bias.reshape(1, 1, 1, 1)
    return jax.nn.sigmoid(out)


if __name__ == "__main__":
    key = jax.random.PRNGKey(0)
    kx, kw_, kb = jax.random.split(key, 3)

    B, C, H, W = 2, 4, 16, 16
    x = jax.random.normal(kx, (B, C, H, W), dtype=jnp.float32)

    # Deterministic Conv2d(2, 1, 7) parameter init (uniform, PyTorch-like bound).
    fan_in = 2 * K * K
    bound = 1.0 / (fan_in ** 0.5)
    weight = jax.random.uniform(kw_, (1, 2, K, K), jnp.float32, -bound, bound)
    bias = jax.random.uniform(kb, (1,), jnp.float32, -bound, bound)

    out = jax.block_until_ready(spatial_attention(x, weight, bias))
    ref = _reference(x, weight, bias)
    assert out.shape == (B, 1, H, W), out.shape
    assert jnp.allclose(out, ref, atol=1e-5, rtol=1e-5), (
        float(jnp.max(jnp.abs(out - ref))))

    # Multi-tile channel streaming; tile divides C exactly (no masking).
    C2 = 24
    x2 = jax.random.normal(kx, (B, C2, H, W), dtype=jnp.float32)
    out2 = jax.block_until_ready(
        spatial_attention(x2, weight, bias,
                          target_tile_bytes=SUB * H * W * 4))
    ref2 = _reference(x2, weight, bias)
    assert jnp.allclose(out2, ref2, atol=1e-5, rtol=1e-5), (
        float(jnp.max(jnp.abs(out2 - ref2))))

    # Multi-tile with a partial last tile (masked path on the last tile only).
    C3 = 20
    x3 = jax.random.normal(kx, (B, C3, H, W), dtype=jnp.float32)
    out3 = jax.block_until_ready(
        spatial_attention(x3, weight, bias,
                          target_tile_bytes=SUB * H * W * 4))
    ref3 = _reference(x3, weight, bias)
    assert jnp.allclose(out3, ref3, atol=1e-5, rtol=1e-5), (
        float(jnp.max(jnp.abs(out3 - ref3))))

    # bf16 input: bf16 max path + f32 sum path.
    x4 = x2.astype(jnp.bfloat16)
    out4 = jax.block_until_ready(
        spatial_attention(x4, weight, bias,
                          target_tile_bytes=SUB * H * W * 2))
    ref4 = _reference(x4.astype(jnp.float32), weight, bias)
    assert out4.dtype == jnp.bfloat16
    assert jnp.allclose(out4.astype(jnp.float32), ref4, atol=1e-2, rtol=1e-2), (
        float(jnp.max(jnp.abs(out4.astype(jnp.float32) - ref4))))

    print("KERNEL_OK")
</pallas_src>

<mosaic_0001>
module attributes {stable_mosaic.version = 11 : i64} {
  func.func @spatial_attn_kernel(%arg0: i32, %arg1: i32, %arg2: memref<98xf32, #tpu.memory_space<smem>>, %arg3: memref<1xf32, #tpu.memory_space<smem>>, %arg4: memref<1x4x256xf32, #tpu.memory_space<vmem>>, %arg5: memref<1x1x16x16xf32, #tpu.memory_space<vmem>>, %arg6: memref<4x256xf32, #tpu.memory_space<vmem>>, %arg7: memref<4x256xf32, #tpu.memory_space<vmem>>, %arg8: memref<2x22x22xf32, #tpu.memory_space<vmem>>) attributes {dimension_semantics = [#tpu.dimension_semantics<parallel>, #tpu.dimension_semantics<arbitrary>], iteration_bounds = array<i64: 2, 1>, scalar_prefetch = 0 : i64, scratch_operands = 3 : i64, tpu.core_type = #tpu.core_type<tc>, window_params = [{transform_indices = @transform_0, window_bounds = array<i64: 98>}, {transform_indices = @transform_1, window_bounds = array<i64: 1>}, {transform_indices = @transform_2, window_bounds = array<i64: 1, 4, 256>}, {transform_indices = @transform_3, window_bounds = array<i64: 1, 1, 16, 16>}]} {
    %c0_i32 = arith.constant 0 : i32
    %0 = arith.cmpi eq, %arg1, %c0_i32 : i32
    %1 = arith.extui %0 : i1 to i32
    %c0_i32_0 = arith.constant 0 : i32
    %2 = arith.cmpi ne, %1, %c0_i32_0 : i32
    scf.if %2 {
      %cst = arith.constant 0xFF800000 : f32
      %17 = vector.broadcast %cst : f32 to vector<4x256xf32>
      %c0_13 = arith.constant 0 : index
      %c0_14 = arith.constant 0 : index
      %18 = vector.load %arg6[%c0_13, %c0_14] : memref<4x256xf32, #tpu.memory_space<vmem>>, vector<4x256xf32>
      tpu.vector_store %arg6[%c0_13, %c0_14], %17 {strides = array<i32>} : memref<4x256xf32, #tpu.memory_space<vmem>>, vector<4x256xf32>,
      %cst_15 = arith.constant 0.000000e+00 : f32
      %19 = vector.broadcast %cst_15 : f32 to vector<4x256xf32>
      %c0_16 = arith.constant 0 : index
      %c0_17 = arith.constant 0 : index
      %20 = vector.load %arg7[%c0_16, %c0_17] : memref<4x256xf32, #tpu.memory_space<vmem>>, vector<4x256xf32>
      tpu.vector_store %arg7[%c0_16, %c0_17], %19 {strides = array<i32>} : memref<4x256xf32, #tpu.memory_space<vmem>>, vector<4x256xf32>,
      %cst_18 = arith.constant 0.000000e+00 : f32
      %21 = vector.broadcast %cst_18 : f32 to vector<2x22x22xf32>
      %c0_19 = arith.constant 0 : index
      %c0_20 = arith.constant 0 : index
      %c0_21 = arith.constant 0 : index
      %22 = vector.load %arg8[%c0_19, %c0_20, %c0_21] : memref<2x22x22xf32, #tpu.memory_space<vmem>>, vector<2x22x22xf32>
      tpu.vector_store %arg8[%c0_19, %c0_20, %c0_21], %21 {strides = array<i32>} : memref<2x22x22xf32, #tpu.memory_space<vmem>>, vector<2x22x22xf32>,
    } else {
    }
    %c0_i32_1 = arith.constant 0 : i32
    %c4_i32 = arith.constant 4 : i32
    %3 = arith.muli %c0_i32_1, %c4_i32 : i32
    %4 = tpu.assume_multiple %3, 4 : i32
    %c0 = arith.constant 0 : index
    %5 = arith.index_cast %4 : i32 to index
    %c0_2 = arith.constant 0 : index
    %6 = vector.load %arg4[%c0, %5, %c0_2] : memref<1x4x256xf32, #tpu.memory_space<vmem>>, vector<1x4x256xf32>
    %7 = vector.shape_cast %6 : vector<1x4x256xf32> to vector<4x256xf32>
    %c0_3 = arith.constant 0 : index
    %c0_4 = arith.constant 0 : index
    %8 = vector.load %arg6[%c0_3, %c0_4] : memref<4x256xf32, #tpu.memory_space<vmem>>, vector<4x256xf32>
    %9 = arith.maximumf %8, %7 : vector<4x256xf32>
    %c0_5 = arith.constant 0 : index
    %c0_6 = arith.constant 0 : index
    %10 = vector.load %arg6[%c0_5, %c0_6] : memref<4x256xf32, #tpu.memory_space<vmem>>, vector<4x256xf32>
    tpu.vector_store %arg6[%c0_5, %c0_6], %9 {strides = array<i32>} : memref<4x256xf32, #tpu.memory_space<vmem>>, vector<4x256xf32>,
    %c0_7 = arith.constant 0 : index
    %c0_8 = arith.constant 0 : index
    %11 = vector.load %arg7[%c0_7, %c0_8] : memref<4x256xf32, #tpu.memory_space<vmem>>, vector<4x256xf32>
    %12 = arith.addf %11, %7 : vector<4x256xf32>
    %c0_9 = arith.constant 0 : index
    %c0_10 = arith.constant 0 : index
    %13 = vector.load %arg7[%c0_9, %c0_10] : memref<4x256xf32, #tpu.memory_space<vmem>>, vector<4x256xf32>
    tpu.vector_store %arg7[%c0_9, %c0_10], %12 {strides = array<i32>} : memref<4x256xf32, #tpu.memory_space<vmem>>, vector<4x256xf32>,
    %c1_i32 = arith.constant 1 : i32
    %c0_i32_11 = arith.constant 0 : i32
    %14 = arith.cmpi eq, %arg1, %c0_i32_11 : i32
    %15 = arith.extui %14 : i1 to i32
    %c0_i32_12 = arith.constant 0 : i32
    %16 = arith.cmpi ne, %15, %c0_i32_12 : i32
    scf.if %16 {
      %c0_13 = arith.constant 0 : index
      %c0_14 = arith.constant 0 : index
      %17 = vector.load %arg6[%c0_13, %c0_14] : memref<4x256xf32, #tpu.memory_space<vmem>>, vector<4x256xf32>
      %cst = arith.constant dense<0xFF800000> : vector<256xf32>
      %18 = vector.multi_reduction <maximumf>, %17, %cst [0] : vector<4x256xf32> to vector<256xf32>
      %19 = vector.shape_cast %18 : vector<256xf32> to vector<1x256xf32>
      %c0_15 = arith.constant 0 : index
      %c0_16 = arith.constant 0 : index
      %20 = vector.load %arg7[%c0_15, %c0_16] : memref<4x256xf32, #tpu.memory_space<vmem>>, vector<4x256xf32>
      %cst_17 = arith.constant dense<0.000000e+00> : vector<256xf32>
      %21 = vector.multi_reduction <add>, %20, %cst_17 [0] : vector<4x256xf32> to vector<256xf32>
      %22 = vector.shape_cast %21 : vector<256xf32> to vector<1x256xf32>
      %cst_18 = arith.constant 2.500000e-01 : f32
      %23 = vector.broadcast %cst_18 : f32 to vector<1x256xf32>
      %24 = arith.mulf %22, %23 : vector<1x256xf32>
      %25 = vector.extract_strided_slice %19 {offsets = [0, 0], sizes = [1, 16], strides = [1, 1]} : vector<1x256xf32> to vector<1x16xf32>
      %c0_19 = arith.constant 0 : index
      %c3 = arith.constant 3 : index
      %c3_20 = arith.constant 3 : index
      %26 = vector.load %arg8[%c0_19, %c3, %c3_20] : memref<2x22x22xf32, #tpu.memory_space<vmem>>, vector<1x1x16xf32>
      %27 = vector.shape_cast %26 : vector<1x1x16xf32> to vector<1x16xf32>
      %28 = vector.shape_cast %25 : vector<1x16xf32> to vector<1x1x16xf32>
      tpu.vector_store %arg8[%c0_19, %c3, %c3_20], %28 {strides = array<i32>} : memref<2x22x22xf32, #tpu.memory_space<vmem>>, vector<1x1x16xf32>,
      %29 = vector.extract_strided_slice %24 {offsets = [0, 0], sizes = [1, 16], strides = [1, 1]} : vector<1x256xf32> to vector<1x16xf32>
      %c1 = arith.constant 1 : index
      %c3_21 = arith.constant 3 : index
      %c3_22 = arith.constant 3 : index
      %30 = vector.load %arg8[%c1, %c3_21, %c3_22] : memref<2x22x22xf32, #tpu.memory_space<vmem>>, vector<1x1x16xf32>
      %31 = vector.shape_cast %30 : vector<1x1x16xf32> to vector<1x16xf32>
      %32 = vector.shape_cast %29 : vector<1x16xf32> to vector<1x1x16xf32>
      tpu.vector_store %arg8[%c1, %c3_21, %c3_22], %32 {strides = array<i32>} : memref<2x22x22xf32, #tpu.memory_space<vmem>>, vector<1x1x16xf32>,
      %33 = vector.extract_strided_slice %19 {offsets = [0, 16], sizes = [1, 16], strides = [1, 1]} : vector<1x256xf32> to vector<1x16xf32>
      %c0_23 = arith.constant 0 : index
      %c4 = arith.constant 4 : index
      %c3_24 = arith.constant 3 : index
      %34 = vector.load %arg8[%c0_23, %c4, %c3_24] : memref<2x22x22xf32, #tpu.memory_space<vmem>>, vector<1x1x16xf32>
      %35 = vector.shape_cast %34 : vector<1x1x16xf32> to vector<1x16xf32>
      %36 = vector.shape_cast %33 : vector<1x16xf32> to vector<1x1x16xf32>
      tpu.vector_store %arg8[%c0_23, %c4, %c3_24], %36 {strides = array<i32>} : memref<2x22x22xf32, #tpu.memory_space<vmem>>, vector<1x1x16xf32>,
      %37 = vector.extract_strided_slice %24 {offsets = [0, 16], sizes = [1, 16], strides = [1, 1]} : vector<1x256xf32> to vector<1x16xf32>
      %c1_25 = arith.constant 1 : index
      %c4_26 = arith.constant 4 : index
      %c3_27 = arith.constant 3 : index
      %38 = vector.load %arg8[%c1_25, %c4_26, %c3_27] : memref<2x22x22xf32, #tpu.memory_space<vmem>>, vector<1x1x16xf32>
      %39 = vector.shape_cast %38 : vector<1x1x16xf32> to vector<1x16xf32>
      %40 = vector.shape_cast %37 : vector<1x16xf32> to vector<1x1x16xf32>
      tpu.vector_store %arg8[%c1_25, %c4_26, %c3_27], %40 {strides = array<i32>} : memref<2x22x22xf32, #tpu.memory_space<vmem>>, vector<1x1x16xf32>,
      %41 = vector.extract_strided_slice %19 {offsets = [0, 32], sizes = [1, 16], strides = [1, 1]} : vector<1x256xf32> to vector<1x16xf32>
      %c0_28 = arith.constant 0 : index
      %c5 = arith.constant 5 : index
      %c3_29 = arith.constant 3 : index
      %42 = vector.load %arg8[%c0_28, %c5, %c3_29] : memref<2x22x22xf32, #tpu.memory_space<vmem>>, vector<1x1x16xf32>
      %43 = vector.shape_cast %42 : vector<1x1x16xf32> to vector<1x16xf32>
      %44 = vector.shape_cast %41 : vector<1x16xf32> to vector<1x1x16xf32>
      tpu.vector_store %arg8[%c0_28, %c5, %c3_29], %44 {strides = array<i32>} : memref<2x22x22xf32, #tpu.memory_space<vmem>>, vector<1x1x16xf32>,
      %45 = vector.extract_strided_slice %24 {offsets = [0, 32], sizes = [1, 16], strides = [1, 1]} : vector<1x256xf32> to vector<1x16xf32>
      %c1_30 = arith.constant 1 : index
      %c5_31 = arith.constant 5 : index
      %c3_32 = arith.constant 3 : index
      %46 = vector.load %arg8[%c1_30, %c5_31, %c3_32] : memref<2x22x22xf32, #tpu.memory_space<vmem>>, vector<1x1x16xf32>
      %47 = vector.shape_cast %46 : vector<1x1x16xf32> to vector<1x16xf32>
      %48 = vector.shape_cast %45 : vector<1x16xf32> to vector<1x1x16xf32>
      tpu.vector_store %arg8[%c1_30, %c5_31, %c3_32], %48 {strides = array<i32>} : memref<2x22x22xf32, #tpu.memory_space<vmem>>, vector<1x1x16xf32>,
      %49 = vector.extract_strided_slice %19 {offsets = [0, 48], sizes = [1, 16], strides = [1, 1]} : vector<1x256xf32> to vector<1x16xf32>
      %c0_33 = arith.constant 0 : index
      %c6 = arith.constant 6 : index
      %c3_34 = arith.constant 3 : index
      %50 = vector.load %arg8[%c0_33, %c6, %c3_34] : memref<2x22x22xf32, #tpu.memory_space<vmem>>, vector<1x1x16xf32>
      %51 = vector.shape_cast %50 : vector<1x1x16xf32> to vector<1x16xf32>
      %52 = vector.shape_cast %49 : vector<1x16xf32> to vector<1x1x16xf32>
      tpu.vector_store %arg8[%c0_33, %c6, %c3_34], %52 {strides = array<i32>} : memref<2x22x22xf32, #tpu.memory_space<vmem>>, vector<1x1x16xf32>,
      %53 = vector.extract_strided_slice %24 {offsets = [0, 48], sizes = [1, 16], strides = [1, 1]} : vector<1x256xf32> to vector<1x16xf32>
      %c1_35 = arith.constant 1 : index
      %c6_36 = arith.constant 6 : index
      %c3_37 = arith.constant 3 : index
      %54 = vector.load %arg8[%c1_35, %c6_36, %c3_37] : memref<2x22x22xf32, #tpu.memory_space<vmem>>, vector<1x1x16xf32>
      %55 = vector.shape_cast %54 : vector<1x1x16xf32> to vector<1x16xf32>
      %56 = vector.shape_cast %53 : vector<1x16xf32> to vector<1x1x16xf32>
      tpu.vector_store %arg8[%c1_35, %c6_36, %c3_37], %56 {strides = array<i32>} : memref<2x22x22xf32, #tpu.memory_space<vmem>>, vector<1x1x16xf32>,
      %57 = vector.extract_strided_slice %19 {offsets = [0, 64], sizes = [1, 16], strides = [1, 1]} : vector<1x256xf32> to vector<1x16xf32>
      %c0_38 = arith.constant 0 : index
      %c7 = arith.constant 7 : index
      %c3_39 = arith.constant 3 : index
      %58 = vector.load %arg8[%c0_38, %c7, %c3_39] : memref<2x22x22xf32, #tpu.memory_space<vmem>>, vector<1x1x16xf32>
      %59 = vector.shape_cast %58 : vector<1x1x16xf32> to vector<1x16xf32>
      %60 = vector.shape_cast %57 : vector<1x16xf32> to vector<1x1x16xf32>
      tpu.vector_store %arg8[%c0_38, %c7, %c3_39], %60 {strides = array<i32>} : memref<2x22x22xf32, #tpu.memory_space<vmem>>, vector<1x1x16xf32>,
      %61 = vector.extract_strided_slice %24 {offsets = [0, 64], sizes = [1, 16], strides = [1, 1]} : vector<1x256xf32> to vector<1x16xf32>
      %c1_40 = arith.constant 1 : index
      %c7_41 = arith.constant 7 : index
      %c3_42 = arith.constant 3 : index
      %62 = vector.load %arg8[%c1_40, %c7_41, %c3_42] : memref<2x22x22xf32, #tpu.memory_space<vmem>>, vector<1x1x16xf32>
      %63 = vector.shape_cast %62 : vector<1x1x16xf32> to vector<1x16xf32>
      %64 = vector.shape_cast %61 : vector<1x16xf32> to vector<1x1x16xf32>
      tpu.vector_store %arg8[%c1_40, %c7_41, %c3_42], %64 {strides = array<i32>} : memref<2x22x22xf32, #tpu.memory_space<vmem>>, vector<1x1x16xf32>,
      %65 = vector.extract_strided_slice %19 {offsets = [0, 80], sizes = [1, 16], strides = [1, 1]} : vector<1x256xf32> to vector<1x16xf32>
      %c0_43 = arith.constant 0 : index
      %c8 = arith.constant 8 : index
      %c3_44 = arith.constant 3 : index
      %66 = vector.load %arg8[%c0_43, %c8, %c3_44] : memref<2x22x22xf32, #tpu.memory_space<vmem>>, vector<1x1x16xf32>
      %67 = vector.shape_cast %66 : vector<1x1x16xf32> to vector<1x16xf32>
      %68 = vector.shape_cast %65 : vector<1x16xf32> to vector<1x1x16xf32>
      tpu.vector_store %arg8[%c0_43, %c8, %c3_44], %68 {strides = array<i32>} : memref<2x22x22xf32, #tpu.memory_space<vmem>>, vector<1x1x16xf32>,
      %69 = vector.extract_strided_slice %24 {offsets = [0, 80], sizes = [1, 16], strides = [1, 1]} : vector<1x256xf32> to vector<1x16xf32>
      %c1_45 = arith.constant 1 : index
      %c8_46 = arith.constant 8 : index
      %c3_47 = arith.constant 3 : index
      %70 = vector.load %arg8[%c1_45, %c8_46, %c3_47] : memref<2x22x22xf32, #tpu.memory_space<vmem>>, vector<1x1x16xf32>
      %71 = vector.shape_cast %70 : vector<1x1x16xf32> to vector<1x16xf32>
      %72 = vector.shape_cast %69 : vector<1x16xf32> to vector<1x1x16xf32>
      tpu.vector_store %arg8[%c1_45, %c8_46, %c3_47], %72 {strides = array<i32>} : memref<2x22x22xf32, #tpu.memory_space<vmem>>, vector<1x1x16xf32>,
      %73 = vector.extract_strided_slice %19 {offsets = [0, 96], sizes = [1, 16], strides = [1, 1]} : vector<1x256xf32> to vector<1x16xf32>
      %c0_48 = arith.constant 0 : index
      %c9 = arith.constant 9 : index
      %c3_49 = arith.constant 3 : index
      %74 = vector.load %arg8[%c0_48, %c9, %c3_49] : memref<2x22x22xf32, #tpu.memory_space<vmem>>, vector<1x1x16xf32>
      %75 = vector.shape_cast %74 : vector<1x1x16xf32> to vector<1x16xf32>
      %76 = vector.shape_cast %73 : vector<1x16xf32> to vector<1x1x16xf32>
      tpu.vector_store %arg8[%c0_48, %c9, %c3_49], %76 {strides = array<i32>} : memref<2x22x22xf32, #tpu.memory_space<vmem>>, vector<1x1x16xf32>,
      %77 = vector.extract_strided_slice %24 {offsets = [0, 96], sizes = [1, 16], strides = [1, 1]} : vector<1x256xf32> to vector<1x16xf32>
      %c1_50 = arith.constant 1 : index
      %c9_51 = arith.constant 9 : index
      %c3_52 = arith.constant 3 : index
      %78 = vector.load %arg8[%c1_50, %c9_51, %c3_52] : memref<2x22x22xf32, #tpu.memory_space<vmem>>, vector<1x1x16xf32>
      %79 = vector.shape_cast %78 : vector<1x1x16xf32> to vector<1x16xf32>
      %80 = vector.shape_cast %77 : vector<1x16xf32> to vector<1x1x16xf32>
      tpu.vector_store %arg8[%c1_50, %c9_51, %c3_52], %80 {strides = array<i32>} : memref<2x22x22xf32, #tpu.memory_space<vmem>>, vector<1x1x16xf32>,
      %81 = vector.extract_strided_slice %19 {offsets = [0, 112], sizes = [1, 16], strides = [1, 1]} : vector<1x256xf32> to vector<1x16xf32>
      %c0_53 = arith.constant 0 : index
      %c10 = arith.constant 10 : index
      %c3_54 = arith.constant 3 : index
      %82 = vector.load %arg8[%c0_53, %c10, %c3_54] : memref<2x22x22xf32, #tpu.memory_space<vmem>>, vector<1x1x16xf32>
      %83 = vector.shape_cast %82 : vector<1x1x16xf32> to vector<1x16xf32>
      %84 = vector.shape_cast %81 : vector<1x16xf32> to vector<1x1x16xf32>
      tpu.vector_store %arg8[%c0_53, %c10, %c3_54], %84 {strides = array<i32>} : memref<2x22x22xf32, #tpu.memory_space<vmem>>, vector<1x1x16xf32>,
      %85 = vector.extract_strided_slice %24 {offsets = [0, 112], sizes = [1, 16], strides = [1, 1]} : vector<1x256xf32> to vector<1x16xf32>
      %c1_55 = arith.constant 1 : index
      %c10_56 = arith.constant 10 : index
      %c3_57 = arith.constant 3 : index
      %86 = vector.load %arg8[%c1_55, %c10_56, %c3_57] : memref<2x22x22xf32, #tpu.memory_space<vmem>>, vector<1x1x16xf32>
      %87 = vector.shape_cast %86 : vector<1x1x16xf32> to vector<1x16xf32>
      %88 = vector.shape_cast %85 : vector<1x16xf32> to vector<1x1x16xf32>
      tpu.vector_store %arg8[%c1_55, %c10_56, %c3_57], %88 {strides = array<i32>} : memref<2x22x22xf32, #tpu.memory_space<vmem>>, vector<1x1x16xf32>,
      %89 = vector.extract_strided_slice %19 {offsets = [0, 128], sizes = [1, 16], strides = [1, 1]} : vector<1x256xf32> to vector<1x16xf32>
      %c0_58 = arith.constant 0 : index
      %c11 = arith.constant 11 : index
      %c3_59 = arith.constant 3 : index
      %90 = vector.load %arg8[%c0_58, %c11, %c3_59] : memref<2x22x22xf32, #tpu.memory_space<vmem>>, vector<1x1x16xf32>
      %91 = vector.shape_cast %90 : vector<1x1x16xf32> to vector<1x16xf32>
      %92 = vector.shape_cast %89 : vector<1x16xf32> to vector<1x1x16xf32>
      tpu.vector_store %arg8[%c0_58, %c11, %c3_59], %92 {strides = array<i32>} : memref<2x22x22xf32, #tpu.memory_space<vmem>>, vector<1x1x16xf32>,
      %93 = vector.extract_strided_slice %24 {offsets = [0, 128], sizes = [1, 16], strides = [1, 1]} : vector<1x256xf32> to vector<1x16xf32>
      %c1_60 = arith.constant 1 : index
      %c11_61 = arith.constant 11 : index
      %c3_62 = arith.constant 3 : index
      %94 = vector.load %arg8[%c1_60, %c11_61, %c3_62] : memref<2x22x22xf32, #tpu.memory_space<vmem>>, vector<1x1x16xf32>
      %95 = vector.shape_cast %94 : vector<1x1x16xf32> to vector<1x16xf32>
      %96 = vector.shape_cast %93 : vector<1x16xf32> to vector<1x1x16xf32>
      tpu.vector_store %arg8[%c1_60, %c11_61, %c3_62], %96 {strides = array<i32>} : memref<2x22x22xf32, #tpu.memory_space<vmem>>, vector<1x1x16xf32>,
      %97 = vector.extract_strided_slice %19 {offsets = [0, 144], sizes = [1, 16], strides = [1, 1]} : vector<1x256xf32> to vector<1x16xf32>
      %c0_63 = arith.constant 0 : index
      %c12 = arith.constant 12 : index
      %c3_64 = arith.constant 3 : index
      %98 = vector.load %arg8[%c0_63, %c12, %c3_64] : memref<2x22x22xf32, #tpu.memory_space<vmem>>, vector<1x1x16xf32>
      %99 = vector.shape_cast %98 : vector<1x1x16xf32> to vector<1x16xf32>
      %100 = vector.shape_cast %97 : vector<1x16xf32> to vector<1x1x16xf32>
      tpu.vector_store %arg8[%c0_63, %c12, %c3_64], %100 {strides = array<i32>} : memref<2x22x22xf32, #tpu.memory_space<vmem>>, vector<1x1x16xf32>,
      %101 = vector.extract_strided_slice %24 {offsets = [0, 144], sizes = [1, 16], strides = [1, 1]} : vector<1x256xf32> to vector<1x16xf32>
      %c1_65 = arith.constant 1 : index
      %c12_66 = arith.constant 12 : index
      %c3_67 = arith.constant 3 : index
      %102 = vector.load %arg8[%c1_65, %c12_66, %c3_67] : memref<2x22x22xf32, #tpu.memory_space<vmem>>, vector<1x1x16xf32>
      %103 = vector.shape_cast %102 : vector<1x1x16xf32> to vector<1x16xf32>
      %104 = vector.shape_cast %101 : vector<1x16xf32> to vector<1x1x16xf32>
      tpu.vector_store %arg8[%c1_65, %c12_66, %c3_67], %104 {strides = array<i32>} : memref<2x22x22xf32, #tpu.memory_space<vmem>>, vector<1x1x16xf32>,
      %105 = vector.extract_strided_slice %19 {offsets = [0, 160], sizes = [1, 16], strides = [1, 1]} : vector<1x256xf32> to vector<1x16xf32>
      %c0_68 = arith.constant 0 : index
      %c13 = arith.constant 13 : index
      %c3_69 = arith.constant 3 : index
      %106 = vector.load %arg8[%c0_68, %c13, %c3_69] : memref<2x22x22xf32, #tpu.memory_space<vmem>>, vector<1x1x16xf32>
      %107 = vector.shape_cast %106 : vector<1x1x16xf32> to vector<1x16xf32>
      %108 = vector.shape_cast %105 : vector<1x16xf32> to vector<1x1x16xf32>
      tpu.vector_store %arg8[%c0_68, %c13, %c3_69], %108 {strides = array<i32>} : memref<2x22x22xf32, #tpu.memory_space<vmem>>, vector<1x1x16xf32>,
      %109 = vector.extract_strided_slice %24 {offsets = [0, 160], sizes = [1, 16], strides = [1, 1]} : vector<1x256xf32> to vector<1x16xf32>
      %c1_70 = arith.constant 1 : index
      %c13_71 = arith.constant 13 : index
      %c3_72 = arith.constant 3 : index
      %110 = vector.load %arg8[%c1_70, %c13_71, %c3_72] : memref<2x22x22xf32, #tpu.memory_space<vmem>>, vector<1x1x16xf32>
      %111 = vector.shape_cast %110 : vector<1x1x16xf32> to vector<1x16xf32>
      %112 = vector.shape_cast %109 : vector<1x16xf32> to vector<1x1x16xf32>
      tpu.vector_store %arg8[%c1_70, %c13_71, %c3_72], %112 {strides = array<i32>} : memref<2x22x22xf32, #tpu.memory_space<vmem>>, vector<1x1x16xf32>,
      %113 = vector.extract_strided_slice %19 {offsets = [0, 176], sizes = [1, 16], strides = [1, 1]} : vector<1x256xf32> to vector<1x16xf32>
      %c0_73 = arith.constant 0 : index
      %c14 = arith.constant 14 : index
      %c3_74 = arith.constant 3 : index
      %114 = vector.load %arg8[%c0_73, %c14, %c3_74] : memref<2x22x22xf32, #tpu.memory_space<vmem>>, vector<1x1x16xf32>
      %115 = vector.shape_cast %114 : vector<1x1x16xf32> to vector<1x16xf32>
      %116 = vector.shape_cast %113 : vector<1x16xf32> to vector<1x1x16xf32>
      tpu.vector_store %arg8[%c0_73, %c14, %c3_74], %116 {strides = array<i32>} : memref<2x22x22xf32, #tpu.memory_space<vmem>>, vector<1x1x16xf32>,
      %117 = vector.extract_strided_slice %24 {offsets = [0, 176], sizes = [1, 16], strides = [1, 1]} : vector<1x256xf32> to vector<1x16xf32>
      %c1_75 = arith.constant 1 : index
      %c14_76 = arith.constant 14 : index
      %c3_77 = arith.constant 3 : index
      %118 = vector.load %arg8[%c1_75, %c14_76, %c3_77] : memref<2x22x22xf32, #tpu.memory_space<vmem>>, vector<1x1x16xf32>
      %119 = vector.shape_cast %118 : vector<1x1x16xf32> to vector<1x16xf32>
      %120 = vector.shape_cast %117 : vector<1x16xf32> to vector<1x1x16xf32>
      tpu.vector_store %arg8[%c1_75, %c14_76, %c3_77], %120 {strides = array<i32>} : memref<2x22x22xf32, #tpu.memory_space<vmem>>, vector<1x1x16xf32>,
      %121 = vector.extract_strided_slice %19 {offsets = [0, 192], sizes = [1, 16], strides = [1, 1]} : vector<1x256xf32> to vector<1x16xf32>
      %c0_78 = arith.constant 0 : index
      %c15 = arith.constant 15 : index
      %c3_79 = arith.constant 3 : index
      %122 = vector.load %arg8[%c0_78, %c15, %c3_79] : memref<2x22x22xf32, #tpu.memory_space<vmem>>, vector<1x1x16xf32>
      %123 = vector.shape_cast %122 : vector<1x1x16xf32> to vector<1x16xf32>
      %124 = vector.shape_cast %121 : vector<1x16xf32> to vector<1x1x16xf32>
      tpu.vector_store %arg8[%c0_78, %c15, %c3_79], %124 {strides = array<i32>} : memref<2x22x22xf32, #tpu.memory_space<vmem>>, vector<1x1x16xf32>,
      %125 = vector.extract_strided_slice %24 {offsets = [0, 192], sizes = [1, 16], strides = [1, 1]} : vector<1x256xf32> to vector<1x16xf32>
      %c1_80 = arith.constant 1 : index
      %c15_81 = arith.constant 15 : index
      %c3_82 = arith.constant 3 : index
      %126 = vector.load %arg8[%c1_80, %c15_81, %c3_82] : memref<2x22x22xf32, #tpu.memory_space<vmem>>, vector<1x1x16xf32>
      %127 = vector.shape_cast %126 : vector<1x1x16xf32> to vector<1x16xf32>
      %128 = vector.shape_cast %125 : vector<1x16xf32> to vector<1x1x16xf32>
      tpu.vector_store %arg8[%c1_80, %c15_81, %c3_82], %128 {strides = array<i32>} : memref<2x22x22xf32, #tpu.memory_space<vmem>>, vector<1x1x16xf32>,
      %129 = vector.extract_strided_slice %19 {offsets = [0, 208], sizes = [1, 16], strides = [1, 1]} : vector<1x256xf32> to vector<1x16xf32>
      %c0_83 = arith.constant 0 : index
      %c16 = arith.constant 16 : index
      %c3_84 = arith.constant 3 : index
      %130 = vector.load %arg8[%c0_83, %c16, %c3_84] : memref<2x22x22xf32, #tpu.memory_space<vmem>>, vector<1x1x16xf32>
      %131 = vector.shape_cast %130 : vector<1x1x16xf32> to vector<1x16xf32>
      %132 = vector.shape_cast %129 : vector<1x16xf32> to vector<1x1x16xf32>
      tpu.vector_store %arg8[%c0_83, %c16, %c3_84], %132 {strides = array<i32>} : memref<2x22x22xf32, #tpu.memory_space<vmem>>, vector<1x1x16xf32>,
      %133 = vector.extract_strided_slice %24 {offsets = [0, 208], sizes = [1, 16], strides = [1, 1]} : vector<1x256xf32> to vector<1x16xf32>
      %c1_85 = arith.constant 1 : index
      %c16_86 = arith.constant 16 : index
      %c3_87 = arith.constant 3 : index
      %134 = vector.load %arg8[%c1_85, %c16_86, %c3_87] : memref<2x22x22xf32, #tpu.memory_space<vmem>>, vector<1x1x16xf32>
      %135 = vector.shape_cast %134 : vector<1x1x16xf32> to vector<1x16xf32>
      %136 = vector.shape_cast %133 : vector<1x16xf32> to vector<1x1x16xf32>
      tpu.vector_store %arg8[%c1_85, %c16_86, %c3_87], %136 {strides = array<i32>} : memref<2x22x22xf32, #tpu.memory_space<vmem>>, vector<1x1x16xf32>,
      %137 = vector.extract_strided_slice %19 {offsets = [0, 224], sizes = [1, 16], strides = [1, 1]} : vector<1x256xf32> to vector<1x16xf32>
      %c0_88 = arith.constant 0 : index
      %c17 = arith.constant 17 : index
      %c3_89 = arith.constant 3 : index
      %138 = vector.load %arg8[%c0_88, %c17, %c3_89] : memref<2x22x22xf32, #tpu.memory_space<vmem>>, vector<1x1x16xf32>
      %139 = vector.shape_cast %138 : vector<1x1x16xf32> to vector<1x16xf32>
      %140 = vector.shape_cast %137 : vector<1x16xf32> to vector<1x1x16xf32>
      tpu.vector_store %arg8[%c0_88, %c17, %c3_89], %140 {strides = array<i32>} : memref<2x22x22xf32, #tpu.memory_space<vmem>>, vector<1x1x16xf32>,
      %141 = vector.extract_strided_slice %24 {offsets = [0, 224], sizes = [1, 16], strides = [1, 1]} : vector<1x256xf32> to vector<1x16xf32>
      %c1_90 = arith.constant 1 : index
      %c17_91 = arith.constant 17 : index
      %c3_92 = arith.constant 3 : index
      %142 = vector.load %arg8[%c1_90, %c17_91, %c3_92] : memref<2x22x22xf32, #tpu.memory_space<vmem>>, vector<1x1x16xf32>
      %143 = vector.shape_cast %142 : vector<1x1x16xf32> to vector<1x16xf32>
      %144 = vector.shape_cast %141 : vector<1x16xf32> to vector<1x1x16xf32>
      tpu.vector_store %arg8[%c1_90, %c17_91, %c3_92], %144 {strides = array<i32>} : memref<2x22x22xf32, #tpu.memory_space<vmem>>, vector<1x1x16xf32>,
      %145 = vector.extract_strided_slice %19 {offsets = [0, 240], sizes = [1, 16], strides = [1, 1]} : vector<1x256xf32> to vector<1x16xf32>
      %c0_93 = arith.constant 0 : index
      %c18 = arith.constant 18 : index
      %c3_94 = arith.constant 3 : index
      %146 = vector.load %arg8[%c0_93, %c18, %c3_94] : memref<2x22x22xf32, #tpu.memory_space<vmem>>, vector<1x1x16xf32>
      %147 = vector.shape_cast %146 : vector<1x1x16xf32> to vector<1x16xf32>
      %148 = vector.shape_cast %145 : vector<1x16xf32> to vector<1x1x16xf32>
      tpu.vector_store %arg8[%c0_93, %c18, %c3_94], %148 {strides = array<i32>} : memref<2x22x22xf32, #tpu.memory_space<vmem>>, vector<1x1x16xf32>,
      %149 = vector.extract_strided_slice %24 {offsets = [0, 240], sizes = [1, 16], strides = [1, 1]} : vector<1x256xf32> to vector<1x16xf32>
      %c1_95 = arith.constant 1 : index
      %c18_96 = arith.constant 18 : index
      %c3_97 = arith.constant 3 : index
      %150 = vector.load %arg8[%c1_95, %c18_96, %c3_97] : memref<2x22x22xf32, #tpu.memory_space<vmem>>, vector<1x1x16xf32>
      %151 = vector.shape_cast %150 : vector<1x1x16xf32> to vector<1x16xf32>
      %152 = vector.shape_cast %149 : vector<1x16xf32> to vector<1x1x16xf32>
      tpu.vector_store %arg8[%c1_95, %c18_96, %c3_97], %152 {strides = array<i32>} : memref<2x22x22xf32, #tpu.memory_space<vmem>>, vector<1x1x16xf32>,
      %c0_98 = arith.constant 0 : index
      %153 = memref.load %arg2[%c0_98] : memref<98xf32, #tpu.memory_space<smem>>
      %c0_99 = arith.constant 0 : index
      %c0_100 = arith.constant 0 : index
      %c0_101 = arith.constant 0 : index
      %154 = vector.load %arg8[%c0_99, %c0_100, %c0_101] : memref<2x22x22xf32, #tpu.memory_space<vmem>>, vector<1x16x16xf32>
      %155 = vector.shape_cast %154 : vector<1x16x16xf32> to vector<16x16xf32>
      %156 = vector.broadcast %153 : f32 to vector<16x16xf32>
      %157 = arith.mulf %156, %155 : vector<16x16xf32>
      %c1_102 = arith.constant 1 : index
      %158 = memref.load %arg2[%c1_102] : memref<98xf32, #tpu.memory_space<smem>>
      %c0_103 = arith.constant 0 : index
      %c0_104 = arith.constant 0 : index
      %c1_105 = arith.constant 1 : index
      %159 = vector.load %arg8[%c0_103, %c0_104, %c1_105] : memref<2x22x22xf32, #tpu.memory_space<vmem>>, vector<1x16x16xf32>
      %160 = vector.shape_cast %159 : vector<1x16x16xf32> to vector<16x16xf32>
      %161 = vector.broadcast %158 : f32 to vector<16x16xf32>
      %162 = arith.mulf %161, %160 : vector<16x16xf32>
      %163 = arith.addf %157, %162 : vector<16x16xf32>
      %c2 = arith.constant 2 : index
      %164 = memref.load %arg2[%c2] : memref<98xf32, #tpu.memory_space<smem>>
      %c0_106 = arith.constant 0 : index
      %c0_107 = arith.constant 0 : index
      %c2_108 = arith.constant 2 : index
      %165 = vector.load %arg8[%c0_106, %c0_107, %c2_108] : memref<2x22x22xf32, #tpu.memory_space<vmem>>, vector<1x16x16xf32>
      %166 = vector.shape_cast %165 : vector<1x16x16xf32> to vector<16x16xf32>
      %167 = vector.broadcast %164 : f32 to vector<16x16xf32>
      %168 = arith.mulf %167, %166 : vector<16x16xf32>
      %169 = arith.addf %163, %168 : vector<16x16xf32>
      %c3_109 = arith.constant 3 : index
      %170 = memref.load %arg2[%c3_109] : memref<98xf32, #tpu.memory_space<smem>>
      %c0_110 = arith.constant 0 : index
      %c0_111 = arith.constant 0 : index
      %c3_112 = arith.constant 3 : index
      %171 = vector.load %arg8[%c0_110, %c0_111, %c3_112] : memref<2x22x22xf32, #tpu.memory_space<vmem>>, vector<1x16x16xf32>
      %172 = vector.shape_cast %171 : vector<1x16x16xf32> to vector<16x16xf32>
      %173 = vector.broadcast %170 : f32 to vector<16x16xf32>
      %174 = arith.mulf %173, %172 : vector<16x16xf32>
      %175 = arith.addf %169, %174 : vector<16x16xf32>
      %c4_113 = arith.constant 4 : index
      %176 = memref.load %arg2[%c4_113] : memref<98xf32, #tpu.memory_space<smem>>
      %c0_114 = arith.constant 0 : index
      %c0_115 = arith.constant 0 : index
      %c4_116 = arith.constant 4 : index
      %177 = vector.load %arg8[%c0_114, %c0_115, %c4_116] : memref<2x22x22xf32, #tpu.memory_space<vmem>>, vector<1x16x16xf32>
      %178 = vector.shape_cast %177 : vector<1x16x16xf32> to vector<16x16xf32>
      %179 = vector.broadcast %176 : f32 to vector<16x16xf32>
      %180 = arith.mulf %179, %178 : vector<16x16xf32>
      %181 = arith.addf %175, %180 : vector<16x16xf32>
      %c5_117 = arith.constant 5 : index
      %182 = memref.load %arg2[%c5_117] : memref<98xf32, #tpu.memory_space<smem>>
      %c0_118 = arith.constant 0 : index
      %c0_119 = arith.constant 0 : index
      %c5_120 = arith.constant 5 : index
      %183 = vector.load %arg8[%c0_118, %c0_119, %c5_120] : memref<2x22x22xf32, #tpu.memory_space<vmem>>, vector<1x16x16xf32>
      %184 = vector.shape_cast %183 : vector<1x16x16xf32> to vector<16x16xf32>
      %185 = vector.broadcast %182 : f32 to vector<16x16xf32>
      %186 = arith.mulf %185, %184 : vector<16x16xf32>
      %187 = arith.addf %181, %186 : vector<16x16xf32>
      %c6_121 = arith.constant 6 : index
      %188 = memref.load %arg2[%c6_121] : memref<98xf32, #tpu.memory_space<smem>>
      %c0_122 = arith.constant 0 : index
      %c0_123 = arith.constant 0 : index
      %c6_124 = arith.constant 6 : index
      %189 = vector.load %arg8[%c0_122, %c0_123, %c6_124] : memref<2x22x22xf32, #tpu.memory_space<vmem>>, vector<1x16x16xf32>
      %190 = vector.shape_cast %189 : vector<1x16x16xf32> to vector<16x16xf32>
      %191 = vector.broadcast %188 : f32 to vector<16x16xf32>
      %192 = arith.mulf %191, %190 : vector<16x16xf32>
      %193 = arith.addf %187, %192 : vector<16x16xf32>
      %c49 = arith.constant 49 : index
      %194 = memref.load %arg2[%c49] : memref<98xf32, #tpu.memory_space<smem>>
      %c1_125 = arith.constant 1 : index
      %c0_126 = arith.constant 0 : index
      %c0_127 = arith.constant 0 : index
      %195 = vector.load %arg8[%c1_125, %c0_126, %c0_127] : memref<2x22x22xf32, #tpu.memory_space<vmem>>, vector<1x16x16xf32>
      %196 = vector.shape_cast %195 : vector<1x16x16xf32> to vector<16x16xf32>
      %197 = vector.broadcast %194 : f32 to vector<16x16xf32>
      %198 = arith.mulf %197, %196 : vector<16x16xf32>
      %199 = arith.addf %193, %198 : vector<16x16xf32>
      %c50 = arith.constant 50 : index
      %200 = memref.load %arg2[%c50] : memref<98xf32, #tpu.memory_space<smem>>
      %c1_128 = arith.constant 1 : index
      %c0_129 = arith.constant 0 : index
      %c1_130 = arith.constant 1 : index
      %201 = vector.load %arg8[%c1_128, %c0_129, %c1_130] : memref<2x22x22xf32, #tpu.memory_space<vmem>>, vector<1x16x16xf32>
      %202 = vector.shape_cast %201 : vector<1x16x16xf32> to vector<16x16xf32>
      %203 = vector.broadcast %200 : f32 to vector<16x16xf32>
      %204 = arith.mulf %203, %202 : vector<16x16xf32>
      %205 = arith.addf %199, %204 : vector<16x16xf32>
      %c51 = arith.constant 51 : index
      %206 = memref.load %arg2[%c51] : memref<98xf32, #tpu.memory_space<smem>>
      %c1_131 = arith.constant 1 : index
      %c0_132 = arith.constant 0 : index
      %c2_133 = arith.constant 2 : index
      %207 = vector.load %arg8[%c1_131, %c0_132, %c2_133] : memref<2x22x22xf32, #tpu.memory_space<vmem>>, vector<1x16x16xf32>
      %208 = vector.shape_cast %207 : vector<1x16x16xf32> to vector<16x16xf32>
      %209 = vector.broadcast %206 : f32 to vector<16x16xf32>
      %210 = arith.mulf %209, %208 : vector<16x16xf32>
      %211 = arith.addf %205, %210 : vector<16x16xf32>
      %c52 = arith.constant 52 : index
      %212 = memref.load %arg2[%c52] : memref<98xf32, #tpu.memory_space<smem>>
      %c1_134 = arith.constant 1 : index
      %c0_135 = arith.constant 0 : index
      %c3_136 = arith.constant 3 : index
      %213 = vector.load %arg8[%c1_134, %c0_135, %c3_136] : memref<2x22x22xf32, #tpu.memory_space<vmem>>, vector<1x16x16xf32>
      %214 = vector.shape_cast %213 : vector<1x16x16xf32> to vector<16x16xf32>
      %215 = vector.broadcast %212 : f32 to vector<16x16xf32>
      %216 = arith.mulf %215, %214 : vector<16x16xf32>
      %217 = arith.addf %211, %216 : vector<16x16xf32>
      %c53 = arith.constant 53 : index
      %218 = memref.load %arg2[%c53] : memref<98xf32, #tpu.memory_space<smem>>
      %c1_137 = arith.constant 1 : index
      %c0_138 = arith.constant 0 : index
      %c4_139 = arith.constant 4 : index
      %219 = vector.load %arg8[%c1_137, %c0_138, %c4_139] : memref<2x22x22xf32, #tpu.memory_space<vmem>>, vector<1x16x16xf32>
      %220 = vector.shape_cast %219 : vector<1x16x16xf32> to vector<16x16xf32>
      %221 = vector.broadcast %218 : f32 to vector<16x16xf32>
      %222 = arith.mulf %221, %220 : vector<16x16xf32>
      %223 = arith.addf %217, %222 : vector<16x16xf32>
      %c54 = arith.constant 54 : index
      %224 = memref.load %arg2[%c54] : memref<98xf32, #tpu.memory_space<smem>>
      %c1_140 = arith.constant 1 : index
      %c0_141 = arith.constant 0 : index
      %c5_142 = arith.constant 5 : index
      %225 = vector.load %arg8[%c1_140, %c0_141, %c5_142] : memref<2x22x22xf32, #tpu.memory_space<vmem>>, vector<1x16x16xf32>
      %226 = vector.shape_cast %225 : vector<1x16x16xf32> to vector<16x16xf32>
      %227 = vector.broadcast %224 : f32 to vector<16x16xf32>
      %228 = arith.mulf %227, %226 : vector<16x16xf32>
      %229 = arith.addf %223, %228 : vector<16x16xf32>
      %c55 = arith.constant 55 : index
      %230 = memref.load %arg2[%c55] : memref<98xf32, #tpu.memory_space<smem>>
      %c1_143 = arith.constant 1 : index
      %c0_144 = arith.constant 0 : index
      %c6_145 = arith.constant 6 : index
      %231 = vector.load %arg8[%c1_143, %c0_144, %c6_145] : memref<2x22x22xf32, #tpu.memory_space<vmem>>, vector<1x16x16xf32>
      %232 = vector.shape_cast %231 : vector<1x16x16xf32> to vector<16x16xf32>
      %233 = vector.broadcast %230 : f32 to vector<16x16xf32>
      %234 = arith.mulf %233, %232 : vector<16x16xf32>
      %235 = arith.addf %229, %234 : vector<16x16xf32>
      %c7_146 = arith.constant 7 : index
      %236 = memref.load %arg2[%c7_146] : memref<98xf32, #tpu.memory_space<smem>>
      %c0_147 = arith.constant 0 : index
      %c1_148 = arith.constant 1 : index
      %c0_149 = arith.constant 0 : index
      %237 = vector.load %arg8[%c0_147, %c1_148, %c0_149] : memref<2x22x22xf32, #tpu.memory_space<vmem>>, vector<1x16x16xf32>
      %238 = vector.shape_cast %237 : vector<1x16x16xf32> to vector<16x16xf32>
      %239 = vector.broadcast %236 : f32 to vector<16x16xf32>
      %240 = arith.mulf %239, %238 : vector<16x16xf32>
      %c8_150 = arith.constant 8 : index
      %241 = memref.load %arg2[%c8_150] : memref<98xf32, #tpu.memory_space<smem>>
      %c0_151 = arith.constant 0 : index
      %c1_152 = arith.constant 1 : index
      %c1_153 = arith.constant 1 : index
      %242 = vector.load %arg8[%c0_151, %c1_152, %c1_153] : memref<2x22x22xf32, #tpu.memory_space<vmem>>, vector<1x16x16xf32>
      %243 = vector.shape_cast %242 : vector<1x16x16xf32> to vector<16x16xf32>
      %244 = vector.broadcast %241 : f32 to vector<16x16xf32>
      %245 = arith.mulf %244, %243 : vector<16x16xf32>
      %246 = arith.addf %240, %245 : vector<16x16xf32>
      %c9_154 = arith.constant 9 : index
      %247 = memref.load %arg2[%c9_154] : memref<98xf32, #tpu.memory_space<smem>>
      %c0_155 = arith.constant 0 : index
      %c1_156 = arith.constant 1 : index
      %c2_157 = arith.constant 2 : index
      %248 = vector.load %arg8[%c0_155, %c1_156, %c2_157] : memref<2x22x22xf32, #tpu.memory_space<vmem>>, vector<1x16x16xf32>
      %249 = vector.shape_cast %248 : vector<1x16x16xf32> to vector<16x16xf32>
      %250 = vector.broadcast %247 : f32 to vector<16x16xf32>
      %251 = arith.mulf %250, %249 : vector<16x16xf32>
      %252 = arith.addf %246, %251 : vector<16x16xf32>
      %c10_158 = arith.constant 10 : index
      %253 = memref.load %arg2[%c10_158] : memref<98xf32, #tpu.memory_space<smem>>
      %c0_159 = arith.constant 0 : index
      %c1_160 = arith.constant 1 : index
      %c3_161 = arith.constant 3 : index
      %254 = vector.load %arg8[%c0_159, %c1_160, %c3_161] : memref<2x22x22xf32, #tpu.memory_space<vmem>>, vector<1x16x16xf32>
      %255 = vector.shape_cast %254 : vector<1x16x16xf32> to vector<16x16xf32>
      %256 = vector.broadcast %253 : f32 to vector<16x16xf32>
      %257 = arith.mulf %256, %255 : vector<16x16xf32>
      %258 = arith.addf %252, %257 : vector<16x16xf32>
      %c11_162 = arith.constant 11 : index
      %259 = memref.load %arg2[%c11_162] : memref<98xf32, #tpu.memory_space<smem>>
      %c0_163 = arith.constant 0 : index
      %c1_164 = arith.constant 1 : index
      %c4_165 = arith.constant 4 : index
      %260 = vector.load %arg8[%c0_163, %c1_164, %c4_165] : memref<2x22x22xf32, #tpu.memory_space<vmem>>, vector<1x16x16xf32>
      %261 = vector.shape_cast %260 : vector<1x16x16xf32> to vector<16x16xf32>
      %262 = vector.broadcast %259 : f32 to vector<16x16xf32>
      %263 = arith.mulf %262, %261 : vector<16x16xf32>
      %264 = arith.addf %258, %263 : vector<16x16xf32>
      %c12_166 = arith.constant 12 : index
      %265 = memref.load %arg2[%c12_166] : memref<98xf32, #tpu.memory_space<smem>>
      %c0_167 = arith.constant 0 : index
      %c1_168 = arith.constant 1 : index
      %c5_169 = arith.constant 5 : index
      %266 = vector.load %arg8[%c0_167, %c1_168, %c5_169] : memref<2x22x22xf32, #tpu.memory_space<vmem>>, vector<1x16x16xf32>
      %267 = vector.shape_cast %266 : vector<1x16x16xf32> to vector<16x16xf32>
      %268 = vector.broadcast %265 : f32 to vector<16x16xf32>
      %269 = arith.mulf %268, %267 : vector<16x16xf32>
      %270 = arith.addf %264, %269 : vector<16x16xf32>
      %c13_170 = arith.constant 13 : index
      %271 = memref.load %arg2[%c13_170] : memref<98xf32, #tpu.memory_space<smem>>
      %c0_171 = arith.constant 0 : index
      %c1_172 = arith.constant 1 : index
      %c6_173 = arith.constant 6 : index
      %272 = vector.load %arg8[%c0_171, %c1_172, %c6_173] : memref<2x22x22xf32, #tpu.memory_space<vmem>>, vector<1x16x16xf32>
      %273 = vector.shape_cast %272 : vector<1x16x16xf32> to vector<16x16xf32>
      %274 = vector.broadcast %271 : f32 to vector<16x16xf32>
      %275 = arith.mulf %274, %273 : vector<16x16xf32>
      %276 = arith.addf %270, %275 : vector<16x16xf32>
      %c56 = arith.constant 56 : index
      %277 = memref.load %arg2[%c56] : memref<98xf32, #tpu.memory_space<smem>>
      %c1_174 = arith.constant 1 : index
      %c1_175 = arith.constant 1 : index
      %c0_176 = arith.constant 0 : index
      %278 = vector.load %arg8[%c1_174, %c1_175, %c0_176] : memref<2x22x22xf32, #tpu.memory_space<vmem>>, vector<1x16x16xf32>
      %279 = vector.shape_cast %278 : vector<1x16x16xf32> to vector<16x16xf32>
      %280 = vector.broadcast %277 : f32 to vector<16x16xf32>
      %281 = arith.mulf %280, %279 : vector<16x16xf32>
      %282 = arith.addf %276, %281 : vector<16x16xf32>
      %c57 = arith.constant 57 : index
      %283 = memref.load %arg2[%c57] : memref<98xf32, #tpu.memory_space<smem>>
      %c1_177 = arith.constant 1 : index
      %c1_178 = arith.constant 1 : index
      %c1_179 = arith.constant 1 : index
      %284 = vector.load %arg8[%c1_177, %c1_178, %c1_179] : memref<2x22x22xf32, #tpu.memory_space<vmem>>, vector<1x16x16xf32>
      %285 = vector.shape_cast %284 : vector<1x16x16xf32> to vector<16x16xf32>
      %286 = vector.broadcast %283 : f32 to vector<16x16xf32>
      %287 = arith.mulf %286, %285 : vector<16x16xf32>
      %288 = arith.addf %282, %287 : vector<16x16xf32>
      %c58 = arith.constant 58 : index
      %289 = memref.load %arg2[%c58] : memref<98xf32, #tpu.memory_space<smem>>
      %c1_180 = arith.constant 1 : index
      %c1_181 = arith.constant 1 : index
      %c2_182 = arith.constant 2 : index
      %290 = vector.load %arg8[%c1_180, %c1_181, %c2_182] : memref<2x22x22xf32, #tpu.memory_space<vmem>>, vector<1x16x16xf32>
      %291 = vector.shape_cast %290 : vector<1x16x16xf32> to vector<16x16xf32>
      %292 = vector.broadcast %289 : f32 to vector<16x16xf32>
      %293 = arith.mulf %292, %291 : vector<16x16xf32>
      %294 = arith.addf %288, %293 : vector<16x16xf32>
      %c59 = arith.constant 59 : index
      %295 = memref.load %arg2[%c59] : memref<98xf32, #tpu.memory_space<smem>>
      %c1_183 = arith.constant 1 : index
      %c1_184 = arith.constant 1 : index
      %c3_185 = arith.constant 3 : index
      %296 = vector.load %arg8[%c1_183, %c1_184, %c3_185] : memref<2x22x22xf32, #tpu.memory_space<vmem>>, vector<1x16x16xf32>
      %297 = vector.shape_cast %296 : vector<1x16x16xf32> to vector<16x16xf32>
      %298 = vector.broadcast %295 : f32 to vector<16x16xf32>
      %299 = arith.mulf %298, %297 : vector<16x16xf32>
      %300 = arith.addf %294, %299 : vector<16x16xf32>
      %c60 = arith.constant 60 : index
      %301 = memref.load %arg2[%c60] : memref<98xf32, #tpu.memory_space<smem>>
      %c1_186 = arith.constant 1 : index
      %c1_187 = arith.constant 1 : index
      %c4_188 = arith.constant 4 : index
      %302 = vector.load %arg8[%c1_186, %c1_187, %c4_188] : memref<2x22x22xf32, #tpu.memory_space<vmem>>, vector<1x16x16xf32>
      %303 = vector.shape_cast %302 : vector<1x16x16xf32> to vector<16x16xf32>
      %304 = vector.broadcast %301 : f32 to vector<16x16xf32>
      %305 = arith.mulf %304, %303 : vector<16x16xf32>
      %306 = arith.addf %300, %305 : vector<16x16xf32>
      %c61 = arith.constant 61 : index
      %307 = memref.load %arg2[%c61] : memref<98xf32, #tpu.memory_space<smem>>
      %c1_189 = arith.constant 1 : index
      %c1_190 = arith.constant 1 : index
      %c5_191 = arith.constant 5 : index
      %308 = vector.load %arg8[%c1_189, %c1_190, %c5_191] : memref<2x22x22xf32, #tpu.memory_space<vmem>>, vector<1x16x16xf32>
      %309 = vector.shape_cast %308 : vector<1x16x16xf32> to vector<16x16xf32>
      %310 = vector.broadcast %307 : f32 to vector<16x16xf32>
      %311 = arith.mulf %310, %309 : vector<16x16xf32>
      %312 = arith.addf %306, %311 : vector<16x16xf32>
      %c62 = arith.constant 62 : index
      %313 = memref.load %arg2[%c62] : memref<98xf32, #tpu.memory_space<smem>>
      %c1_192 = arith.constant 1 : index
      %c1_193 = arith.constant 1 : index
      %c6_194 = arith.constant 6 : index
      %314 = vector.load %arg8[%c1_192, %c1_193, %c6_194] : memref<2x22x22xf32, #tpu.memory_space<vmem>>, vector<1x16x16xf32>
      %315 = vector.shape_cast %314 : vector<1x16x16xf32> to vector<16x16xf32>
      %316 = vector.broadcast %313 : f32 to vector<16x16xf32>
      %317 = arith.mulf %316, %315 : vector<16x16xf32>
      %318 = arith.addf %312, %317 : vector<16x16xf32>
      %c14_195 = arith.constant 14 : index
      %319 = memref.load %arg2[%c14_195] : memref<98xf32, #tpu.memory_space<smem>>
      %c0_196 = arith.constant 0 : index
      %c2_197 = arith.constant 2 : index
      %c0_198 = arith.constant 0 : index
      %320 = vector.load %arg8[%c0_196, %c2_197, %c0_198] : memref<2x22x22xf32, #tpu.memory_space<vmem>>, vector<1x16x16xf32>
      %321 = vector.shape_cast %320 : vector<1x16x16xf32> to vector<16x16xf32>
      %322 = vector.broadcast %319 : f32 to vector<16x16xf32>
      %323 = arith.mulf %322, %321 : vector<16x16xf32>
      %c15_199 = arith.constant 15 : index
      %324 = memref.load %arg2[%c15_199] : memref<98xf32, #tpu.memory_space<smem>>
      %c0_200 = arith.constant 0 : index
      %c2_201 = arith.constant 2 : index
      %c1_202 = arith.constant 1 : index
      %325 = vector.load %arg8[%c0_200, %c2_201, %c1_202] : memref<2x22x22xf32, #tpu.memory_space<vmem>>, vector<1x16x16xf32>
      %326 = vector.shape_cast %325 : vector<1x16x16xf32> to vector<16x16xf32>
      %327 = vector.broadcast %324 : f32 to vector<16x16xf32>
      %328 = arith.mulf %327, %326 : vector<16x16xf32>
      %329 = arith.addf %323, %328 : vector<16x16xf32>
      %c16_203 = arith.constant 16 : index
      %330 = memref.load %arg2[%c16_203] : memref<98xf32, #tpu.memory_space<smem>>
      %c0_204 = arith.constant 0 : index
      %c2_205 = arith.constant 2 : index
      %c2_206 = arith.constant 2 : index
      %331 = vector.load %arg8[%c0_204, %c2_205, %c2_206] : memref<2x22x22xf32, #tpu.memory_space<vmem>>, vector<1x16x16xf32>
      %332 = vector.shape_cast %331 : vector<1x16x16xf32> to vector<16x16xf32>
      %333 = vector.broadcast %330 : f32 to vector<16x16xf32>
      %334 = arith.mulf %333, %332 : vector<16x16xf32>
      %335 = arith.addf %329, %334 : vector<16x16xf32>
      %c17_207 = arith.constant 17 : index
      %336 = memref.load %arg2[%c17_207] : memref<98xf32, #tpu.memory_space<smem>>
      %c0_208 = arith.constant 0 : index
      %c2_209 = arith.constant 2 : index
      %c3_210 = arith.constant 3 : index
      %337 = vector.load %arg8[%c0_208, %c2_209, %c3_210] : memref<2x22x22xf32, #tpu.memory_space<vmem>>, vector<1x16x16xf32>
      %338 = vector.shape_cast %337 : vector<1x16x16xf32> to vector<16x16xf32>
      %339 = vector.broadcast %336 : f32 to vector<16x16xf32>
      %340 = arith.mulf %339, %338 : vector<16x16xf32>
      %341 = arith.addf %335, %340 : vector<16x16xf32>
      %c18_211 = arith.constant 18 : index
      %342 = memref.load %arg2[%c18_211] : memref<98xf32, #tpu.memory_space<smem>>
      %c0_212 = arith.constant 0 : index
      %c2_213 = arith.constant 2 : index
      %c4_214 = arith.constant 4 : index
      %343 = vector.load %arg8[%c0_212, %c2_213, %c4_214] : memref<2x22x22xf32, #tpu.memory_space<vmem>>, vector<1x16x16xf32>
      %344 = vector.shape_cast %343 : vector<1x16x16xf32> to vector<16x16xf32>
      %345 = vector.broadcast %342 : f32 to vector<16x16xf32>
      %346 = arith.mulf %345, %344 : vector<16x16xf32>
      %347 = arith.addf %341, %346 : vector<16x16xf32>
      %c19 = arith.constant 19 : index
      %348 = memref.load %arg2[%c19] : memref<98xf32, #tpu.memory_space<smem>>
      %c0_215 = arith.constant 0 : index
      %c2_216 = arith.constant 2 : index
      %c5_217 = arith.constant 5 : index
      %349 = vector.load %arg8[%c0_215, %c2_216, %c5_217] : memref<2x22x22xf32, #tpu.memory_space<vmem>>, vector<1x16x16xf32>
      %350 = vector.shape_cast %349 : vector<1x16x16xf32> to vector<16x16xf32>
      %351 = vector.broadcast %348 : f32 to vector<16x16xf32>
      %352 = arith.mulf %351, %350 : vector<16x16xf32>
      %353 = arith.addf %347, %352 : vector<16x16xf32>
      %c20 = arith.constant 20 : index
      %354 = memref.load %arg2[%c20] : memref<98xf32, #tpu.memory_space<smem>>
      %c0_218 = arith.constant 0 : index
      %c2_219 = arith.constant 2 : index
      %c6_220 = arith.constant 6 : index
      %355 = vector.load %arg8[%c0_218, %c2_219, %c6_220] : memref<2x22x22xf32, #tpu.memory_space<vmem>>, vector<1x16x16xf32>
      %356 = vector.shape_cast %355 : vector<1x16x16xf32> to vector<16x16xf32>
      %357 = vector.broadcast %354 : f32 to vector<16x16xf32>
      %358 = arith.mulf %357, %356 : vector<16x16xf32>
      %359 = arith.addf %353, %358 : vector<16x16xf32>
      %c63 = arith.constant 63 : index
      %360 = memref.load %arg2[%c63] : memref<98xf32, #tpu.memory_space<smem>>
      %c1_221 = arith.constant 1 : index
      %c2_222 = arith.constant 2 : index
      %c0_223 = arith.constant 0 : index
      %361 = vector.load %arg8[%c1_221, %c2_222, %c0_223] : memref<2x22x22xf32, #tpu.memory_space<vmem>>, vector<1x16x16xf32>
      %362 = vector.shape_cast %361 : vector<1x16x16xf32> to vector<16x16xf32>
      %363 = vector.broadcast %360 : f32 to vector<16x16xf32>
      %364 = arith.mulf %363, %362 : vector<16x16xf32>
      %365 = arith.addf %359, %364 : vector<16x16xf32>
      %c64 = arith.constant 64 : index
      %366 = memref.load %arg2[%c64] : memref<98xf32, #tpu.memory_space<smem>>
      %c1_224 = arith.constant 1 : index
      %c2_225 = arith.constant 2 : index
      %c1_226 = arith.constant 1 : index
      %367 = vector.load %arg8[%c1_224, %c2_225, %c1_226] : memref<2x22x22xf32, #tpu.memory_space<vmem>>, vector<1x16x16xf32>
      %368 = vector.shape_cast %367 : vector<1x16x16xf32> to vector<16x16xf32>
      %369 = vector.broadcast %366 : f32 to vector<16x16xf32>
      %370 = arith.mulf %369, %368 : vector<16x16xf32>
      %371 = arith.addf %365, %370 : vector<16x16xf32>
      %c65 = arith.constant 65 : index
      %372 = memref.load %arg2[%c65] : memref<98xf32, #tpu.memory_space<smem>>
      %c1_227 = arith.constant 1 : index
      %c2_228 = arith.constant 2 : index
      %c2_229 = arith.constant 2 : index
      %373 = vector.load %arg8[%c1_227, %c2_228, %c2_229] : memref<2x22x22xf32, #tpu.memory_space<vmem>>, vector<1x16x16xf32>
      %374 = vector.shape_cast %373 : vector<1x16x16xf32> to vector<16x16xf32>
      %375 = vector.broadcast %372 : f32 to vector<16x16xf32>
      %376 = arith.mulf %375, %374 : vector<16x16xf32>
      %377 = arith.addf %371, %376 : vector<16x16xf32>
      %c66 = arith.constant 66 : index
      %378 = memref.load %arg2[%c66] : memref<98xf32, #tpu.memory_space<smem>>
      %c1_230 = arith.constant 1 : index
      %c2_231 = arith.constant 2 : index
      %c3_232 = arith.constant 3 : index
      %379 = vector.load %arg8[%c1_230, %c2_231, %c3_232] : memref<2x22x22xf32, #tpu.memory_space<vmem>>, vector<1x16x16xf32>
      %380 = vector.shape_cast %379 : vector<1x16x16xf32> to vector<16x16xf32>
      %381 = vector.broadcast %378 : f32 to vector<16x16xf32>
      %382 = arith.mulf %381, %380 : vector<16x16xf32>
      %383 = arith.addf %377, %382 : vector<16x16xf32>
      %c67 = arith.constant 67 : index
      %384 = memref.load %arg2[%c67] : memref<98xf32, #tpu.memory_space<smem>>
      %c1_233 = arith.constant 1 : index
      %c2_234 = arith.constant 2 : index
      %c4_235 = arith.constant 4 : index
      %385 = vector.load %arg8[%c1_233, %c2_234, %c4_235] : memref<2x22x22xf32, #tpu.memory_space<vmem>>, vector<1x16x16xf32>
      %386 = vector.shape_cast %385 : vector<1x16x16xf32> to vector<16x16xf32>
      %387 = vector.broadcast %384 : f32 to vector<16x16xf32>
      %388 = arith.mulf %387, %386 : vector<16x16xf32>
      %389 = arith.addf %383, %388 : vector<16x16xf32>
      %c68 = arith.constant 68 : index
      %390 = memref.load %arg2[%c68] : memref<98xf32, #tpu.memory_space<smem>>
      %c1_236 = arith.constant 1 : index
      %c2_237 = arith.constant 2 : index
      %c5_238 = arith.constant 5 : index
      %391 = vector.load %arg8[%c1_236, %c2_237, %c5_238] : memref<2x22x22xf32, #tpu.memory_space<vmem>>, vector<1x16x16xf32>
      %392 = vector.shape_cast %391 : vector<1x16x16xf32> to vector<16x16xf32>
      %393 = vector.broadcast %390 : f32 to vector<16x16xf32>
      %394 = arith.mulf %393, %392 : vector<16x16xf32>
      %395 = arith.addf %389, %394 : vector<16x16xf32>
      %c69 = arith.constant 69 : index
      %396 = memref.load %arg2[%c69] : memref<98xf32, #tpu.memory_space<smem>>
      %c1_239 = arith.constant 1 : index
      %c2_240 = arith.constant 2 : index
      %c6_241 = arith.constant 6 : index
      %397 = vector.load %arg8[%c1_239, %c2_240, %c6_241] : memref<2x22x22xf32, #tpu.memory_space<vmem>>, vector<1x16x16xf32>
      %398 = vector.shape_cast %397 : vector<1x16x16xf32> to vector<16x16xf32>
      %399 = vector.broadcast %396 : f32 to vector<16x16xf32>
      %400 = arith.mulf %399, %398 : vector<16x16xf32>
      %401 = arith.addf %395, %400 : vector<16x16xf32>
      %c21 = arith.constant 21 : index
      %402 = memref.load %arg2[%c21] : memref<98xf32, #tpu.memory_space<smem>>
      %c0_242 = arith.constant 0 : index
      %c3_243 = arith.constant 3 : index
      %c0_244 = arith.constant 0 : index
      %403 = vector.load %arg8[%c0_242, %c3_243, %c0_244] : memref<2x22x22xf32, #tpu.memory_space<vmem>>, vector<1x16x16xf32>
      %404 = vector.shape_cast %403 : vector<1x16x16xf32> to vector<16x16xf32>
      %405 = vector.broadcast %402 : f32 to vector<16x16xf32>
      %406 = arith.mulf %405, %404 : vector<16x16xf32>
      %c22 = arith.constant 22 : index
      %407 = memref.load %arg2[%c22] : memref<98xf32, #tpu.memory_space<smem>>
      %c0_245 = arith.constant 0 : index
      %c3_246 = arith.constant 3 : index
      %c1_247 = arith.constant 1 : index
      %408 = vector.load %arg8[%c0_245, %c3_246, %c1_247] : memref<2x22x22xf32, #tpu.memory_space<vmem>>, vector<1x16x16xf32>
      %409 = vector.shape_cast %408 : vector<1x16x16xf32> to vector<16x16xf32>
      %410 = vector.broadcast %407 : f32 to vector<16x16xf32>
      %411 = arith.mulf %410, %409 : vector<16x16xf32>
      %412 = arith.addf %406, %411 : vector<16x16xf32>
      %c23 = arith.constant 23 : index
      %413 = memref.load %arg2[%c23] : memref<98xf32, #tpu.memory_space<smem>>
      %c0_248 = arith.constant 0 : index
      %c3_249 = arith.constant 3 : index
      %c2_250 = arith.constant 2 : index
      %414 = vector.load %arg8[%c0_248, %c3_249, %c2_250] : memref<2x22x22xf32, #tpu.memory_space<vmem>>, vector<1x16x16xf32>
      %415 = vector.shape_cast %414 : vector<1x16x16xf32> to vector<16x16xf32>
      %416 = vector.broadcast %413 : f32 to vector<16x16xf32>
      %417 = arith.mulf %416, %415 : vector<16x16xf32>
      %418 = arith.addf %412, %417 : vector<16x16xf32>
      %c24 = arith.constant 24 : index
      %419 = memref.load %arg2[%c24] : memref<98xf32, #tpu.memory_space<smem>>
      %c0_251 = arith.constant 0 : index
      %c3_252 = arith.constant 3 : index
      %c3_253 = arith.constant 3 : index
      %420 = vector.load %arg8[%c0_251, %c3_252, %c3_253] : memref<2x22x22xf32, #tpu.memory_space<vmem>>, vector<1x16x16xf32>
      %421 = vector.shape_cast %420 : vector<1x16x16xf32> to vector<16x16xf32>
      %422 = vector.broadcast %419 : f32 to vector<16x16xf32>
      %423 = arith.mulf %422, %421 : vector<16x16xf32>
      %424 = arith.addf %418, %423 : vector<16x16xf32>
      %c25 = arith.constant 25 : index
      %425 = memref.load %arg2[%c25] : memref<98xf32, #tpu.memory_space<smem>>
      %c0_254 = arith.constant 0 : index
      %c3_255 = arith.constant 3 : index
      %c4_256 = arith.constant 4 : index
      %426 = vector.load %arg8[%c0_254, %c3_255, %c4_256] : memref<2x22x22xf32, #tpu.memory_space<vmem>>, vector<1x16x16xf32>
      %427 = vector.shape_cast %426 : vector<1x16x16xf32> to vector<16x16xf32>
      %428 = vector.broadcast %425 : f32 to vector<16x16xf32>
      %429 = arith.mulf %428, %427 : vector<16x16xf32>
      %430 = arith.addf %424, %429 : vector<16x16xf32>
      %c26 = arith.constant 26 : index
      %431 = memref.load %arg2[%c26] : memref<98xf32, #tpu.memory_space<smem>>
      %c0_257 = arith.constant 0 : index
      %c3_258 = arith.constant 3 : index
      %c5_259 = arith.constant 5 : index
      %432 = vector.load %arg8[%c0_257, %c3_258, %c5_259] : memref<2x22x22xf32, #tpu.memory_space<vmem>>, vector<1x16x16xf32>
      %433 = vector.shape_cast %432 : vector<1x16x16xf32> to vector<16x16xf32>
      %434 = vector.broadcast %431 : f32 to vector<16x16xf32>
      %435 = arith.mulf %434, %433 : vector<16x16xf32>
      %436 = arith.addf %430, %435 : vector<16x16xf32>
      %c27 = arith.constant 27 : index
      %437 = memref.load %arg2[%c27] : memref<98xf32, #tpu.memory_space<smem>>
      %c0_260 = arith.constant 0 : index
      %c3_261 = arith.constant 3 : index
      %c6_262 = arith.constant 6 : index
      %438 = vector.load %arg8[%c0_260, %c3_261, %c6_262] : memref<2x22x22xf32, #tpu.memory_space<vmem>>, vector<1x16x16xf32>
      %439 = vector.shape_cast %438 : vector<1x16x16xf32> to vector<16x16xf32>
      %440 = vector.broadcast %437 : f32 to vector<16x16xf32>
      %441 = arith.mulf %440, %439 : vector<16x16xf32>
      %442 = arith.addf %436, %441 : vector<16x16xf32>
      %c70 = arith.constant 70 : index
      %443 = memref.load %arg2[%c70] : memref<98xf32, #tpu.memory_space<smem>>
      %c1_263 = arith.constant 1 : index
      %c3_264 = arith.constant 3 : index
      %c0_265 = arith.constant 0 : index
      %444 = vector.load %arg8[%c1_263, %c3_264, %c0_265] : memref<2x22x22xf32, #tpu.memory_space<vmem>>, vector<1x16x16xf32>
      %445 = vector.shape_cast %444 : vector<1x16x16xf32> to vector<16x16xf32>
      %446 = vector.broadcast %443 : f32 to vector<16x16xf32>
      %447 = arith.mulf %446, %445 : vector<16x16xf32>
      %448 = arith.addf %442, %447 : vector<16x16xf32>
      %c71 = arith.constant 71 : index
      %449 = memref.load %arg2[%c71] : memref<98xf32, #tpu.memory_space<smem>>
      %c1_266 = arith.constant 1 : index
      %c3_267 = arith.constant 3 : index
      %c1_268 = arith.constant 1 : index
      %450 = vector.load %arg8[%c1_266, %c3_267, %c1_268] : memref<2x22x22xf32, #tpu.memory_space<vmem>>, vector<1x16x16xf32>
      %451 = vector.shape_cast %450 : vector<1x16x16xf32> to vector<16x16xf32>
      %452 = vector.broadcast %449 : f32 to vector<16x16xf32>
      %453 = arith.mulf %452, %451 : vector<16x16xf32>
      %454 = arith.addf %448, %453 : vector<16x16xf32>
      %c72 = arith.constant 72 : index
      %455 = memref.load %arg2[%c72] : memref<98xf32, #tpu.memory_space<smem>>
      %c1_269 = arith.constant 1 : index
      %c3_270 = arith.constant 3 : index
      %c2_271 = arith.constant 2 : index
      %456 = vector.load %arg8[%c1_269, %c3_270, %c2_271] : memref<2x22x22xf32, #tpu.memory_space<vmem>>, vector<1x16x16xf32>
      %457 = vector.shape_cast %456 : vector<1x16x16xf32> to vector<16x16xf32>
      %458 = vector.broadcast %455 : f32 to vector<16x16xf32>
      %459 = arith.mulf %458, %457 : vector<16x16xf32>
      %460 = arith.addf %454, %459 : vector<16x16xf32>
      %c73 = arith.constant 73 : index
      %461 = memref.load %arg2[%c73] : memref<98xf32, #tpu.memory_space<smem>>
      %c1_272 = arith.constant 1 : index
      %c3_273 = arith.constant 3 : index
      %c3_274 = arith.constant 3 : index
      %462 = vector.load %arg8[%c1_272, %c3_273, %c3_274] : memref<2x22x22xf32, #tpu.memory_space<vmem>>, vector<1x16x16xf32>
      %463 = vector.shape_cast %462 : vector<1x16x16xf32> to vector<16x16xf32>
      %464 = vector.broadcast %461 : f32 to vector<16x16xf32>
      %465 = arith.mulf %464, %463 : vector<16x16xf32>
      %466 = arith.addf %460, %465 : vector<16x16xf32>
      %c74 = arith.constant 74 : index
      %467 = memref.load %arg2[%c74] : memref<98xf32, #tpu.memory_space<smem>>
      %c1_275 = arith.constant 1 : index
      %c3_276 = arith.constant 3 : index
      %c4_277 = arith.constant 4 : index
      %468 = vector.load %arg8[%c1_275, %c3_276, %c4_277] : memref<2x22x22xf32, #tpu.memory_space<vmem>>, vector<1x16x16xf32>
      %469 = vector.shape_cast %468 : vector<1x16x16xf32> to vector<16x16xf32>
      %470 = vector.broadcast %467 : f32 to vector<16x16xf32>
      %471 = arith.mulf %470, %469 : vector<16x16xf32>
      %472 = arith.addf %466, %471 : vector<16x16xf32>
      %c75 = arith.constant 75 : index
      %473 = memref.load %arg2[%c75] : memref<98xf32, #tpu.memory_space<smem>>
      %c1_278 = arith.constant 1 : index
      %c3_279 = arith.constant 3 : index
      %c5_280 = arith.constant 5 : index
      %474 = vector.load %arg8[%c1_278, %c3_279, %c5_280] : memref<2x22x22xf32, #tpu.memory_space<vmem>>, vector<1x16x16xf32>
      %475 = vector.shape_cast %474 : vector<1x16x16xf32> to vector<16x16xf32>
      %476 = vector.broadcast %473 : f32 to vector<16x16xf32>
      %477 = arith.mulf %476, %475 : vector<16x16xf32>
      %478 = arith.addf %472, %477 : vector<16x16xf32>
      %c76 = arith.constant 76 : index
      %479 = memref.load %arg2[%c76] : memref<98xf32, #tpu.memory_space<smem>>
      %c1_281 = arith.constant 1 : index
      %c3_282 = arith.constant 3 : index
      %c6_283 = arith.constant 6 : index
      %480 = vector.load %arg8[%c1_281, %c3_282, %c6_283] : memref<2x22x22xf32, #tpu.memory_space<vmem>>, vector<1x16x16xf32>
      %481 = vector.shape_cast %480 : vector<1x16x16xf32> to vector<16x16xf32>
      %482 = vector.broadcast %479 : f32 to vector<16x16xf32>
      %483 = arith.mulf %482, %481 : vector<16x16xf32>
      %484 = arith.addf %478, %483 : vector<16x16xf32>
      %c28 = arith.constant 28 : index
      %485 = memref.load %arg2[%c28] : memref<98xf32, #tpu.memory_space<smem>>
      %c0_284 = arith.constant 0 : index
      %c4_285 = arith.constant 4 : index
      %c0_286 = arith.constant 0 : index
      %486 = vector.load %arg8[%c0_284, %c4_285, %c0_286] : memref<2x22x22xf32, #tpu.memory_space<vmem>>, vector<1x16x16xf32>
      %487 = vector.shape_cast %486 : vector<1x16x16xf32> to vector<16x16xf32>
      %488 = vector.broadcast %485 : f32 to vector<16x16xf32>
      %489 = arith.mulf %488, %487 : vector<16x16xf32>
      %c29 = arith.constant 29 : index
      %490 = memref.load %arg2[%c29] : memref<98xf32, #tpu.memory_space<smem>>
      %c0_287 = arith.constant 0 : index
      %c4_288 = arith.constant 4 : index
      %c1_289 = arith.constant 1 : index
      %491 = vector.load %arg8[%c0_287, %c4_288, %c1_289] : memref<2x22x22xf32, #tpu.memory_space<vmem>>, vector<1x16x16xf32>
      %492 = vector.shape_cast %491 : vector<1x16x16xf32> to vector<16x16xf32>
      %493 = vector.broadcast %490 : f32 to vector<16x16xf32>
      %494 = arith.mulf %493, %492 : vector<16x16xf32>
      %495 = arith.addf %489, %494 : vector<16x16xf32>
      %c30 = arith.constant 30 : index
      %496 = memref.load %arg2[%c30] : memref<98xf32, #tpu.memory_space<smem>>
      %c0_290 = arith.constant 0 : index
      %c4_291 = arith.constant 4 : index
      %c2_292 = arith.constant 2 : index
      %497 = vector.load %arg8[%c0_290, %c4_291, %c2_292] : memref<2x22x22xf32, #tpu.memory_space<vmem>>, vector<1x16x16xf32>
      %498 = vector.shape_cast %497 : vector<1x16x16xf32> to vector<16x16xf32>
      %499 = vector.broadcast %496 : f32 to vector<16x16xf32>
      %500 = arith.mulf %499, %498 : vector<16x16xf32>
      %501 = arith.addf %495, %500 : vector<16x16xf32>
      %c31 = arith.constant 31 : index
      %502 = memref.load %arg2[%c31] : memref<98xf32, #tpu.memory_space<smem>>
      %c0_293 = arith.constant 0 : index
      %c4_294 = arith.constant 4 : index
      %c3_295 = arith.constant 3 : index
      %503 = vector.load %arg8[%c0_293, %c4_294, %c3_295] : memref<2x22x22xf32, #tpu.memory_space<vmem>>, vector<1x16x16xf32>
      %504 = vector.shape_cast %503 : vector<1x16x16xf32> to vector<16x16xf32>
      %505 = vector.broadcast %502 : f32 to vector<16x16xf32>
      %506 = arith.mulf %505, %504 : vector<16x16xf32>
      %507 = arith.addf %501, %506 : vector<16x16xf32>
      %c32 = arith.constant 32 : index
      %508 = memref.load %arg2[%c32] : memref<98xf32, #tpu.memory_space<smem>>
      %c0_296 = arith.constant 0 : index
      %c4_297 = arith.constant 4 : index
      %c4_298 = arith.constant 4 : index
      %509 = vector.load %arg8[%c0_296, %c4_297, %c4_298] : memref<2x22x22xf32, #tpu.memory_space<vmem>>, vector<1x16x16xf32>
      %510 = vector.shape_cast %509 : vector<1x16x16xf32> to vector<16x16xf32>
      %511 = vector.broadcast %508 : f32 to vector<16x16xf32>
      %512 = arith.mulf %511, %510 : vector<16x16xf32>
      %513 = arith.addf %507, %512 : vector<16x16xf32>
      %c33 = arith.constant 33 : index
      %514 = memref.load %arg2[%c33] : memref<98xf32, #tpu.memory_space<smem>>
      %c0_299 = arith.constant 0 : index
      %c4_300 = arith.constant 4 : index
      %c5_301 = arith.constant 5 : index
      %515 = vector.load %arg8[%c0_299, %c4_300, %c5_301] : memref<2x22x22xf32, #tpu.memory_space<vmem>>, vector<1x16x16xf32>
      %516 = vector.shape_cast %515 : vector<1x16x16xf32> to vector<16x16xf32>
      %517 = vector.broadcast %514 : f32 to vector<16x16xf32>
      %518 = arith.mulf %517, %516 : vector<16x16xf32>
      %519 = arith.addf %513, %518 : vector<16x16xf32>
      %c34 = arith.constant 34 : index
      %520 = memref.load %arg2[%c34] : memref<98xf32, #tpu.memory_space<smem>>
      %c0_302 = arith.constant 0 : index
      %c4_303 = arith.constant 4 : index
      %c6_304 = arith.constant 6 : index
      %521 = vector.load %arg8[%c0_302, %c4_303, %c6_304] : memref<2x22x22xf32, #tpu.memory_space<vmem>>, vector<1x16x16xf32>
      %522 = vector.shape_cast %521 : vector<1x16x16xf32> to vector<16x16xf32>
      %523 = vector.broadcast %520 : f32 to vector<16x16xf32>
      %524 = arith.mulf %523, %522 : vector<16x16xf32>
      %525 = arith.addf %519, %524 : vector<16x16xf32>
      %c77 = arith.constant 77 : index
      %526 = memref.load %arg2[%c77] : memref<98xf32, #tpu.memory_space<smem>>
      %c1_305 = arith.constant 1 : index
      %c4_306 = arith.constant 4 : index
      %c0_307 = arith.constant 0 : index
      %527 = vector.load %arg8[%c1_305, %c4_306, %c0_307] : memref<2x22x22xf32, #tpu.memory_space<vmem>>, vector<1x16x16xf32>
      %528 = vector.shape_cast %527 : vector<1x16x16xf32> to vector<16x16xf32>
      %529 = vector.broadcast %526 : f32 to vector<16x16xf32>
      %530 = arith.mulf %529, %528 : vector<16x16xf32>
      %531 = arith.addf %525, %530 : vector<16x16xf32>
      %c78 = arith.constant 78 : index
      %532 = memref.load %arg2[%c78] : memref<98xf32, #tpu.memory_space<smem>>
      %c1_308 = arith.constant 1 : index
      %c4_309 = arith.constant 4 : index
      %c1_310 = arith.constant 1 : index
      %533 = vector.load %arg8[%c1_308, %c4_309, %c1_310] : memref<2x22x22xf32, #tpu.memory_space<vmem>>, vector<1x16x16xf32>
      %534 = vector.shape_cast %533 : vector<1x16x16xf32> to vector<16x16xf32>
      %535 = vector.broadcast %532 : f32 to vector<16x16xf32>
      %536 = arith.mulf %535, %534 : vector<16x16xf32>
      %537 = arith.addf %531, %536 : vector<16x16xf32>
      %c79 = arith.constant 79 : index
      %538 = memref.load %arg2[%c79] : memref<98xf32, #tpu.memory_space<smem>>
      %c1_311 = arith.constant 1 : index
      %c4_312 = arith.constant 4 : index
      %c2_313 = arith.constant 2 : index
      %539 = vector.load %arg8[%c1_311, %c4_312, %c2_313] : memref<2x22x22xf32, #tpu.memory_space<vmem>>, vector<1x16x16xf32>
      %540 = vector.shape_cast %539 : vector<1x16x16xf32> to vector<16x16xf32>
      %541 = vector.broadcast %538 : f32 to vector<16x16xf32>
      %542 = arith.mulf %541, %540 : vector<16x16xf32>
      %543 = arith.addf %537, %542 : vector<16x16xf32>
      %c80 = arith.constant 80 : index
      %544 = memref.load %arg2[%c80] : memref<98xf32, #tpu.memory_space<smem>>
      %c1_314 = arith.constant 1 : index
      %c4_315 = arith.constant 4 : index
      %c3_316 = arith.constant 3 : index
      %545 = vector.load %arg8[%c1_314, %c4_315, %c3_316] : memref<2x22x22xf32, #tpu.memory_space<vmem>>, vector<1x16x16xf32>
      %546 = vector.shape_cast %545 : vector<1x16x16xf32> to vector<16x16xf32>
      %547 = vector.broadcast %544 : f32 to vector<16x16xf32>
      %548 = arith.mulf %547, %546 : vector<16x16xf32>
      %549 = arith.addf %543, %548 : vector<16x16xf32>
      %c81 = arith.constant 81 : index
      %550 = memref.load %arg2[%c81] : memref<98xf32, #tpu.memory_space<smem>>
      %c1_317 = arith.constant 1 : index
      %c4_318 = arith.constant 4 : index
      %c4_319 = arith.constant 4 : index
      %551 = vector.load %arg8[%c1_317, %c4_318, %c4_319] : memref<2x22x22xf32, #tpu.memory_space<vmem>>, vector<1x16x16xf32>
      %552 = vector.shape_cast %551 : vector<1x16x16xf32> to vector<16x16xf32>
      %553 = vector.broadcast %550 : f32 to vector<16x16xf32>
      %554 = arith.mulf %553, %552 : vector<16x16xf32>
      %555 = arith.addf %549, %554 : vector<16x16xf32>
      %c82 = arith.constant 82 : index
      %556 = memref.load %arg2[%c82] : memref<98xf32, #tpu.memory_space<smem>>
      %c1_320 = arith.constant 1 : index
      %c4_321 = arith.constant 4 : index
      %c5_322 = arith.constant 5 : index
      %557 = vector.load %arg8[%c1_320, %c4_321, %c5_322] : memref<2x22x22xf32, #tpu.memory_space<vmem>>, vector<1x16x16xf32>
      %558 = vector.shape_cast %557 : vector<1x16x16xf32> to vector<16x16xf32>
      %559 = vector.broadcast %556 : f32 to vector<16x16xf32>
      %560 = arith.mulf %559, %558 : vector<16x16xf32>
      %561 = arith.addf %555, %560 : vector<16x16xf32>
      %c83 = arith.constant 83 : index
      %562 = memref.load %arg2[%c83] : memref<98xf32, #tpu.memory_space<smem>>
      %c1_323 = arith.constant 1 : index
      %c4_324 = arith.constant 4 : index
      %c6_325 = arith.constant 6 : index
      %563 = vector.load %arg8[%c1_323, %c4_324, %c6_325] : memref<2x22x22xf32, #tpu.memory_space<vmem>>, vector<1x16x16xf32>
      %564 = vector.shape_cast %563 : vector<1x16x16xf32> to vector<16x16xf32>
      %565 = vector.broadcast %562 : f32 to vector<16x16xf32>
      %566 = arith.mulf %565, %564 : vector<16x16xf32>
      %567 = arith.addf %561, %566 : vector<16x16xf32>
      %c35 = arith.constant 35 : index
      %568 = memref.load %arg2[%c35] : memref<98xf32, #tpu.memory_space<smem>>
      %c0_326 = arith.constant 0 : index
      %c5_327 = arith.constant 5 : index
      %c0_328 = arith.constant 0 : index
      %569 = vector.load %arg8[%c0_326, %c5_327, %c0_328] : memref<2x22x22xf32, #tpu.memory_space<vmem>>, vector<1x16x16xf32>
      %570 = vector.shape_cast %569 : vector<1x16x16xf32> to vector<16x16xf32>
      %571 = vector.broadcast %568 : f32 to vector<16x16xf32>
      %572 = arith.mulf %571, %570 : vector<16x16xf32>
      %c36 = arith.constant 36 : index
      %573 = memref.load %arg2[%c36] : memref<98xf32, #tpu.memory_space<smem>>
      %c0_329 = arith.constant 0 : index
      %c5_330 = arith.constant 5 : index
      %c1_331 = arith.constant 1 : index
      %574 = vector.load %arg8[%c0_329, %c5_330, %c1_331] : memref<2x22x22xf32, #tpu.memory_space<vmem>>, vector<1x16x16xf32>
      %575 = vector.shape_cast %574 : vector<1x16x16xf32> to vector<16x16xf32>
      %576 = vector.broadcast %573 : f32 to vector<16x16xf32>
      %577 = arith.mulf %576, %575 : vector<16x16xf32>
      %578 = arith.addf %572, %577 : vector<16x16xf32>
      %c37 = arith.constant 37 : index
      %579 = memref.load %arg2[%c37] : memref<98xf32, #tpu.memory_space<smem>>
      %c0_332 = arith.constant 0 : index
      %c5_333 = arith.constant 5 : index
      %c2_334 = arith.constant 2 : index
      %580 = vector.load %arg8[%c0_332, %c5_333, %c2_334] : memref<2x22x22xf32, #tpu.memory_space<vmem>>, vector<1x16x16xf32>
      %581 = vector.shape_cast %580 : vector<1x16x16xf32> to vector<16x16xf32>
      %582 = vector.broadcast %579 : f32 to vector<16x16xf32>
      %583 = arith.mulf %582, %581 : vector<16x16xf32>
      %584 = arith.addf %578, %583 : vector<16x16xf32>
      %c38 = arith.constant 38 : index
      %585 = memref.load %arg2[%c38] : memref<98xf32, #tpu.memory_space<smem>>
      %c0_335 = arith.constant 0 : index
      %c5_336 = arith.constant 5 : index
      %c3_337 = arith.constant 3 : index
      %586 = vector.load %arg8[%c0_335, %c5_336, %c3_337] : memref<2x22x22xf32, #tpu.memory_space<vmem>>, vector<1x16x16xf32>
      %587 = vector.shape_cast %586 : vector<1x16x16xf32> to vector<16x16xf32>
      %588 = vector.broadcast %585 : f32 to vector<16x16xf32>
      %589 = arith.mulf %588, %587 : vector<16x16xf32>
      %590 = arith.addf %584, %589 : vector<16x16xf32>
      %c39 = arith.constant 39 : index
      %591 = memref.load %arg2[%c39] : memref<98xf32, #tpu.memory_space<smem>>
      %c0_338 = arith.constant 0 : index
      %c5_339 = arith.constant 5 : index
      %c4_340 = arith.constant 4 : index
      %592 = vector.load %arg8[%c0_338, %c5_339, %c4_340] : memref<2x22x22xf32, #tpu.memory_space<vmem>>, vector<1x16x16xf32>
      %593 = vector.shape_cast %592 : vector<1x16x16xf32> to vector<16x16xf32>
      %594 = vector.broadcast %591 : f32 to vector<16x16xf32>
      %595 = arith.mulf %594, %593 : vector<16x16xf32>
      %596 = arith.addf %590, %595 : vector<16x16xf32>
      %c40 = arith.constant 40 : index
      %597 = memref.load %arg2[%c40] : memref<98xf32, #tpu.memory_space<smem>>
      %c0_341 = arith.constant 0 : index
      %c5_342 = arith.constant 5 : index
      %c5_343 = arith.constant 5 : index
      %598 = vector.load %arg8[%c0_341, %c5_342, %c5_343] : memref<2x22x22xf32, #tpu.memory_space<vmem>>, vector<1x16x16xf32>
      %599 = vector.shape_cast %598 : vector<1x16x16xf32> to vector<16x16xf32>
      %600 = vector.broadcast %597 : f32 to vector<16x16xf32>
      %601 = arith.mulf %600, %599 : vector<16x16xf32>
      %602 = arith.addf %596, %601 : vector<16x16xf32>
      %c41 = arith.constant 41 : index
      %603 = memref.load %arg2[%c41] : memref<98xf32, #tpu.memory_space<smem>>
      %c0_344 = arith.constant 0 : index
      %c5_345 = arith.constant 5 : index
      %c6_346 = arith.constant 6 : index
      %604 = vector.load %arg8[%c0_344, %c5_345, %c6_346] : memref<2x22x22xf32, #tpu.memory_space<vmem>>, vector<1x16x16xf32>
      %605 = vector.shape_cast %604 : vector<1x16x16xf32> to vector<16x16xf32>
      %606 = vector.broadcast %603 : f32 to vector<16x16xf32>
      %607 = arith.mulf %606, %605 : vector<16x16xf32>
      %608 = arith.addf %602, %607 : vector<16x16xf32>
      %c84 = arith.constant 84 : index
      %609 = memref.load %arg2[%c84] : memref<98xf32, #tpu.memory_space<smem>>
      %c1_347 = arith.constant 1 : index
      %c5_348 = arith.constant 5 : index
      %c0_349 = arith.constant 0 : index
      %610 = vector.load %arg8[%c1_347, %c5_348, %c0_349] : memref<2x22x22xf32, #tpu.memory_space<vmem>>, vector<1x16x16xf32>
      %611 = vector.shape_cast %610 : vector<1x16x16xf32> to vector<16x16xf32>
      %612 = vector.broadcast %609 : f32 to vector<16x16xf32>
      %613 = arith.mulf %612, %611 : vector<16x16xf32>
      %614 = arith.addf %608, %613 : vector<16x16xf32>
      %c85 = arith.constant 85 : index
      %615 = memref.load %arg2[%c85] : memref<98xf32, #tpu.memory_space<smem>>
      %c1_350 = arith.constant 1 : index
      %c5_351 = arith.constant 5 : index
      %c1_352 = arith.constant 1 : index
      %616 = vector.load %arg8[%c1_350, %c5_351, %c1_352] : memref<2x22x22xf32, #tpu.memory_space<vmem>>, vector<1x16x16xf32>
      %617 = vector.shape_cast %616 : vector<1x16x16xf32> to vector<16x16xf32>
      %618 = vector.broadcast %615 : f32 to vector<16x16xf32>
      %619 = arith.mulf %618, %617 : vector<16x16xf32>
      %620 = arith.addf %614, %619 : vector<16x16xf32>
      %c86 = arith.constant 86 : index
      %621 = memref.load %arg2[%c86] : memref<98xf32, #tpu.memory_space<smem>>
      %c1_353 = arith.constant 1 : index
      %c5_354 = arith.constant 5 : index
      %c2_355 = arith.constant 2 : index
      %622 = vector.load %arg8[%c1_353, %c5_354, %c2_355] : memref<2x22x22xf32, #tpu.memory_space<vmem>>, vector<1x16x16xf32>
      %623 = vector.shape_cast %622 : vector<1x16x16xf32> to vector<16x16xf32>
      %624 = vector.broadcast %621 : f32 to vector<16x16xf32>
      %625 = arith.mulf %624, %623 : vector<16x16xf32>
      %626 = arith.addf %620, %625 : vector<16x16xf32>
      %c87 = arith.constant 87 : index
      %627 = memref.load %arg2[%c87] : memref<98xf32, #tpu.memory_space<smem>>
      %c1_356 = arith.constant 1 : index
      %c5_357 = arith.constant 5 : index
      %c3_358 = arith.constant 3 : index
      %628 = vector.load %arg8[%c1_356, %c5_357, %c3_358] : memref<2x22x22xf32, #tpu.memory_space<vmem>>, vector<1x16x16xf32>
      %629 = vector.shape_cast %628 : vector<1x16x16xf32> to vector<16x16xf32>
      %630 = vector.broadcast %627 : f32 to vector<16x16xf32>
      %631 = arith.mulf %630, %629 : vector<16x16xf32>
      %632 = arith.addf %626, %631 : vector<16x16xf32>
      %c88 = arith.constant 88 : index
      %633 = memref.load %arg2[%c88] : memref<98xf32, #tpu.memory_space<smem>>
      %c1_359 = arith.constant 1 : index
      %c5_360 = arith.constant 5 : index
      %c4_361 = arith.constant 4 : index
      %634 = vector.load %arg8[%c1_359, %c5_360, %c4_361] : memref<2x22x22xf32, #tpu.memory_space<vmem>>, vector<1x16x16xf32>
      %635 = vector.shape_cast %634 : vector<1x16x16xf32> to vector<16x16xf32>
      %636 = vector.broadcast %633 : f32 to vector<16x16xf32>
      %637 = arith.mulf %636, %635 : vector<16x16xf32>
      %638 = arith.addf %632, %637 : vector<16x16xf32>
      %c89 = arith.constant 89 : index
      %639 = memref.load %arg2[%c89] : memref<98xf32, #tpu.memory_space<smem>>
      %c1_362 = arith.constant 1 : index
      %c5_363 = arith.constant 5 : index
      %c5_364 = arith.constant 5 : index
      %640 = vector.load %arg8[%c1_362, %c5_363, %c5_364] : memref<2x22x22xf32, #tpu.memory_space<vmem>>, vector<1x16x16xf32>
      %641 = vector.shape_cast %640 : vector<1x16x16xf32> to vector<16x16xf32>
      %642 = vector.broadcast %639 : f32 to vector<16x16xf32>
      %643 = arith.mulf %642, %641 : vector<16x16xf32>
      %644 = arith.addf %638, %643 : vector<16x16xf32>
      %c90 = arith.constant 90 : index
      %645 = memref.load %arg2[%c90] : memref<98xf32, #tpu.memory_space<smem>>
      %c1_365 = arith.constant 1 : index
      %c5_366 = arith.constant 5 : index
      %c6_367 = arith.constant 6 : index
      %646 = vector.load %arg8[%c1_365, %c5_366, %c6_367] : memref<2x22x22xf32, #tpu.memory_space<vmem>>, vector<1x16x16xf32>
      %647 = vector.shape_cast %646 : vector<1x16x16xf32> to vector<16x16xf32>
      %648 = vector.broadcast %645 : f32 to vector<16x16xf32>
      %649 = arith.mulf %648, %647 : vector<16x16xf32>
      %650 = arith.addf %644, %649 : vector<16x16xf32>
      %c42 = arith.constant 42 : index
      %651 = memref.load %arg2[%c42] : memref<98xf32, #tpu.memory_space<smem>>
      %c0_368 = arith.constant 0 : index
      %c6_369 = arith.constant 6 : index
      %c0_370 = arith.constant 0 : index
      %652 = vector.load %arg8[%c0_368, %c6_369, %c0_370] : memref<2x22x22xf32, #tpu.memory_space<vmem>>, vector<1x16x16xf32>
      %653 = vector.shape_cast %652 : vector<1x16x16xf32> to vector<16x16xf32>
      %654 = vector.broadcast %651 : f32 to vector<16x16xf32>
      %655 = arith.mulf %654, %653 : vector<16x16xf32>
      %c43 = arith.constant 43 : index
      %656 = memref.load %arg2[%c43] : memref<98xf32, #tpu.memory_space<smem>>
      %c0_371 = arith.constant 0 : index
      %c6_372 = arith.constant 6 : index
      %c1_373 = arith.constant 1 : index
      %657 = vector.load %arg8[%c0_371, %c6_372, %c1_373] : memref<2x22x22xf32, #tpu.memory_space<vmem>>, vector<1x16x16xf32>
      %658 = vector.shape_cast %657 : vector<1x16x16xf32> to vector<16x16xf32>
      %659 = vector.broadcast %656 : f32 to vector<16x16xf32>
      %660 = arith.mulf %659, %658 : vector<16x16xf32>
      %661 = arith.addf %655, %660 : vector<16x16xf32>
      %c44 = arith.constant 44 : index
      %662 = memref.load %arg2[%c44] : memref<98xf32, #tpu.memory_space<smem>>
      %c0_374 = arith.constant 0 : index
      %c6_375 = arith.constant 6 : index
      %c2_376 = arith.constant 2 : index
      %663 = vector.load %arg8[%c0_374, %c6_375, %c2_376] : memref<2x22x22xf32, #tpu.memory_space<vmem>>, vector<1x16x16xf32>
      %664 = vector.shape_cast %663 : vector<1x16x16xf32> to vector<16x16xf32>
      %665 = vector.broadcast %662 : f32 to vector<16x16xf32>
      %666 = arith.mulf %665, %664 : vector<16x16xf32>
      %667 = arith.addf %661, %666 : vector<16x16xf32>
      %c45 = arith.constant 45 : index
      %668 = memref.load %arg2[%c45] : memref<98xf32, #tpu.memory_space<smem>>
      %c0_377 = arith.constant 0 : index
      %c6_378 = arith.constant 6 : index
      %c3_379 = arith.constant 3 : index
      %669 = vector.load %arg8[%c0_377, %c6_378, %c3_379] : memref<2x22x22xf32, #tpu.memory_space<vmem>>, vector<1x16x16xf32>
      %670 = vector.shape_cast %669 : vector<1x16x16xf32> to vector<16x16xf32>
      %671 = vector.broadcast %668 : f32 to vector<16x16xf32>
      %672 = arith.mulf %671, %670 : vector<16x16xf32>
      %673 = arith.addf %667, %672 : vector<16x16xf32>
      %c46 = arith.constant 46 : index
      %674 = memref.load %arg2[%c46] : memref<98xf32, #tpu.memory_space<smem>>
      %c0_380 = arith.constant 0 : index
      %c6_381 = arith.constant 6 : index
      %c4_382 = arith.constant 4 : index
      %675 = vector.load %arg8[%c0_380, %c6_381, %c4_382] : memref<2x22x22xf32, #tpu.memory_space<vmem>>, vector<1x16x16xf32>
      %676 = vector.shape_cast %675 : vector<1x16x16xf32> to vector<16x16xf32>
      %677 = vector.broadcast %674 : f32 to vector<16x16xf32>
      %678 = arith.mulf %677, %676 : vector<16x16xf32>
      %679 = arith.addf %673, %678 : vector<16x16xf32>
      %c47 = arith.constant 47 : index
      %680 = memref.load %arg2[%c47] : memref<98xf32, #tpu.memory_space<smem>>
      %c0_383 = arith.constant 0 : index
      %c6_384 = arith.constant 6 : index
      %c5_385 = arith.constant 5 : index
      %681 = vector.load %arg8[%c0_383, %c6_384, %c5_385] : memref<2x22x22xf32, #tpu.memory_space<vmem>>, vector<1x16x16xf32>
      %682 = vector.shape_cast %681 : vector<1x16x16xf32> to vector<16x16xf32>
      %683 = vector.broadcast %680 : f32 to vector<16x16xf32>
      %684 = arith.mulf %683, %682 : vector<16x16xf32>
      %685 = arith.addf %679, %684 : vector<16x16xf32>
      %c48 = arith.constant 48 : index
      %686 = memref.load %arg2[%c48] : memref<98xf32, #tpu.memory_space<smem>>
      %c0_386 = arith.constant 0 : index
      %c6_387 = arith.constant 6 : index
      %c6_388 = arith.constant 6 : index
      %687 = vector.load %arg8[%c0_386, %c6_387, %c6_388] : memref<2x22x22xf32, #tpu.memory_space<vmem>>, vector<1x16x16xf32>
      %688 = vector.shape_cast %687 : vector<1x16x16xf32> to vector<16x16xf32>
      %689 = vector.broadcast %686 : f32 to vector<16x16xf32>
      %690 = arith.mulf %689, %688 : vector<16x16xf32>
      %691 = arith.addf %685, %690 : vector<16x16xf32>
      %c91 = arith.constant 91 : index
      %692 = memref.load %arg2[%c91] : memref<98xf32, #tpu.memory_space<smem>>
      %c1_389 = arith.constant 1 : index
      %c6_390 = arith.constant 6 : index
      %c0_391 = arith.constant 0 : index
      %693 = vector.load %arg8[%c1_389, %c6_390, %c0_391] : memref<2x22x22xf32, #tpu.memory_space<vmem>>, vector<1x16x16xf32>
      %694 = vector.shape_cast %693 : vector<1x16x16xf32> to vector<16x16xf32>
      %695 = vector.broadcast %692 : f32 to vector<16x16xf32>
      %696 = arith.mulf %695, %694 : vector<16x16xf32>
      %697 = arith.addf %691, %696 : vector<16x16xf32>
      %c92 = arith.constant 92 : index
      %698 = memref.load %arg2[%c92] : memref<98xf32, #tpu.memory_space<smem>>
      %c1_392 = arith.constant 1 : index
      %c6_393 = arith.constant 6 : index
      %c1_394 = arith.constant 1 : index
      %699 = vector.load %arg8[%c1_392, %c6_393, %c1_394] : memref<2x22x22xf32, #tpu.memory_space<vmem>>, vector<1x16x16xf32>
      %700 = vector.shape_cast %699 : vector<1x16x16xf32> to vector<16x16xf32>
      %701 = vector.broadcast %698 : f32 to vector<16x16xf32>
      %702 = arith.mulf %701, %700 : vector<16x16xf32>
      %703 = arith.addf %697, %702 : vector<16x16xf32>
      %c93 = arith.constant 93 : index
      %704 = memref.load %arg2[%c93] : memref<98xf32, #tpu.memory_space<smem>>
      %c1_395 = arith.constant 1 : index
      %c6_396 = arith.constant 6 : index
      %c2_397 = arith.constant 2 : index
      %705 = vector.load %arg8[%c1_395, %c6_396, %c2_397] : memref<2x22x22xf32, #tpu.memory_space<vmem>>, vector<1x16x16xf32>
      %706 = vector.shape_cast %705 : vector<1x16x16xf32> to vector<16x16xf32>
      %707 = vector.broadcast %704 : f32 to vector<16x16xf32>
      %708 = arith.mulf %707, %706 : vector<16x16xf32>
      %709 = arith.addf %703, %708 : vector<16x16xf32>
      %c94 = arith.constant 94 : index
      %710 = memref.load %arg2[%c94] : memref<98xf32, #tpu.memory_space<smem>>
      %c1_398 = arith.constant 1 : index
      %c6_399 = arith.constant 6 : index
      %c3_400 = arith.constant 3 : index
      %711 = vector.load %arg8[%c1_398, %c6_399, %c3_400] : memref<2x22x22xf32, #tpu.memory_space<vmem>>, vector<1x16x16xf32>
      %712 = vector.shape_cast %711 : vector<1x16x16xf32> to vector<16x16xf32>
      %713 = vector.broadcast %710 : f32 to vector<16x16xf32>
      %714 = arith.mulf %713, %712 : vector<16x16xf32>
      %715 = arith.addf %709, %714 : vector<16x16xf32>
      %c95 = arith.constant 95 : index
      %716 = memref.load %arg2[%c95] : memref<98xf32, #tpu.memory_space<smem>>
      %c1_401 = arith.constant 1 : index
      %c6_402 = arith.constant 6 : index
      %c4_403 = arith.constant 4 : index
      %717 = vector.load %arg8[%c1_401, %c6_402, %c4_403] : memref<2x22x22xf32, #tpu.memory_space<vmem>>, vector<1x16x16xf32>
      %718 = vector.shape_cast %717 : vector<1x16x16xf32> to vector<16x16xf32>
      %719 = vector.broadcast %716 : f32 to vector<16x16xf32>
      %720 = arith.mulf %719, %718 : vector<16x16xf32>
      %721 = arith.addf %715, %720 : vector<16x16xf32>
      %c96 = arith.constant 96 : index
      %722 = memref.load %arg2[%c96] : memref<98xf32, #tpu.memory_space<smem>>
      %c1_404 = arith.constant 1 : index
      %c6_405 = arith.constant 6 : index
      %c5_406 = arith.constant 5 : index
      %723 = vector.load %arg8[%c1_404, %c6_405, %c5_406] : memref<2x22x22xf32, #tpu.memory_space<vmem>>, vector<1x16x16xf32>
      %724 = vector.shape_cast %723 : vector<1x16x16xf32> to vector<16x16xf32>
      %725 = vector.broadcast %722 : f32 to vector<16x16xf32>
      %726 = arith.mulf %725, %724 : vector<16x16xf32>
      %727 = arith.addf %721, %726 : vector<16x16xf32>
      %c97 = arith.constant 97 : index
      %728 = memref.load %arg2[%c97] : memref<98xf32, #tpu.memory_space<smem>>
      %c1_407 = arith.constant 1 : index
      %c6_408 = arith.constant 6 : index
      %c6_409 = arith.constant 6 : index
      %729 = vector.load %arg8[%c1_407, %c6_408, %c6_409] : memref<2x22x22xf32, #tpu.memory_space<vmem>>, vector<1x16x16xf32>
      %730 = vector.shape_cast %729 : vector<1x16x16xf32> to vector<16x16xf32>
      %731 = vector.broadcast %728 : f32 to vector<16x16xf32>
      %732 = arith.mulf %731, %730 : vector<16x16xf32>
      %733 = arith.addf %727, %732 : vector<16x16xf32>
      %734 = arith.addf %235, %318 : vector<16x16xf32>
      %735 = arith.addf %401, %484 : vector<16x16xf32>
      %736 = arith.addf %567, %650 : vector<16x16xf32>
      %737 = arith.addf %734, %735 : vector<16x16xf32>
      %738 = arith.addf %736, %733 : vector<16x16xf32>
      %739 = arith.addf %737, %738 : vector<16x16xf32>
      %c0_410 = arith.constant 0 : index
      %740 = memref.load %arg3[%c0_410] : memref<1xf32, #tpu.memory_space<smem>>
      %741 = vector.broadcast %740 : f32 to vector<16x16xf32>
      %742 = arith.addf %739, %741 : vector<16x16xf32>
      %743 = arith.negf %742 : vector<16x16xf32>
      %744 = math.exp %743 : vector<16x16xf32>
      %cst_411 = arith.constant 1.000000e+00 : f32
      %745 = vector.broadcast %cst_411 : f32 to vector<16x16xf32>
      %746 = arith.addf %745, %744 : vector<16x16xf32>
      %747 = arith.divf %745, %746 : vector<16x16xf32>
      %c0_412 = arith.constant 0 : index
      %c0_413 = arith.constant 0 : index
      %c0_414 = arith.constant 0 : index
      %c0_415 = arith.constant 0 : index
      %748 = vector.load %arg5[%c0_412, %c0_413, %c0_414, %c0_415] : memref<1x1x16x16xf32, #tpu.memory_space<vmem>>, vector<1x1x16x16xf32>
      %749 = vector.shape_cast %748 : vector<1x1x16x16xf32> to vector<16x16xf32>
      %750 = vector.shape_cast %747 : vector<16x16xf32> to vector<1x1x16x16xf32>
      tpu.vector_store %arg5[%c0_412, %c0_413, %c0_414, %c0_415], %750 {strides = array<i32>} : memref<1x1x16x16xf32, #tpu.memory_space<vmem>>, vector<1x1x16x16xf32>,
    } else {
    }
    return
  }
  func.func @transform_0(%arg0: i32, %arg1: i32) -> i32 {
    %c0_i32 = arith.constant 0 : i32
    %c0_i32_0 = arith.constant 0 : i32
    return %c0_i32 : i32
  }
  func.func @transform_1(%arg0: i32, %arg1: i32) -> i32 {
    %c0_i32 = arith.constant 0 : i32
    %c0_i32_0 = arith.constant 0 : i32
    return %c0_i32 : i32
  }
  func.func @transform_2(%arg0: i32, %arg1: i32) -> (i32, i32, i32) {
    %c0_i32 = arith.constant 0 : i32
    %c0_i32_0 = arith.constant 0 : i32
    return %arg0, %arg1, %c0_i32 : i32, i32, i32
  }
  func.func @transform_3(%arg0: i32, %arg1: i32) -> (i32, i32, i32, i32) {
    %c0_i32 = arith.constant 0 : i32
    %c0_i32_0 = arith.constant 0 : i32
    %c0_i32_1 = arith.constant 0 : i32
    %c0_i32_2 = arith.constant 0 : i32
    return %arg0, %c0_i32, %c0_i32_0, %c0_i32_1 : i32, i32, i32, i32
  }
}

</mosaic_0001>

<bundles_post_ra>
// kernel: tpu_custom_call.1
= control target key start
LH: loop header
LB: loop body
LE: loop exit
PB: predicated region body
PF: predicated region fallthrough
CT: control target
= control target key end

     0   :  { %s3629_s0 = inlined_call_operand.vmem [shape: f32[98], index: 0, kind: input, shape index: {}]   ;;  %s3630_s1 = inlined_call_operand.<no memory space> [shape: f32[1], index: 1, kind: input, shape index: {}]   ;;  %s3631_s2 = inlined_call_operand.hbm [shape: f32[2,4,256], index: 2, kind: input, shape index: {}]   ;;  %s3632_s3 = inlined_call_operand.hbm [shape: f32[2,1,16,16], index: 3, kind: output, shape index: {}]  }
   0x1   :  { %3652 = sst [smem:[#allocation19_spill]] %s3629_s0 }
   0x2   :  { %3653 = sst [smem:[#allocation20_spill]] %s3631_s2 }
   0x3   :  { %8 = sst [smem:[#allocation5]] %s3630_s1 }
   0x4   :  { %9 = vsyncpa [#allocation9], 0 }
   0x5   :  { %10 = vsyncpa [#allocation7], 0 }
   0x6   :  { %12 = vsyncpa [#allocation7 + $0x1], 0 }
   0x7   :  { %13 = vsyncpa [#allocation8], 0 }
   0x8   :  { %15 = vsyncpa [#allocation8 + $0x1], 0  ;;  %s2226_s14 = smov 0   ;;  %s2228_s15 = smov 0  }
   0x9   :  { %s2230_s16 = smov 0   ;;  %s2232_s17 = smov 0  }
   0xa   :  { %s2234_s18 = smov 0   ;;  %s2236_s19 = smov 0  }
   0xb LB: > { %3654 = sst [smem:[#allocation15_spill]] %s2169_s16  ;;  %s1833_s1 = sadd.s32 4294967295, %s2181_s19   ;;  %s2181_s19 = sphi %s2236_s19, %s21_s19   ;;  %s2177_s18 = sphi %s2234_s18, %s3682_s18   ;;  %s2173_s17 = sphi %s2232_s17, %s3681_s17   ;;  %s2169_s16 = sphi %s2230_s16, %s3680_s16   ;;  %s2165_s15 = sphi %s2228_s15, %s3684_s15   ;;  %s2161_s14 = sphi %s2226_s14, %s3683_s14  }
   0xc   : > { %3655 = sst [smem:[#allocation16_spill]] %s2177_s18  ;;  %s1834_s20 = sadd.s32 4294967294, %s2181_s19  }
   0xd   : > { %p97_p0 = scmp.ne.s32.totalorder %s2165_s15, %s2161_s14  ;;  %p2260_p1 = scmp.eq.s32.totalorder %s1833_s1, 0 }
   0xe   : > { %p2264_p2 = scmp.eq.s32.totalorder %s1833_s1, 1  ;;  %p127_p3 = scmp.eq.s32.totalorder %s1834_s20, 1 }
   0xf   : > { %s3656_s21 = scalar_select %p2260_p1, 1, 0 }
  0x10   : > { %p2270_p4 = por %p2260_p1, %p97_p0  ;;  %p1835_p5 = scmp.ge.s32.totalorder %s2181_s19, 1 }
  0x11   : > { %p2275_p6 = por %p127_p3, %p97_p0  ;;  %p134_p7 = scmp.lt.s32.totalorder %s2181_s19, 3 }
  0x12   : > { %s3658_s23 = scalar_select %p2270_p4, 1, 0 }
  0x13   : > { %s3659_s24 = scalar_select %p2275_p6, 1, 0 }
  0x14   : > { %s3660_s0 = sld [smem:[#allocation19_spill]]  ;;  %p2283_p8 = pnand %p1835_p5, %p134_p7 }
  0x15   : > { %s33_s30 = sadd.s32 1, %s2177_s18  ;;  %s84_s4 = sadd.s32 1, %s2169_s16 }
  0x16   : > { %p1959_p10 = pneg %p2283_p8  ;;  %p35_p12 = scmp.ge.s32.totalorder %s33_s30, 2 }
  0x18   : > { %p2292_p11 = pnand %p1959_p10, %p2260_p1 }
  0x1a   : > { %s147_s27 = sshll.u32 %s3660_s0, 4  ;;  %p2052_p0 = pneg %p2292_p11  ;;  %s148_s27 = int_to_ptr.vmem [resolvable:$true] %s147_s27 }
  0x1b   : > { %s2050_s5 = scalar_lea.vmem %s148_s27, 16  ;;  %p2058_p7 = scmp.lt.s32.totalorder %s148_s27, %s148_s27 }
  0x1c   : > { %p2051_p13 = scmp.ne.s32.totalorder %s148_s27, %s2050_s5  ;;  %p2059_p6 = scmp.lt.s32.totalorder %s2050_s5, %s2050_s5 }
  0x1e   : > { %p2053_p3 = pnand %p2052_p0, %p2051_p13  ;;  %p2060_p9 = por %p2059_p6, %p2058_p7 }
  0x20   : > { %p2054_p5 = pneg %p2053_p3 }
  0x22   : > { %p2061_p4 = pnand %p2060_p9, %p2054_p5 }
  0x24   : > { %2064 = shalt.err (!%p2061_p4)
}
  0x25   : > { %s2183_s6 = smov [#allocation6]   ;;  %s3686_s30 = smov (%p35_p12, %s33_s30), 0 }
  0x26   : > { %1962 = dma.vmem_to_smem (!%p2292_p11), %s148_s27, 16, %s2183_s6, [#allocation9]  }
  0x27   : > { %3663 = sst [smem:[#allocation17_spill]] %s3686_s30  ;;  %p91_p10 = scmp.ne.s32.totalorder %s2169_s16, %s2165_s15 }
  0x28   : > { %p92_p6 = scmp.eq.s32.totalorder %s2181_s19, 0  ;;  %s79_s7 = ssub.s32 %s2177_s18, %s3686_s30 }
  0x29   : > { %p1972_p4 = scmp.lt.s32.totalorder %s2181_s19, 2  ;;  %p82_p9 = scmp.eq.s32.totalorder %s79_s7, 0 }
  0x2a   : > { %p93_p13 = por %p92_p6, %p91_p10  ;;  %p2312_p0 = por %p2264_p2, %p91_p10 }
  0x2b   : > { %s161_s9 = sand.u32 1, %s2169_s16   ;;  %s1949_s12 = sshll.u32 %s2177_s18, 7 }
  0x2c   : > { %s3664_s8 = scalar_select %p2312_p0, 1, 0 }
  0x2d   : > { %s2318_s10 = scalar_select %p82_p9, %s2169_s16, %s84_s4  }
  0x2e   : > { %s1838_s11 = sshll.u32 %s161_s9, 3  ;;  %s3666_s2 = sld [smem:[#allocation20_spill]] }
  0x2f   : > { %3665 = sst [smem:[#allocation18_spill]] %s2318_s10  ;;  %s165_s25 = scalar_lea.vmem [#allocation10], %s1838_s11 }
  0x30   : > { %s175_s22 = sshll.u32 %s165_s25, 4  ;;  %p2328_p2 = pnand %p1972_p4, %p93_p13  ;;  %s2326_s22 = int_to_ptr.vmem [resolvable:$true] %s175_s22 }
  0x31   : > { %s162_s27 = scalar_lea.sflag [#allocation7], %s161_s9 }
  0x32   : > { %p2067_p12 = pneg %p2328_p2 }
  0x34   : > { %s2324_s20 = scalar_lea.hbm %s3666_s2, %s1949_s12  ;;  %s2070_s6 = scalar_lea.hbm %s3666_s2, 256 }
  0x35   : > { %s2065_s29 = scalar_lea.hbm %s2324_s20, 128  ;;  %p2071_p7 = scmp.lt.u32.totalorder %s2324_s20, %s3666_s2 }
  0x36   : > { %p2066_p11 = scmp.ne.s32.totalorder %s2324_s20, %s2065_s29  ;;  %p2072_p10 = scmp.lt.u32.totalorder %s2070_s6, %s2065_s29 }
  0x37   : > { %p2074_p4 = scmp.lt.u32.totalorder %s2065_s29, %s2324_s20 }
  0x38   : > { %p2068_p3 = pnand %p2067_p12, %p2066_p11  ;;  %p2073_p6 = por %p2072_p10, %p2071_p7 }
  0x3a   : > { %p2069_p5 = pneg %p2068_p3  ;;  %p2075_p9 = por %p2074_p4, %p2073_p6 }
  0x3c   : > { %p2076_p13 = pnand %p2075_p9, %p2069_p5 }
  0x3e   : > { %2079 = shalt.err (!%p2076_p13)
}
  0x3f   : > { %s2080_s9 = scalar_lea.vmem %s2326_s22, 128  ;;  %s2184_s12 = smov [#allocation10]  }
  0x40   : > { %p2081_p11 = scmp.ne.s32.totalorder %s2326_s22, %s2080_s9  ;;  %s2085_s13 = sshll.u32 %s2184_s12, 4  ;;  %s2086_s13 = int_to_ptr.vmem [resolvable:$false] %s2085_s13 }
  0x41   : > { %s2087_s1 = scalar_lea.vmem %s2086_s13, 256  ;;  %p2088_p1 = scmp.lt.s32.totalorder %s2326_s22, %s2086_s13 }
  0x42   : > { %p2083_p3 = pnand %p2081_p11, %p2067_p12  ;;  %p2089_p7 = scmp.lt.s32.totalorder %s2087_s1, %s2080_s9 }
  0x44   : > { %p2084_p0 = pneg %p2083_p3  ;;  %p2090_p10 = por %p2089_p7, %p2088_p1 }
  0x46   : > { %p2091_p6 = pnand %p2090_p10, %p2084_p0 }
  0x48   : > { %2094 = shalt.err (!%p2091_p6)
}
  0x49   : > { %1966 = dma.hbm_to_vmem [thread:$0]  (!%p2328_p2), %s2324_s20, 128, %s2326_s22, %s162_s27  }
  0x4a   : > { %184 = sbr.rel (%p2283_p8) target bundleno = 771 (0x303), region = 32  ;;  %p3668_p12 = scmp.ne.s32.totalorder (!%p2283_p8), %s3656_s21, 0 }
  0x51   : > { %2148 = dma.done.wait (%p3668_p12), [#allocation9], 16  }
  0x52   : > { %2150 = vsyncadd (%p3668_p12), [#allocation9], 4294967280  ;;  %s2364_s25 = sand.u32 1, %s2165_s15   ;;  %p3669_p1 = scmp.ne.s32.totalorder %s3658_s23, 0 }
  0x53   : > { %s1843_s29 = sshll.u32 %s2364_s25, 3  ;;  %s191_s26 = scalar_lea.sflag [#allocation7], %s2364_s25 }
  0x54   : > { %s194_s4 = scalar_lea.vmem [#allocation10], %s1843_s29 }
  0x55   : > { %2152 = dma.done.wait (%p3669_p1), %s191_s26, 128  }
  0x56   : > { %2154 = vsyncadd (%p3669_p1), %s191_s26, 4294967168 }
  0x57   : > { %199 = sfence }
  0x58   : > { %v235_v0 = vld [vmem:[%s194_s4] sm:$0xff]  ;;  %vm249_vm0 = vcmask 1043456   ;;  %vm224_vm1 = vcmask 179200   ;;  %v2185_v5 = vmov 0.0   ;;  %s2186_s21 = smov 115   ;;  %s2187_s23 = smov 3  }
  0x59   : > { %v250_v1 = vsel %vm249_vm0, %v235_v0, -inf  ;;  %v268_v2 = vsel %vm249_vm0, %v235_v0, 0.0  ;;  %225 = vst.msk [vmem:[#allocation4] sm:$0xff] %vm224_vm1, %v2185_v5  ;;  %226 = vst.msk [vmem:[#allocation4 + $0x8] sm:$0xff] %vm224_vm1, %v2185_v5  ;;  %v247_v16 = vcombine.high %v235_v0, %v235_v0  ;;  %s2188_s28 = smov 99   ;;  %s2189_s20 = smov 83  }
  0x5a   : > { %v251_v3 = vrot.slane %v250_v1, 4  ;;  %v269_v4 = vrot.slane %v268_v2, 4  ;;  %229 = vst.msk [vmem:[#allocation4 + $0x18] sm:$0xff] %vm224_vm1, %v2185_v5  ;;  %230 = vst.msk [vmem:[#allocation4 + $0x20] sm:$0xff] %vm224_vm1, %v2185_v5  ;;  %s2190_s22 = smov 67   ;;  %s2191_s27 = smov 51  }
  0x5b   : > { %v275_v18 = vsel %vm249_vm0, %v247_v16, 0.0  ;;  %v257_v20 = vsel %vm249_vm0, %v247_v16, -inf  ;;  %s2192_s5 = smov 35   ;;  %s2193_s6 = smov 19   ;;  %vm227_vm2 = vcmask 177152   ;;  %vm288_vm3 = vcmask 147480  }
  0x5c   : > { %v252_v6 = vmax.f32 %v250_v1, %v251_v3  ;;  %v270_v7 = vadd.f32 %v269_v4, %v268_v2  ;;  %v276_v19 = vrot.slane %v275_v18, 4  ;;  %v258_v21 = vrot.slane %v257_v20, 4  ;;  %228 = vst.msk [vmem:[#allocation4 + $0x10] sm:$0x3f] %vm227_vm2, %v2185_v5  ;;  %231 = vst.msk [vmem:[#allocation4 + $0x28] sm:$0x3f] %vm227_vm2, %v2185_v5 }
  0x5d   : > { %s2402_s7 = sld [smem:[#allocation6 + $0x1]]  ;;  %s2406_s11 = sld [smem:[#allocation6 + $0x2]]  ;;  %vm1720_vm4 = vcmask 130048  }
  0x5e   : > { %v253_v8 = vrot.slane %v252_v6, 2  ;;  %v271_v9 = vrot.slane %v270_v7, 2  ;;  %v277_v22 = vadd.f32 %v276_v19, %v275_v18  ;;  %v259_v23 = vmax.f32 %v257_v20, %v258_v21  ;;  %s2411_s9 = sld [smem:[#allocation6 + $0x3]]  ;;  %s2421_s12 = sld [smem:[#allocation6 + $0x4]] }
  0x5f   : > { %s3641_s13 = smov 127   ;;  %s2430_s1 = sld [smem:[#allocation6 + $0x5]] }
  0x60   : > { %v254_v10 = vmax.f32 %v252_v6, %v253_v8  ;;  %v272_v11 = vadd.f32 %v271_v9, %v270_v7  ;;  %v278_v24 = vrot.slane %v277_v22, 2  ;;  %v260_v25 = vrot.slane %v259_v23, 2  ;;  %s3645_s29 = smov 126   ;;  %s2439_s26 = sld [smem:[#allocation6 + $0x6]] }
  0x61   : > { %s3643_s4 = smov 125   ;;  %s3674_s0 = smov 126  }
  0x62   : > { %v255_v12 = vrot.slane %v254_v10, 1  ;;  %v273_v13 = vrot.slane %v272_v11, 1  ;;  %v279_v26 = vadd.f32 %v278_v24, %v277_v22  ;;  %v261_v27 = vmax.f32 %v259_v23, %v260_v25  ;;  %s2700_s2 = sld [smem:[#allocation6]]  ;;  %s3675_s30 = smov 124  }
  0x63   : > { %v425_v43 = vstv %s2402_s7  ;;  %v439_v48 = vstv %s2406_s11  ;;  %s2522_s7 = sld [smem:[#allocation6 + $0x33]]  ;;  %s2533_s11 = sld [smem:[#allocation6 + $0x34]] }
  0x64   : > { %v256_v14 = vmax.f32 %v254_v10, %v255_v12  ;;  %v274_v15 = vadd.f32 %v273_v13, %v272_v11  ;;  %v280_v28 = vrot.slane %v279_v26, 1  ;;  %v262_v29 = vrot.slane %v261_v27, 1  ;;  %s2741_s18 = sld [smem:[#allocation6 + $0x31]]  ;;  %s2782_s10 = sld [smem:[#allocation6 + $0x7]] }
  0x65   : > { %v453_v52 = vstv %s2411_s9  ;;  %v467_v56 = vstv %s2421_s12  ;;  %v481_v60 = vstv %s2430_s1  ;;  %s2542_s9 = sld [smem:[#allocation6 + $0x35]]  ;;  %s2562_s12 = sld [smem:[#allocation6 + $0x37]] }
  0x66   : > { %296 = vrot.lane.b32.xlu1 %v256_v14, %s2186_s21  ;;  %285 = vrot.lane.b32.xlu0 %v256_v14, %s2187_s23  ;;  %v282_v17 = vmul.f32 0.25, %v274_v15  ;;  %v281_v30 = vadd.f32 %v280_v28, %v279_v26  ;;  %v263_v31 = vmax.f32 %v261_v27, %v262_v29  ;;  %v495_v0 = vstv %s2439_s26  ;;  %s3673_s1 = smov 125   ;;  %s2571_s26 = sld [smem:[#allocation6 + $0x39]] }
  0x67   : > { %s2825_s16 = sld [smem:[#allocation6 + $0x38]]  ;;  %p3676_p0 = scmp.ne.s32.totalorder %s3664_s8, 0 }
  0x68   : > { %v283_v32 = vmul.f32 0.25, %v281_v30 }
  0x6a   : > { %300 = vrot.lane.b32.xlu1 %v282_v17, %s2186_s21  ;;  %304 = vrot.lane.b32.xlu0 %v256_v14, %s2188_s28 }
  0x6e   : > { %308 = vrot.lane.b32.xlu1 %v282_v17, %s2188_s28  ;;  %312 = vrot.lane.b32.xlu0 %v256_v14, %s2189_s20 }
  0x72   : > { %316 = vrot.lane.b32.xlu1 %v282_v17, %s2189_s20  ;;  %320 = vrot.lane.b32.xlu0 %v256_v14, %s2190_s22 }
  0x76   : > { %324 = vrot.lane.b32.xlu1 %v282_v17, %s2190_s22  ;;  %291 = vrot.lane.b32.xlu0 %v282_v17, %s2187_s23 }
  0x7a   : > { %332 = vrot.lane.b32.xlu1 %v282_v17, %s2191_s27  ;;  %328 = vrot.lane.b32.xlu0 %v256_v14, %s2191_s27 }
  0x7e   : > { %340 = vrot.lane.b32.xlu1 %v282_v17, %s2192_s5  ;;  %336 = vrot.lane.b32.xlu0 %v256_v14, %s2192_s5 }
  0x82   : > { %348 = vrot.lane.b32.xlu1 %v282_v17, %s2193_s6  ;;  %344 = vrot.lane.b32.xlu0 %v256_v14, %s2193_s6 }
  0x86   : > { %353 = vrot.lane.b32.xlu0 %v263_v31, %s2187_s23  ;;  %358 = vrot.lane.b32.xlu1 %v283_v32, %s2187_s23  ;;  %s3647_s23 = smov 124  }
  0x8a   : > { %362 = vrot.lane.b32.xlu0 %v263_v31, %s2186_s21  ;;  %366 = vrot.lane.b32.xlu1 %v283_v32, %s2186_s21  ;;  %s2448_s21 = sld [smem:[#allocation6 + $0x8]] }
  0x8e   : > { %370 = vrot.lane.b32.xlu0 %v263_v31, %s2188_s28  ;;  %374 = vrot.lane.b32.xlu1 %v283_v32, %s2188_s28  ;;  %s2457_s28 = sld [smem:[#allocation6 + $0x9]] }
  0x90   : > { %v607_v5 = vstv %s2448_s21  ;;  %s2600_s21 = sld [smem:[#allocation6 + $0x3c]] }
  0x92   : > { %378 = vrot.lane.b32.xlu0 %v263_v31, %s2189_s20  ;;  %382 = vrot.lane.b32.xlu1 %v283_v32, %s2189_s20  ;;  %s3639_s20 = smov 123  }
  0x94   : > { %v621_v9 = vstv %s2457_s28  ;;  %s2609_s28 = sld [smem:[#allocation6 + $0x3d]] }
  0x96   : > { %386 = vrot.lane.b32.xlu0 %v263_v31, %s2190_s22  ;;  %390 = vrot.lane.b32.xlu1 %v283_v32, %s2190_s22  ;;  %s2468_s22 = sld [smem:[#allocation6 + $0xa]] }
  0x9a   : > { %394 = vrot.lane.b32.xlu0 %v263_v31, %s2191_s27  ;;  %398 = vrot.lane.b32.xlu1 %v283_v32, %s2191_s27  ;;  %s3637_s27 = smov 122  }
  0x9c   : > { %v635_v13 = vstv %s2468_s22  ;;  %s2620_s22 = sld [smem:[#allocation6 + $0x3e]] }
  0x9e   : > { %402 = vrot.lane.b32.xlu0 %v263_v31, %s2192_s5  ;;  %406 = vrot.lane.b32.xlu1 %v283_v32, %s2192_s5  ;;  %s2477_s5 = sld [smem:[#allocation6 + $0xb]] }
  0xa2   : > { %410 = vrot.lane.b32.xlu0 %v263_v31, %s2193_s6  ;;  %414 = vrot.lane.b32.xlu1 %v283_v32, %s2193_s6  ;;  %s2486_s6 = sld [smem:[#allocation6 + $0xc]] }
  0xa4   : > { %v649_v17 = vstv %s2477_s5  ;;  %s2629_s5 = sld [smem:[#allocation6 + $0xf]] }
  0xa8   : > { %v663_v23 = vstv %s2486_s6  ;;  %s2638_s6 = sld [smem:[#allocation6 + $0x10]] }
  0xd8   : > { %v297_v33 = vpop.permute.xlu1 %296  ;;  %v286_v34 = vpop.permute.xlu0 %285 }
  0xd9   : > { %299 = vst.msk [vmem:[#allocation4 + $0x4] sm:$0x1] %vm288_vm3, %v297_v33  ;;  %289 = vst.msk [vmem:[#allocation4 + $0x3] sm:$0x1] %vm288_vm3, %v286_v34 }
  0xdc   : > { %v301_v35 = vpop.permute.xlu1 %300  ;;  %v305_v36 = vpop.permute.xlu0 %304 }
  0xdd   : > { %303 = vst.msk [vmem:[#allocation4 + $0x1c] sm:$0x1] %vm288_vm3, %v301_v35  ;;  %307 = vst.msk [vmem:[#allocation4 + $0x5] sm:$0x1] %vm288_vm3, %v305_v36  ;;  %v531_v35 = vstv %s2522_s7  ;;  %s2580_s7 = sld [smem:[#allocation6 + $0x3a]] }
  0xe0   : > { %v309_v37 = vpop.permute.xlu1 %308  ;;  %v313_v38 = vpop.permute.xlu0 %312 }
  0xe1   : > { %311 = vst.msk [vmem:[#allocation4 + $0x1d] sm:$0x1] %vm288_vm3, %v309_v37  ;;  %315 = vst.msk [vmem:[#allocation4 + $0x6] sm:$0x1] %vm288_vm3, %v313_v38  ;;  %v545_v38 = vstv %s2533_s11  ;;  %s2649_s11 = sld [smem:[#allocation6 + $0x11]] }
  0xe4   : > { %v317_v39 = vpop.permute.xlu1 %316  ;;  %v321_v40 = vpop.permute.xlu0 %320 }
  0xe5   : > { %319 = vst.msk [vmem:[#allocation4 + $0x1e] sm:$0x1] %vm288_vm3, %v317_v39  ;;  %323 = vst.msk [vmem:[#allocation4 + $0x7] sm:$0x1] %vm288_vm3, %v321_v40 }
  0xe8   : > { %v325_v41 = vpop.permute.xlu1 %324  ;;  %v292_v42 = vpop.permute.xlu0 %291 }
  0xe9   : > { %327 = vst.msk [vmem:[#allocation4 + $0x1f] sm:$0x1] %vm288_vm3, %v325_v41  ;;  %295 = vst.msk [vmem:[#allocation4 + $0x1b] sm:$0x1] %vm288_vm3, %v292_v42  ;;  %v559_v42 = vstv %s2542_s9  ;;  %s2658_s9 = sld [smem:[#allocation6 + $0x12]] }
  0xec   : > { %v333_v44 = vpop.permute.xlu1 %332  ;;  %v329_v45 = vpop.permute.xlu0 %328  ;;  %v2413_v46 = vld [vmem:[#allocation4] sm:$0xff] }
  0xed   : > { %335 = vst.msk [vmem:[#allocation4 + $0x20] sm:$0x1] %vm288_vm3, %v333_v44  ;;  %331 = vst.msk [vmem:[#allocation4 + $0x8] sm:$0x1] %vm288_vm3, %v329_v45  ;;  %v426_v47 = vmul.f32 %v425_v43, %v2413_v46  ;;  %v440_v51 = vmul.f32 %v439_v48, %v2413_v46  ;;  %v454_v55 = vmul.f32 %v453_v52, %v2413_v46 }
  0xee   : > { %v468_v59 = vmul.f32 %v467_v56, %v2413_v46  ;;  %v482_v63 = vmul.f32 %v481_v60, %v2413_v46  ;;  %v496_v3 = vmul.f32 %v495_v0, %v2413_v46 }
  0xef   : > { %430 = vrot.lane.b32.xlu0 %v426_v47, %s3641_s13 }
  0xf0   : > { %v341_v49 = vpop.permute.xlu1 %340  ;;  %v337_v50 = vpop.permute.xlu0 %336  ;;  %v2530_v31 = vld [vmem:[#allocation4 + $0x18] sm:$0xff] }
  0xf1   : > { %343 = vst.msk [vmem:[#allocation4 + $0x21] sm:$0x1] %vm288_vm3, %v341_v49  ;;  %339 = vst.msk [vmem:[#allocation4 + $0x9] sm:$0x1] %vm288_vm3, %v337_v50  ;;  %v532_v37 = vmul.f32 %v531_v35, %v2530_v31  ;;  %v546_v40 = vmul.f32 %v545_v38, %v2530_v31  ;;  %v560_v44 = vmul.f32 %v559_v42, %v2530_v31  ;;  %v587_v49 = vstv %s2562_s12  ;;  %s2667_s12 = sld [smem:[#allocation6 + $0x13]] }
  0xf3   : > { %444 = vrot.lane.b32.xlu0 %v440_v51, %s3645_s29  ;;  %v588_v51 = vmul.f32 %v587_v49, %v2530_v31 }
  0xf4   : > { %v349_v53 = vpop.permute.xlu1 %348  ;;  %v345_v54 = vpop.permute.xlu0 %344  ;;  %v2465_v4 = vld [vmem:[#allocation4 + $0x1] sm:$0xff] }
  0xf5   : > { %351 = vst.msk [vmem:[#allocation4 + $0x22] sm:$0x1] %vm288_vm3, %v349_v53  ;;  %347 = vst.msk [vmem:[#allocation4 + $0xa] sm:$0x1] %vm288_vm3, %v345_v54  ;;  %v608_v8 = vmul.f32 %v607_v5, %v2465_v4  ;;  %v622_v12 = vmul.f32 %v621_v9, %v2465_v4  ;;  %v636_v16 = vmul.f32 %v635_v13, %v2465_v4  ;;  %v699_v53 = vstv %s2571_s26  ;;  %s2678_s26 = sld [smem:[#allocation6 + $0x14]] }
  0xf6   : > { %v650_v22 = vmul.f32 %v649_v17, %v2465_v4  ;;  %v664_v27 = vmul.f32 %v663_v23, %v2465_v4 }
  0xf7   : > { %458 = vrot.lane.b32.xlu0 %v454_v55, %s3643_s4 }
  0xf8   : > { %v354_v57 = vpop.permute.xlu0 %353  ;;  %v359_v58 = vpop.permute.xlu1 %358 }
  0xf9   : > { %356 = vst.msk [vmem:[#allocation4 + $0xb] sm:$0x1] %vm288_vm3, %v354_v57  ;;  %361 = vst.msk [vmem:[#allocation4 + $0x23] sm:$0x1] %vm288_vm3, %v359_v58 }
  0xfb   : > { %472 = vrot.lane.b32.xlu0 %v468_v59, %s3647_s23 }
  0xfc   : > { %v363_v61 = vpop.permute.xlu0 %362  ;;  %v367_v62 = vpop.permute.xlu1 %366 }
  0xfd   : > { %365 = vst.msk [vmem:[#allocation4 + $0xc] sm:$0x1] %vm288_vm3, %v363_v61  ;;  %369 = vst.msk [vmem:[#allocation4 + $0x24] sm:$0x1] %vm288_vm3, %v367_v62 }
  0xff   : > { %486 = vrot.lane.b32.xlu0 %v482_v63, %s3639_s20  ;;  %s2509_s20 = sld [smem:[#allocation6 + $0x32]]  ;;  %v741_v63 = vstv %s2600_s21  ;;  %s2737_s21 = sld [smem:[#allocation6 + $0x44]] }
 0x100   : > { %v371_v1 = vpop.permute.xlu0 %370  ;;  %v375_v2 = vpop.permute.xlu1 %374 }
 0x101   : > { %373 = vst.msk [vmem:[#allocation4 + $0xd] sm:$0x1] %vm288_vm3, %v371_v1  ;;  %377 = vst.msk [vmem:[#allocation4 + $0x25] sm:$0x1] %vm288_vm3, %v375_v2  ;;  %v755_v2 = vstv %s2609_s28  ;;  %s2752_s28 = sld [smem:[#allocation6 + $0x45]] }
 0x103   : > { %500 = vrot.lane.b32.xlu0 %v496_v3, %s3637_s27  ;;  %s2495_s27 = sld [smem:[#allocation6 + $0xd]] }
 0x104   : > { %v379_v6 = vpop.permute.xlu0 %378  ;;  %v383_v7 = vpop.permute.xlu1 %382 }
 0x105   : > { %381 = vst.msk [vmem:[#allocation4 + $0xe] sm:$0x1] %vm288_vm3, %v379_v6  ;;  %385 = vst.msk [vmem:[#allocation4 + $0x26] sm:$0x1] %vm288_vm3, %v383_v7  ;;  %v517_v32 = vstv %s2509_s20  ;;  %s3672_s20 = smov 127   ;;  %v769_v6 = vstv %s2620_s22  ;;  %s2763_s22 = sld [smem:[#allocation6 + $0x16]] }
 0x106   : > { %v518_v34 = vmul.f32 %v517_v32, %v2530_v31 }
 0x107   : > { %612 = vrot.lane.b32.xlu0 %v608_v8, %s3641_s13 }
 0x108   : > { %v387_v10 = vpop.permute.xlu0 %386  ;;  %v391_v11 = vpop.permute.xlu1 %390 }
 0x109   : > { %389 = vst.msk [vmem:[#allocation4 + $0xf] sm:$0x1] %vm288_vm3, %v387_v10  ;;  %393 = vst.msk [vmem:[#allocation4 + $0x27] sm:$0x1] %vm288_vm3, %v391_v11  ;;  %v677_v28 = vstv %s2495_s27  ;;  %s3671_s27 = smov 122   ;;  %v789_v10 = vstv %s2629_s5  ;;  %s2775_s5 = sld [smem:[#allocation6 + $0x17]] }
 0x10a   : > { %v678_v30 = vmul.f32 %v677_v28, %v2465_v4 }
 0x10b   : > { %626 = vrot.lane.b32.xlu0 %v622_v12, %s3645_s29 }
 0x10c   : > { %v395_v14 = vpop.permute.xlu0 %394  ;;  %v399_v15 = vpop.permute.xlu1 %398 }
 0x10d   : > { %397 = vst.msk [vmem:[#allocation4 + $0x10] sm:$0x1] %vm288_vm3, %v395_v14  ;;  %401 = vst.msk [vmem:[#allocation4 + $0x28] sm:$0x1] %vm288_vm3, %v399_v15 }
 0x10f   : > { %640 = vrot.lane.b32.xlu0 %v636_v16, %s3643_s4  ;;  %v817_v16 = vstv %s2649_s11  ;;  %s2806_s11 = sld [smem:[#allocation6 + $0x19]] }
 0x110   : > { %v403_v18 = vpop.permute.xlu0 %402  ;;  %v2498_v19 = vld [vmem:[#allocation4 + $0x8] sm:$0xff]  ;;  %v407_v20 = vpop.permute.xlu1 %406  ;;  %v2617_v62 = vld [vmem:[#allocation4 + $0x20] sm:$0xff] }
 0x111   : > { %405 = vst.msk [vmem:[#allocation4 + $0x11] sm:$0x1] %vm288_vm3, %v403_v18  ;;  %v427_v21 = vmul.f32 %v425_v43, %v2498_v19  ;;  %409 = vst.msk [vmem:[#allocation4 + $0x29] sm:$0x1] %vm288_vm3, %v407_v20  ;;  %v441_v26 = vmul.f32 %v439_v48, %v2498_v19  ;;  %v455_v29 = vmul.f32 %v453_v52, %v2498_v19  ;;  %v2588_v52 = vld [vmem:[#allocation4 + $0x19] sm:$0xff] }
 0x112   : > { %v469_v33 = vmul.f32 %v467_v56, %v2498_v19  ;;  %v483_v36 = vmul.f32 %v481_v60, %v2498_v19  ;;  %v497_v39 = vmul.f32 %v495_v0, %v2498_v19  ;;  %v700_v55 = vmul.f32 %v699_v53, %v2588_v52 }
 0x113   : > { %432 = vrot.lane.b32.xlu1 %v427_v21, %s3641_s13  ;;  %654 = vrot.lane.b32.xlu0 %v650_v22, %s3647_s23  ;;  %s3670_s13 = smov 123   ;;  %v713_v56 = vstv %s2580_s7  ;;  %v519_v0 = vmul.f32 %v517_v32, %v2617_v62  ;;  %v742_v1 = vmul.f32 %v741_v63, %v2588_v52  ;;  %v533_v3 = vmul.f32 %v531_v35, %v2617_v62  ;;  %s2687_s7 = sld [smem:[#allocation6 + $0x40]]  ;;  %v2708_v32 = vld [vmem:[#allocation4 + $0x1a] sm:$0xff] }
 0x114   : > { %v411_v24 = vpop.permute.xlu0 %410  ;;  %v415_v25 = vpop.permute.xlu1 %414  ;;  %v2559_v41 = vld [vmem:[#allocation4 + $0x9] sm:$0xff]  ;;  %v714_v58 = vmul.f32 %v713_v56, %v2588_v52  ;;  %v547_v7 = vmul.f32 %v545_v38, %v2617_v62  ;;  %v770_v8 = vmul.f32 %v769_v6, %v2588_v52  ;;  %v561_v11 = vmul.f32 %v559_v42, %v2617_v62  ;;  %v2675_v20 = vld [vmem:[#allocation4 + $0x21] sm:$0xff] }
 0x115   : > { %413 = vst.msk [vmem:[#allocation4 + $0x12] sm:$0x1] %vm288_vm3, %v411_v24  ;;  %417 = vst.msk [vmem:[#allocation4 + $0x2a] sm:$0x1] %vm288_vm3, %v415_v25  ;;  %v609_v43 = vmul.f32 %v607_v5, %v2559_v41  ;;  %v623_v47 = vmul.f32 %v621_v9, %v2559_v41  ;;  %v637_v50 = vmul.f32 %v635_v13, %v2559_v41  ;;  %v2646_v9 = vld [vmem:[#allocation4 + $0x2] sm:$0xff]  ;;  %v803_v13 = vstv %s2638_s6  ;;  %s2795_s6 = sld [smem:[#allocation6 + $0x18]] }
 0x116   : > { %v651_v54 = vmul.f32 %v649_v17, %v2559_v41  ;;  %v665_v57 = vmul.f32 %v663_v23, %v2559_v41  ;;  %v679_v60 = vmul.f32 %v677_v28, %v2559_v41  ;;  %v756_v5 = vmul.f32 %v755_v2, %v2588_v52 }
 0x117   : > { %446 = vrot.lane.b32.xlu1 %v441_v26, %s3645_s29  ;;  %668 = vrot.lane.b32.xlu0 %v664_v27, %s3670_s13  ;;  %v790_v12 = vmul.f32 %v789_v10, %v2646_v9  ;;  %v804_v15 = vmul.f32 %v803_v13, %v2646_v9  ;;  %v589_v17 = vmul.f32 %v587_v49, %v2617_v62  ;;  %v831_v21 = vstv %s2658_s9  ;;  %s2821_s9 = sld [smem:[#allocation6 + $0x1a]] }
 0x118   : > { %v818_v18 = vmul.f32 %v817_v16, %v2646_v9  ;;  %v701_v22 = vmul.f32 %v699_v53, %v2675_v20  ;;  %v832_v23 = vmul.f32 %v831_v21, %v2646_v9  ;;  %v845_v24 = vstv %s2667_s12  ;;  %s2836_s12 = sld [smem:[#allocation6 + $0x1b]] }
 0x119   : > { %v715_v25 = vmul.f32 %v713_v56, %v2675_v20  ;;  %v846_v26 = vmul.f32 %v845_v24, %v2646_v9  ;;  %v859_v27 = vstv %s2678_s26  ;;  %v743_v35 = vmul.f32 %v741_v63, %v2675_v20  ;;  %s2847_s26 = sld [smem:[#allocation6 + $0x47]] }
 0x11a   : > { %v421_v38 = vstv %s2700_s2  ;;  %s2882_s2 = sld [smem:[#allocation6 + $0x49]] }
 0x11b   : > { %460 = vrot.lane.b32.xlu1 %v455_v29, %s3643_s4  ;;  %682 = vrot.lane.b32.xlu0 %v678_v30, %s3671_s27  ;;  %s2551_s4 = sld [smem:[#allocation6 + $0x36]]  ;;  %v860_v30 = vmul.f32 %v859_v27, %v2646_v9 }
 0x11f   : > { %474 = vrot.lane.b32.xlu1 %v469_v33, %s3647_s23  ;;  %522 = vrot.lane.b32.xlu0 %v518_v34, %s3672_s20  ;;  %v881_v33 = vstv %s2687_s7  ;;  %s2862_s7 = sld [smem:[#allocation6 + $0x48]] }
 0x121   : > { %v573_v45 = vstv %s2551_s4  ;;  %s2591_s4 = sld [smem:[#allocation6 + $0x3b]] }
 0x122   : > { %v574_v48 = vmul.f32 %v573_v45, %v2530_v31  ;;  %v575_v14 = vmul.f32 %v573_v45, %v2617_v62 }
 0x123   : > { %488 = vrot.lane.b32.xlu1 %v483_v36, %s3670_s13  ;;  %536 = vrot.lane.b32.xlu0 %v532_v37, %s3645_s29  ;;  %v882_v36 = vmul.f32 %v881_v33, %v2708_v32 }
 0x127   : > { %502 = vrot.lane.b32.xlu1 %v497_v39, %s3671_s27  ;;  %550 = vrot.lane.b32.xlu0 %v546_v40, %s3673_s1  ;;  %v727_v59 = vstv %s2591_s4  ;;  %s2722_s4 = sld [smem:[#allocation6 + $0x43]]  ;;  %v757_v40 = vmul.f32 %v755_v2, %v2675_v20  ;;  %v951_v2 = vstv %s2752_s28  ;;  %s2981_s28 = sld [smem:[#allocation6 + $0x20]] }
 0x128   : > { %v728_v61 = vmul.f32 %v727_v59, %v2588_v52  ;;  %v729_v29 = vmul.f32 %v727_v59, %v2675_v20  ;;  %v511_v59 = vstv %s2741_s18  ;;  %s2928_s18 = sld [smem:[#allocation6 + $0x4c]] }
 0x12b   : > { %614 = vrot.lane.b32.xlu1 %v609_v43, %s3672_s20  ;;  %564 = vrot.lane.b32.xlu0 %v560_v44, %s3647_s23  ;;  %v422_v43 = vmul.f32 %v421_v38, %v2413_v46 }
 0x12f   : > { %628 = vrot.lane.b32.xlu1 %v623_v47, %s3645_s29  ;;  %578 = vrot.lane.b32.xlu0 %v574_v48, %s3670_s13  ;;  %v771_v48 = vmul.f32 %v769_v6, %v2675_v20 }
 0x133   : > { %642 = vrot.lane.b32.xlu1 %v637_v50, %s3673_s1  ;;  %592 = vrot.lane.b32.xlu0 %v588_v51, %s3671_s27  ;;  %v2749_v50 = vld [vmem:[#allocation4 + $0xa] sm:$0xff]  ;;  %v923_v51 = vstv %s2722_s4  ;;  %s2941_s4 = sld [smem:[#allocation6 + $0x1d]] }
 0x134   : > { %v924_v56 = vmul.f32 %v923_v51, %v2708_v32  ;;  %v805_v63 = vmul.f32 %v803_v13, %v2749_v50 }
 0x137   : > { %656 = vrot.lane.b32.xlu1 %v651_v54, %s3647_s23  ;;  %704 = vrot.lane.b32.xlu0 %v700_v55, %s3672_s20  ;;  %v791_v55 = vmul.f32 %v789_v10, %v2749_v50  ;;  %v971_v10 = vstv %s2763_s22  ;;  %s2992_s22 = sld [smem:[#allocation6 + $0x21]] }
 0x13b   : > { %670 = vrot.lane.b32.xlu1 %v665_v57, %s3670_s13  ;;  %718 = vrot.lane.b32.xlu0 %v714_v58, %s3645_s29  ;;  %v937_v58 = vstv %s2737_s21  ;;  %s2957_s21 = sld [smem:[#allocation6 + $0x1e]] }
 0x13f   : > { %684 = vrot.lane.b32.xlu1 %v679_v60, %s3671_s27  ;;  %732 = vrot.lane.b32.xlu0 %v728_v61, %s3673_s1 }
 0x143   : > { %524 = vrot.lane.b32.xlu1 %v519_v0, %s3672_s20  ;;  %746 = vrot.lane.b32.xlu0 %v742_v1, %s3647_s23  ;;  %v938_v0 = vmul.f32 %v937_v58, %v2708_v32 }
 0x147   : > { %538 = vrot.lane.b32.xlu1 %v533_v3, %s3645_s29  ;;  %760 = vrot.lane.b32.xlu0 %v756_v5, %s3670_s13  ;;  %v512_v3 = vmul.f32 %v511_v59, %v2530_v31  ;;  %v2792_v31 = vld [vmem:[#allocation4 + $0x3] sm:$0xff] }
 0x148   : > { %v972_v13 = vmul.f32 %v971_v10, %v2792_v31 }
 0x14b   : > { %552 = vrot.lane.b32.xlu1 %v547_v7, %s3673_s1  ;;  %774 = vrot.lane.b32.xlu0 %v770_v8, %s3671_s27  ;;  %v819_v7 = vmul.f32 %v817_v16, %v2749_v50  ;;  %v952_v8 = vmul.f32 %v951_v2, %v2708_v32 }
 0x14f   : > { %566 = vrot.lane.b32.xlu1 %v561_v11, %s3647_s23  ;;  %794 = vrot.lane.b32.xlu0 %v790_v12, %s3672_s20  ;;  %v833_v12 = vmul.f32 %v831_v21, %v2749_v50 }
 0x153   : > { %580 = vrot.lane.b32.xlu1 %v575_v14, %s3670_s13  ;;  %808 = vrot.lane.b32.xlu0 %v804_v15, %s3645_s29  ;;  %s2696_s29 = sld [smem:[#allocation6 + $0x41]]  ;;  %v985_v14 = vstv %s2775_s5  ;;  %v603_v15 = vstv %s2782_s10  ;;  %s2970_s10 = sld [smem:[#allocation6 + $0x1f]] }
 0x154   : > { %v604_v21 = vmul.f32 %v603_v15, %v2465_v4  ;;  %s3031_s5 = sld [smem:[#allocation6 + $0x4e]] }
 0x157   : > { %594 = vrot.lane.b32.xlu1 %v589_v17, %s3671_s27  ;;  %822 = vrot.lane.b32.xlu0 %v818_v18, %s3673_s1  ;;  %v847_v17 = vmul.f32 %v845_v24, %v2749_v50  ;;  %v986_v18 = vmul.f32 %v985_v14, %v2792_v31 }
 0x159   : > { %v895_v37 = vstv %s2696_s29  ;;  %s2895_s29 = sld [smem:[#allocation6 + $0x4a]] }
 0x15a   : > { %v896_v42 = vmul.f32 %v895_v37, %v2708_v32 }
 0x15b   : > { %706 = vrot.lane.b32.xlu1 %v701_v22, %s3672_s20  ;;  %836 = vrot.lane.b32.xlu0 %v832_v23, %s3647_s23  ;;  %s2711_s23 = sld [smem:[#allocation6 + $0x42]]  ;;  %v999_v22 = vstv %s2795_s6  ;;  %s3048_s6 = sld [smem:[#allocation6 + $0xe]] }
 0x15c   : > { %v1000_v4 = vmul.f32 %v999_v22, %v2792_v31 }
 0x15f   : > { %720 = vrot.lane.b32.xlu1 %v715_v25, %s3674_s0  ;;  %850 = vrot.lane.b32.xlu0 %v846_v26, %s3670_s13  ;;  %v861_v26 = vmul.f32 %v859_v27, %v2749_v50 }
 0x161   : > { %v431_v28 = vpop.permute.xlu0 %430  ;;  %v909_v44 = vstv %s2711_s23  ;;  %s2908_s23 = sld [smem:[#allocation6 + $0x4b]] }
 0x162   : > { %v436_v45 = vadd.f32 %v431_v28, %v422_v43  ;;  %v910_v46 = vmul.f32 %v909_v44, %v2708_v32  ;;  %v693_v43 = vstv %s2825_s16  ;;  %s3016_s16 = sld [smem:[#allocation6 + $0x22]] }
 0x163   : > { %734 = vrot.lane.b32.xlu1 %v729_v29, %s3673_s1  ;;  %864 = vrot.lane.b32.xlu0 %v860_v30, %s3671_s27  ;;  %v2833_v29 = vld [vmem:[#allocation4 + $0x22] sm:$0xff]  ;;  %v1013_v30 = vstv %s2806_s11  ;;  %s3052_s11 = sld [smem:[#allocation6 + $0x24]] }
 0x165   : > { %v445_v34 = vpop.permute.xlu0 %444 }
 0x166   : > { %v450_v49 = vadd.f32 %v445_v34, %v436_v45 }
 0x167   : > { %748 = vrot.lane.b32.xlu1 %v743_v35, %s3675_s30  ;;  %886 = vrot.lane.b32.xlu0 %v882_v36, %s3672_s20  ;;  %v883_v36 = vmul.f32 %v881_v33, %v2833_v29  ;;  %v897_v33 = vmul.f32 %v895_v37, %v2833_v29 }
 0x169   : > { %v459_v39 = vpop.permute.xlu0 %458 }
 0x16a   : > { %v464_v53 = vadd.f32 %v459_v39, %v450_v49  ;;  %v1014_v39 = vmul.f32 %v1013_v30, %v2792_v31  ;;  %v423_v49 = vmul.f32 %v421_v38, %v2498_v19  ;;  %v911_v19 = vmul.f32 %v909_v44, %v2833_v29 }
 0x16b   : > { %762 = vrot.lane.b32.xlu1 %v757_v40, %s3670_s13  ;;  %900 = vrot.lane.b32.xlu0 %v896_v42, %s3674_s0  ;;  %v1027_v42 = vstv %s2821_s9  ;;  %v925_v44 = vmul.f32 %v923_v51, %v2833_v29  ;;  %v939_v51 = vmul.f32 %v937_v58, %v2833_v29  ;;  %s3067_s9 = sld [smem:[#allocation6 + $0x25]] }
 0x16d   : > { %v473_v47 = vpop.permute.xlu0 %472 }
 0x16e   : > { %v478_v57 = vadd.f32 %v473_v47, %v464_v53 }
 0x16f   : > { %776 = vrot.lane.b32.xlu1 %v771_v48, %s3671_s27  ;;  %914 = vrot.lane.b32.xlu0 %v910_v46, %s3673_s1  ;;  %v1028_v46 = vmul.f32 %v1027_v42, %v2792_v31 }
 0x171   : > { %v487_v54 = vpop.permute.xlu0 %486 }
 0x172   : > { %v492_v60 = vadd.f32 %v487_v54, %v478_v57  ;;  %v1041_v54 = vstv %s2836_s12  ;;  %s3083_s12 = sld [smem:[#allocation6 + $0x2b]] }
 0x173   : > { %796 = vrot.lane.b32.xlu1 %v791_v55, %s3672_s20  ;;  %928 = vrot.lane.b32.xlu0 %v924_v56, %s3675_s30  ;;  %v694_v55 = vmul.f32 %v693_v43, %v2588_v52  ;;  %v1042_v38 = vmul.f32 %v1041_v54, %v2792_v31 }
 0x175   : > { %v501_v61 = vpop.permute.xlu0 %500 }
 0x176   : > { %v506_v1 = vadd.f32 %v501_v61, %v492_v60  ;;  %v2879_v61 = vld [vmem:[#allocation4 + $0x1b] sm:$0xff] }
 0x177   : > { %810 = vrot.lane.b32.xlu1 %v805_v63, %s3674_s0  ;;  %942 = vrot.lane.b32.xlu0 %v938_v0, %s3670_s13  ;;  %v1063_v63 = vstv %s2847_s26  ;;  %s3098_s26 = sld [smem:[#allocation6 + $0x3f]] }
 0x178   : > { %v2784_v5 = vadd.f32 %v512_v3, %v506_v1 }
 0x179   : > { %v613_v6 = vpop.permute.xlu0 %612 }
 0x17a   : > { %v618_v23 = vadd.f32 %v613_v6, %v604_v21  ;;  %v1064_v6 = vmul.f32 %v1063_v63, %v2879_v61  ;;  %v513_v21 = vmul.f32 %v511_v59, %v2617_v62  ;;  %v1105_v62 = vstv %s2895_s29  ;;  %s3128_s29 = sld [smem:[#allocation6 + $0x27]] }
 0x17b   : > { %824 = vrot.lane.b32.xlu1 %v819_v7, %s3673_s1  ;;  %956 = vrot.lane.b32.xlu0 %v952_v8, %s3671_s27  ;;  %v1077_v8 = vstv %s2862_s7  ;;  %s3101_s7 = sld [smem:[#allocation6 + $0x26]] }
 0x17d   : > { %v627_v11 = vpop.permute.xlu0 %626 }
 0x17e   : > { %v632_v28 = vadd.f32 %v627_v11, %v618_v23 }
 0x17f   : > { %838 = vrot.lane.b32.xlu1 %v833_v12, %s3675_s30  ;;  %976 = vrot.lane.b32.xlu0 %v972_v13, %s3672_s20 }
 0x181   : > { %v641_v16 = vpop.permute.xlu0 %640 }
 0x182   : > { %v646_v34 = vadd.f32 %v641_v16, %v632_v28  ;;  %v1078_v16 = vmul.f32 %v1077_v8, %v2879_v61 }
 0x183   : > { %852 = vrot.lane.b32.xlu1 %v847_v17, %s3670_s13  ;;  %990 = vrot.lane.b32.xlu0 %v986_v18, %s3674_s0  ;;  %v1091_v18 = vstv %s2882_s2  ;;  %s3116_s2 = sld [smem:[#allocation6 + $0x2c]] }
 0x185   : > { %v433_v25 = vpop.permute.xlu1 %432  ;;  %v655_v24 = vpop.permute.xlu0 %654 }
 0x186   : > { %v660_v40 = vadd.f32 %v655_v24, %v646_v34  ;;  %v437_v37 = vadd.f32 %v433_v25, %v423_v49  ;;  %v953_v24 = vmul.f32 %v951_v2, %v2833_v29  ;;  %v1106_v34 = vmul.f32 %v1105_v62, %v2879_v61 }
 0x187   : > { %866 = vrot.lane.b32.xlu1 %v861_v26, %s3671_s27  ;;  %1004 = vrot.lane.b32.xlu0 %v1000_v4, %s3673_s1  ;;  %v1092_v26 = vmul.f32 %v1091_v18, %v2879_v61  ;;  %v2925_v4 = vld [vmem:[#allocation4 + $0xb] sm:$0xff]  ;;  %v1153_v49 = vstv %s2941_s4  ;;  %s3171_s4 = sld [smem:[#allocation6 + $0x2e]] }
 0x188   : > { %v973_v2 = vmul.f32 %v971_v10, %v2925_v4 }
 0x189   : > { %v447_v35 = vpop.permute.xlu1 %446  ;;  %v669_v27 = vpop.permute.xlu0 %668 }
 0x18a   : > { %v674_v45 = vadd.f32 %v669_v27, %v660_v40  ;;  %v451_v52 = vadd.f32 %v447_v35, %v437_v37  ;;  %v1119_v35 = vstv %s2908_s23  ;;  %v605_v40 = vmul.f32 %v603_v15, %v2559_v41  ;;  %v2967_v15 = vld [vmem:[#allocation4 + $0x4] sm:$0xff]  ;;  %s3145_s23 = sld [smem:[#allocation6 + $0x2d]] }
 0x18b   : > { %888 = vrot.lane.b32.xlu1 %v883_v36, %s3672_s20  ;;  %1018 = vrot.lane.b32.xlu0 %v1014_v39, %s3675_s30  ;;  %v987_v39 = vmul.f32 %v985_v14, %v2925_v4  ;;  %v1120_v10 = vmul.f32 %v1119_v35, %v2879_v61  ;;  %v1001_v14 = vmul.f32 %v999_v22, %v2925_v4 }
 0x18c   : > { %v1015_v22 = vmul.f32 %v1013_v30, %v2925_v4 }
 0x18d   : > { %v461_v47 = vpop.permute.xlu1 %460  ;;  %v683_v48 = vpop.permute.xlu0 %682 }
 0x18e   : > { %v688_v53 = vadd.f32 %v683_v48, %v674_v45  ;;  %v465_v0 = vadd.f32 %v461_v47, %v451_v52  ;;  %v1133_v45 = vstv %s2928_s18  ;;  %s3158_s18 = sld [smem:[#allocation6 + $0x28]] }
 0x18f   : > { %902 = vrot.lane.b32.xlu1 %v897_v33, %s3674_s0  ;;  %1032 = vrot.lane.b32.xlu0 %v1028_v46, %s3670_s13  ;;  %v1134_v46 = vmul.f32 %v1133_v45, %v2879_v61 }
 0x190   : > { %v2869_v56 = vadd.f32 %v694_v55, %v688_v53 }
 0x191   : > { %v475_v57 = vpop.permute.xlu1 %474  ;;  %v2871_v60 = vpop.permute.xlu0 %522 }
 0x192   : > { %v479_v7 = vadd.f32 %v475_v57, %v465_v0  ;;  %v1154_v57 = vmul.f32 %v1153_v49, %v2967_v15 }
 0x193   : > { %916 = vrot.lane.b32.xlu1 %v911_v19, %s3673_s1  ;;  %1046 = vrot.lane.b32.xlu0 %v1042_v38, %s3671_s27  ;;  %v1167_v38 = vstv %s2957_s21  ;;  %s3185_s21 = sld [smem:[#allocation6 + $0x29]] }
 0x194   : > { %v1168_v30 = vmul.f32 %v1167_v38, %v2967_v15 }
 0x195   : > { %v489_v1 = vpop.permute.xlu1 %488  ;;  %v2886_v3 = vpop.permute.xlu0 %536 }
 0x196   : > { %v493_v11 = vadd.f32 %v489_v1, %v479_v7  ;;  %v1181_v7 = vstv %s2970_s10  ;;  %s3193_s10 = sld [smem:[#allocation6 + $0x15]] }
 0x197   : > { %930 = vrot.lane.b32.xlu1 %v925_v44, %s3675_s30  ;;  %1068 = vrot.lane.b32.xlu0 %v1064_v6, %s3672_s20  ;;  %v1029_v44 = vmul.f32 %v1027_v42, %v2925_v4 }
 0x199   : > { %v503_v12 = vpop.permute.xlu1 %502  ;;  %v2899_v13 = vpop.permute.xlu0 %550 }
 0x19a   : > { %v507_v17 = vadd.f32 %v503_v12, %v493_v11  ;;  %v695_v11 = vmul.f32 %v693_v43, %v2675_v20  ;;  %v528_v12 = vadd.f32 %v2871_v60, %v2784_v5  ;;  %v1182_v20 = vmul.f32 %v1181_v7, %v2967_v15  ;;  %v3013_v5 = vld [vmem:[#allocation4 + $0x23] sm:$0xff] }
 0x19b   : > { %944 = vrot.lane.b32.xlu1 %v939_v51, %s3670_s13  ;;  %1082 = vrot.lane.b32.xlu0 %v1078_v16, %s3674_s0 }
 0x19c   : > { %v2915_v23 = vadd.f32 %v513_v21, %v507_v17  ;;  %v1043_v21 = vmul.f32 %v1041_v54, %v2925_v4  ;;  %v542_v43 = vadd.f32 %v2886_v3, %v528_v12  ;;  %v1065_v3 = vmul.f32 %v1063_v63, %v3013_v5 }
 0x19d   : > { %v615_v58 = vpop.permute.xlu1 %614  ;;  %v2917_v25 = vpop.permute.xlu0 %564 }
 0x19e   : > { %v619_v47 = vadd.f32 %v615_v58, %v605_v40  ;;  %v556_v60 = vadd.f32 %v2899_v13, %v542_v43 }
 0x19f   : > { %958 = vrot.lane.b32.xlu1 %v953_v24, %s3671_s27  ;;  %1096 = vrot.lane.b32.xlu0 %v1092_v26, %s3673_s1 }
 0x1a1   : > { %v629_v59 = vpop.permute.xlu1 %628  ;;  %v2932_v28 = vpop.permute.xlu0 %578 }
 0x1a2   : > { %v633_v41 = vadd.f32 %v629_v59, %v619_v47 }
 0x1a3   : > { %978 = vrot.lane.b32.xlu1 %v973_v2, %s3672_s20  ;;  %1110 = vrot.lane.b32.xlu0 %v1106_v34, %s3675_s30  ;;  %v570_v2 = vadd.f32 %v2917_v25, %v556_v60  ;;  %v1079_v25 = vmul.f32 %v1077_v8, %v3013_v5 }
 0x1a5   : > { %v643_v27 = vpop.permute.xlu1 %642  ;;  %v2945_v36 = vpop.permute.xlu0 %592  ;;  %v584_v13 = vadd.f32 %v2932_v28, %v570_v2 }
 0x1a6   : > { %v647_v53 = vadd.f32 %v643_v27, %v633_v41  ;;  %v1209_v27 = vstv %s2992_s22  ;;  %v3062_v41 = vld [vmem:[#allocation4 + $0x1c] sm:$0xff]  ;;  %s3211_s22 = sld [smem:[#allocation6 + $0x30]] }
 0x1a7   : > { %992 = vrot.lane.b32.xlu1 %v987_v39, %s3674_s0  ;;  %1124 = vrot.lane.b32.xlu0 %v1120_v10, %s3670_s13  ;;  %v1210_v40 = vmul.f32 %v1209_v27, %v2967_v15  ;;  %v598_v47 = vadd.f32 %v2945_v36, %v584_v13  ;;  %v1093_v36 = vmul.f32 %v1091_v18, %v3013_v5 }
 0x1a8   : > { %v1107_v18 = vmul.f32 %v1105_v62, %v3013_v5  ;;  %v1121_v62 = vmul.f32 %v1119_v35, %v3013_v5 }
 0x1a9   : > { %v657_v48 = vpop.permute.xlu1 %656  ;;  %v705_v33 = vpop.permute.xlu0 %704 }
 0x1aa   : > { %v661_v19 = vadd.f32 %v657_v48, %v647_v53  ;;  %v710_v42 = vadd.f32 %v705_v33, %v2869_v56  ;;  %v1195_v56 = vstv %s2981_s28  ;;  %v1223_v33 = vstv %s3016_s16  ;;  %s3200_s28 = sld [smem:[#allocation6 + $0x2f]]  ;;  %s3227_s16 = sld [smem:[#allocation6 + $0x55]] }
 0x1ab   : > { %1006 = vrot.lane.b32.xlu1 %v1001_v14, %s3673_s1  ;;  %1138 = vrot.lane.b32.xlu0 %v1134_v46, %s3671_s27  ;;  %v1196_v59 = vmul.f32 %v1195_v56, %v2967_v15  ;;  %v1224_v46 = vmul.f32 %v1223_v33, %v2967_v15  ;;  %v1245_v53 = vstv %s3031_s5  ;;  %s3388_s5 = sld [smem:[#allocation6 + $0x5f]] }
 0x1ad   : > { %v671_v55 = vpop.permute.xlu1 %670  ;;  %v719_v37 = vpop.permute.xlu0 %718 }
 0x1ae   : > { %v675_v52 = vadd.f32 %v671_v55, %v661_v19  ;;  %v724_v58 = vadd.f32 %v719_v37, %v710_v42  ;;  %v785_v19 = vstv %s3048_s6  ;;  %v1135_v42 = vmul.f32 %v1133_v45, %v3013_v5  ;;  %s3241_s6 = sld [smem:[#allocation6 + $0x4f]] }
 0x1af   : > { %1020 = vrot.lane.b32.xlu1 %v1015_v22, %s3675_s30  ;;  %1158 = vrot.lane.b32.xlu0 %v1154_v57, %s3672_s20  ;;  %v1246_v22 = vmul.f32 %v1245_v53, %v3062_v41  ;;  %v3077_v57 = vld [vmem:[#allocation4 + $0xd] sm:$0xff] }
 0x1b1   : > { %v685_v0 = vpop.permute.xlu1 %684  ;;  %v733_v1 = vpop.permute.xlu0 %732 }
 0x1b2   : > { %v689_v6 = vadd.f32 %v685_v0, %v675_v52  ;;  %v738_v54 = vadd.f32 %v733_v1, %v724_v58  ;;  %v1335_v52 = vstv %s3052_s11  ;;  %v1517_v58 = vstv %s3083_s12  ;;  %s3255_s11 = sld [smem:[#allocation6 + $0x56]] }
 0x1b3   : > { %1034 = vrot.lane.b32.xlu1 %v1029_v44, %s3670_s13  ;;  %1172 = vrot.lane.b32.xlu0 %v1168_v30, %s3674_s0  ;;  %v1337_v44 = vmul.f32 %v1335_v52, %v3077_v57  ;;  %v786_v30 = vmul.f32 %v785_v19, %v2646_v9  ;;  %s3273_s12 = sld [smem:[#allocation6 + $0x46]] }
 0x1b4   : > { %v3002_v51 = vadd.f32 %v695_v11, %v689_v6  ;;  %v1349_v11 = vstv %s3067_s9  ;;  %s3269_s9 = sld [smem:[#allocation6 + $0x5c]] }
 0x1b5   : > { %v3004_v16 = vpop.permute.xlu1 %524  ;;  %v747_v17 = vpop.permute.xlu0 %746  ;;  %v1351_v9 = vmul.f32 %v1349_v11, %v3077_v57 }
 0x1b6   : > { %v752_v34 = vadd.f32 %v747_v17, %v738_v54 }
 0x1b7   : > { %1048 = vrot.lane.b32.xlu1 %v1043_v21, %s3671_s27  ;;  %1186 = vrot.lane.b32.xlu0 %v1182_v20, %s3673_s1  ;;  %v3109_v21 = vld [vmem:[#allocation4 + $0xc] sm:$0xff] }
 0x1b8   : > { %v3111_v20 = vld [vmem:[#allocation4 + $0xe] sm:$0xff]  ;;  %v1155_v54 = vmul.f32 %v1153_v49, %v3109_v21  ;;  %v1169_v49 = vmul.f32 %v1167_v38, %v3109_v21 }
 0x1b9   : > { %v3021_v24 = vpop.permute.xlu1 %538  ;;  %v761_v26 = vpop.permute.xlu0 %760 }
 0x1ba   : > { %v766_v39 = vadd.f32 %v761_v26, %v752_v34  ;;  %v1519_v26 = vmul.f32 %v1517_v58, %v3111_v20  ;;  %v1363_v34 = vstv %s3101_s7  ;;  %s3295_s7 = sld [smem:[#allocation6 + $0x57]] }
 0x1bb   : > { %1070 = vrot.lane.b32.xlu1 %v1065_v3, %s3672_s20  ;;  %1200 = vrot.lane.b32.xlu0 %v1196_v59, %s3675_s30  ;;  %v875_v59 = vstv %s3098_s26  ;;  %s3282_s26 = sld [smem:[#allocation6 + $0x50]] }
 0x1bd   : > { %v3036_v63 = vpop.permute.xlu1 %552  ;;  %v775_v10 = vpop.permute.xlu0 %774 }
 0x1be   : > { %v780_v48 = vadd.f32 %v775_v10, %v766_v39  ;;  %v1365_v10 = vmul.f32 %v1363_v34, %v3077_v57 }
 0x1bf   : > { %1084 = vrot.lane.b32.xlu1 %v1079_v25, %s3674_s0  ;;  %1214 = vrot.lane.b32.xlu0 %v1210_v40, %s3670_s13  ;;  %v876_v40 = vmul.f32 %v875_v59, %v2708_v32  ;;  %v1183_v32 = vmul.f32 %v1181_v7, %v3109_v21 }
 0x1c0   : > { %v3050_v28 = vadd.f32 %v780_v48, %v598_v47  ;;  %v529_v47 = vadd.f32 %v3004_v16, %v2915_v23  ;;  %v1377_v16 = vstv %s3128_s29  ;;  %s3321_s29 = sld [smem:[#allocation6 + $0x51]] }
 0x1c1   : > { %v3054_v8 = vpop.permute.xlu1 %566  ;;  %v795_v14 = vpop.permute.xlu0 %794 }
 0x1c2   : > { %v800_v6 = vadd.f32 %v795_v14, %v786_v30 }
 0x1c3   : > { %1098 = vrot.lane.b32.xlu1 %v1093_v36, %s3673_s1  ;;  %1228 = vrot.lane.b32.xlu0 %v1224_v46, %s3671_s27  ;;  %v1531_v36 = vstv %s3116_s2  ;;  %s3310_s2 = sld [smem:[#allocation6 + $0x5d]] }
 0x1c5   : > { %v3069_v55 = vpop.permute.xlu1 %580  ;;  %v809_v37 = vpop.permute.xlu0 %808 }
 0x1c6   : > { %v814_v17 = vadd.f32 %v809_v37, %v800_v6  ;;  %v1533_v37 = vmul.f32 %v1531_v36, %v3111_v20 }
 0x1c7   : > { %1112 = vrot.lane.b32.xlu1 %v1107_v18, %s3675_s30  ;;  %1250 = vrot.lane.b32.xlu0 %v1246_v22, %s3672_s20  ;;  %v543_v18 = vadd.f32 %v3021_v24, %v529_v47  ;;  %v1379_v24 = vmul.f32 %v1377_v16, %v3077_v57  ;;  %v1405_v47 = vstv %s3185_s21  ;;  %s3363_s21 = sld [smem:[#allocation6 + $0x52]] }
 0x1c9   : > { %v3085_v0 = vpop.permute.xlu1 %594  ;;  %v823_v1 = vpop.permute.xlu0 %822  ;;  %v557_v23 = vadd.f32 %v3036_v63, %v543_v18  ;;  %v3225_v18 = vld [vmem:[#allocation4 + $0x6] sm:$0xff] }
 0x1ca   : > { %v828_v43 = vadd.f32 %v823_v1, %v814_v17 }
 0x1cb   : > { %1126 = vrot.lane.b32.xlu1 %v1121_v62, %s3670_s13  ;;  %1342 = vrot.lane.b32.xlu0 %v1337_v44, %s3672_s20  ;;  %v1197_v62 = vmul.f32 %v1195_v56, %v3109_v21  ;;  %v571_v44 = vadd.f32 %v3054_v8, %v557_v23  ;;  %v1573_v23 = vstv %s3200_s28  ;;  %s3406_s28 = sld [smem:[#allocation6 + $0x53]] }
 0x1cd   : > { %v707_v35 = vpop.permute.xlu1 %706  ;;  %v837_v12 = vpop.permute.xlu0 %836  ;;  %v585_v63 = vadd.f32 %v3069_v55, %v571_v44 }
 0x1ce   : > { %v842_v3 = vadd.f32 %v837_v12, %v828_v43  ;;  %v711_v48 = vadd.f32 %v707_v35, %v3002_v51  ;;  %v1545_v35 = vstv %s3145_s23  ;;  %s3332_s23 = sld [smem:[#allocation6 + $0x58]] }
 0x1cf   : > { %1140 = vrot.lane.b32.xlu1 %v1135_v42, %s3671_s27  ;;  %1356 = vrot.lane.b32.xlu0 %v1351_v9, %s3674_s0  ;;  %v1211_v42 = vmul.f32 %v1209_v27, %v3109_v21  ;;  %v1547_v8 = vmul.f32 %v1545_v35, %v3111_v20  ;;  %v599_v9 = vadd.f32 %v3085_v0, %v585_v63 }
 0x1d1   : > { %v721_v45 = vpop.permute.xlu1 %720  ;;  %v851_v60 = vpop.permute.xlu0 %850 }
 0x1d2   : > { %v856_v2 = vadd.f32 %v851_v60, %v842_v3  ;;  %v725_v22 = vadd.f32 %v721_v45, %v711_v48  ;;  %v1391_v45 = vstv %s3158_s18  ;;  %v3195_v3 = vld [vmem:[#allocation4 + $0x5] sm:$0xff]  ;;  %s3345_s18 = sld [smem:[#allocation6 + $0x5e]] }
 0x1d3   : > { %1160 = vrot.lane.b32.xlu1 %v1155_v54, %s3672_s20  ;;  %1524 = vrot.lane.b32.xlu0 %v1519_v26, %s3672_s20  ;;  %v1225_v54 = vmul.f32 %v1223_v33, %v3109_v21  ;;  %v1393_v0 = vmul.f32 %v1391_v45, %v3077_v57 }
 0x1d5   : > { %v735_v13 = vpop.permute.xlu1 %734  ;;  %v865_v39 = vpop.permute.xlu0 %864 }
 0x1d6   : > { %v870_v25 = vadd.f32 %v865_v39, %v856_v2  ;;  %v739_v51 = vadd.f32 %v735_v13, %v725_v22  ;;  %v1559_v13 = vstv %s3171_s4  ;;  %s3358_s4 = sld [smem:[#allocation6 + $0x1c]] }
 0x1d7   : > { %1174 = vrot.lane.b32.xlu1 %v1169_v49, %s3674_s0  ;;  %1370 = vrot.lane.b32.xlu0 %v1365_v10, %s3673_s1  ;;  %v1336_v49 = vmul.f32 %v1335_v52, %v3195_v3  ;;  %v1561_v10 = vmul.f32 %v1559_v13, %v3111_v20  ;;  %v1350_v52 = vmul.f32 %v1349_v11, %v3195_v3 }
 0x1d8   : > { %v878_v14 = vadd.f32 %v876_v40, %v870_v25 }
 0x1d9   : > { %v749_v38 = vpop.permute.xlu1 %748  ;;  %v887_v46 = vpop.permute.xlu0 %886 }
 0x1da   : > { %v753_v30 = vadd.f32 %v749_v38, %v739_v51  ;;  %v892_v55 = vadd.f32 %v887_v46, %v878_v14  ;;  %v1407_v38 = vmul.f32 %v1405_v47, %v3077_v57  ;;  %v967_v46 = vstv %s3193_s10  ;;  %s3376_s10 = sld [smem:[#allocation6 + $0x59]] }
 0x1db   : > { %1188 = vrot.lane.b32.xlu1 %v1183_v32, %s3673_s1  ;;  %1538 = vrot.lane.b32.xlu0 %v1533_v37, %s3674_s0  ;;  %v787_v32 = vmul.f32 %v785_v19, %v2749_v50  ;;  %v968_v11 = vmul.f32 %v967_v46, %v2792_v31  ;;  %v1518_v19 = vmul.f32 %v1517_v58, %v3225_v18 }
 0x1dc   : > { %v1364_v58 = vmul.f32 %v1363_v34, %v3195_v3 }
 0x1dd   : > { %v763_v7 = vpop.permute.xlu1 %762  ;;  %v901_v1 = vpop.permute.xlu0 %900 }
 0x1de   : > { %v767_v6 = vadd.f32 %v763_v7, %v753_v30  ;;  %v906_v26 = vadd.f32 %v901_v1, %v892_v55  ;;  %v1575_v7 = vmul.f32 %v1573_v23, %v3111_v20 }
 0x1df   : > { %1202 = vrot.lane.b32.xlu1 %v1197_v62, %s3675_s30  ;;  %1384 = vrot.lane.b32.xlu0 %v1379_v24, %s3675_s30  ;;  %v1587_v24 = vstv %s3211_s22  ;;  %s3419_s22 = sld [smem:[#allocation6 + $0x5a]] }
 0x1e0   : > { %v1589_v63 = vmul.f32 %v1587_v24, %v3111_v20 }
 0x1e1   : > { %v777_v56 = vpop.permute.xlu1 %776  ;;  %v915_v12 = vpop.permute.xlu0 %914 }
 0x1e2   : > { %v781_v17 = vadd.f32 %v777_v56, %v767_v6  ;;  %v920_v2 = vadd.f32 %v915_v12, %v906_v26  ;;  %v3252_v12 = vld [vmem:[#allocation4 + $0x1d] sm:$0xff] }
 0x1e3   : > { %1216 = vrot.lane.b32.xlu1 %v1211_v42, %s3670_s13  ;;  %1552 = vrot.lane.b32.xlu0 %v1547_v8, %s3673_s1  ;;  %v1427_v42 = vstv %s3227_s16  ;;  %s3433_s16 = sld [smem:[#allocation6 + $0x60]] }
 0x1e4   : > { %v3182_v43 = vadd.f32 %v781_v17, %v599_v9  ;;  %v1532_v17 = vmul.f32 %v1531_v36, %v3225_v18  ;;  %v1428_v55 = vmul.f32 %v1427_v42, %v3252_v12 }
 0x1e5   : > { %v797_v27 = vpop.permute.xlu1 %796  ;;  %v929_v60 = vpop.permute.xlu0 %928 }
 0x1e6   : > { %v934_v25 = vadd.f32 %v929_v60, %v920_v2  ;;  %v801_v22 = vadd.f32 %v797_v27, %v787_v32 }
 0x1e7   : > { %1230 = vrot.lane.b32.xlu1 %v1225_v54, %s3671_s27  ;;  %1398 = vrot.lane.b32.xlu0 %v1393_v0, %s3670_s13  ;;  %v877_v54 = vmul.f32 %v875_v59, %v2833_v29  ;;  %v1259_v0 = vstv %s3241_s6  ;;  %s3437_s6 = sld [smem:[#allocation6 + $0x4d]] }
 0x1e8   : > { %v1260_v29 = vmul.f32 %v1259_v0, %v3062_v41 }
 0x1e9   : > { %v811_v33 = vpop.permute.xlu1 %810  ;;  %v943_v39 = vpop.permute.xlu0 %942 }
 0x1ea   : > { %v948_v40 = vadd.f32 %v943_v39, %v934_v25  ;;  %v815_v1 = vadd.f32 %v811_v33, %v801_v22  ;;  %v1378_v33 = vmul.f32 %v1377_v16, %v3195_v3  ;;  %v1441_v39 = vstv %s3255_s11  ;;  %s3460_s11 = sld [smem:[#allocation6 + $0x23]] }
 0x1eb   : > { %1340 = vrot.lane.b32.xlu1 %v1336_v49, %s3672_s20  ;;  %1566 = vrot.lane.b32.xlu0 %v1561_v10, %s3675_s30  ;;  %v1546_v16 = vmul.f32 %v1545_v35, %v3225_v18  ;;  %v1442_v25 = vmul.f32 %v1441_v39, %v3252_v12  ;;  %v1392_v35 = vmul.f32 %v1391_v45, %v3195_v3 }
 0x1ed   : > { %v825_v48 = vpop.permute.xlu1 %824  ;;  %v957_v14 = vpop.permute.xlu0 %956 }
 0x1ee   : > { %v3223_v37 = vadd.f32 %v957_v14, %v948_v40  ;;  %v829_v31 = vadd.f32 %v825_v48, %v815_v1  ;;  %v3292_v48 = vld [vmem:[#allocation4 + $0x1e] sm:$0xff]  ;;  %v1609_v14 = vstv %s3269_s9 }
 0x1ef   : > { %1354 = vrot.lane.b32.xlu1 %v1350_v52, %s3674_s0  ;;  %1412 = vrot.lane.b32.xlu0 %v1407_v38, %s3671_s27  ;;  %v1057_v52 = vstv %s3273_s12  ;;  %v1610_v22 = vmul.f32 %v1609_v14, %v3292_v48  ;;  %s1950_s12 = sshll.u32 %s2173_s17, 8  ;;  %s2200_s17 = smov [#allocation11]  }
 0x1f1   : > { %v839_v51 = vpop.permute.xlu1 %838  ;;  %v977_v50 = vpop.permute.xlu0 %976 }
 0x1f2   : > { %v982_v62 = vadd.f32 %v977_v50, %v968_v11  ;;  %v843_v6 = vadd.f32 %v839_v51, %v829_v31  ;;  %v1058_v51 = vmul.f32 %v1057_v52, %v2879_v61  ;;  %v1273_v50 = vstv %s3282_s26 }
 0x1f3   : > { %1522 = vrot.lane.b32.xlu1 %v1518_v19, %s3672_s20  ;;  %1580 = vrot.lane.b32.xlu0 %v1575_v7, %s3670_s13  ;;  %v1274_v61 = vmul.f32 %v1273_v50, %v3062_v41 }
 0x1f5   : > { %v853_v44 = vpop.permute.xlu1 %852  ;;  %v991_v30 = vpop.permute.xlu0 %990 }
 0x1f6   : > { %v996_v56 = vadd.f32 %v991_v30, %v982_v62  ;;  %v857_v8 = vadd.f32 %v853_v44, %v843_v6  ;;  %v1560_v62 = vmul.f32 %v1559_v13, %v3225_v18  ;;  %v1455_v30 = vstv %s3295_s7 }
 0x1f7   : > { %1368 = vrot.lane.b32.xlu1 %v1364_v58, %s3673_s1  ;;  %1594 = vrot.lane.b32.xlu0 %v1589_v63, %s3671_s27  ;;  %v1406_v13 = vmul.f32 %v1405_v47, %v3195_v3  ;;  %v1574_v47 = vmul.f32 %v1573_v23, %v3225_v18 }
 0x1f9   : > { %v867_v9 = vpop.permute.xlu1 %866  ;;  %v1005_v34 = vpop.permute.xlu0 %1004 }
 0x1fa   : > { %v871_v27 = vadd.f32 %v867_v9, %v857_v8  ;;  %v1010_v60 = vadd.f32 %v1005_v34, %v996_v56  ;;  %v1456_v56 = vmul.f32 %v1455_v30, %v3252_v12  ;;  %v1623_v34 = vstv %s3310_s2 }
 0x1fb   : > { %1536 = vrot.lane.b32.xlu1 %v1532_v17, %s3674_s0  ;;  %1432 = vrot.lane.b32.xlu0 %v1428_v55, %s3672_s20 }
 0x1fc   : > { %v879_v36 = vadd.f32 %v877_v54, %v871_v27 }
 0x1fd   : > { %v889_v26 = vpop.permute.xlu1 %888  ;;  %v1019_v2 = vpop.permute.xlu0 %1018 }
 0x1fe   : > { %v1024_v59 = vadd.f32 %v1019_v2, %v1010_v60  ;;  %v893_v19 = vadd.f32 %v889_v26, %v879_v36  ;;  %v1624_v60 = vmul.f32 %v1623_v34, %v3292_v48  ;;  %v1287_v26 = vstv %s3321_s29  ;;  %s3577_s29 = scalar_lea.hbm %s3632_s3, %s1950_s12 }
 0x1ff   : > { %1382 = vrot.lane.b32.xlu1 %v1378_v33, %s3675_s30  ;;  %1264 = vrot.lane.b32.xlu0 %v1260_v29, %s3674_s0  ;;  %v969_v2 = vmul.f32 %v967_v46, %v2925_v4  ;;  %v1588_v29 = vmul.f32 %v1587_v24, %v3225_v18 }
 0x201   : > { %v903_v49 = vpop.permute.xlu1 %902  ;;  %v1033_v10 = vpop.permute.xlu0 %1032 }
 0x202   : > { %v1038_v40 = vadd.f32 %v1033_v10, %v1024_v59  ;;  %v907_v31 = vadd.f32 %v903_v49, %v893_v19  ;;  %v1288_v59 = vmul.f32 %v1287_v26, %v3062_v41 }
 0x203   : > { %1550 = vrot.lane.b32.xlu1 %v1546_v16, %s3673_s1  ;;  %1446 = vrot.lane.b32.xlu0 %v1442_v25, %s3674_s0  ;;  %v3360_v16 = vld [vmem:[#allocation4 + $0x24] sm:$0xff]  ;;  %v1469_v25 = vstv %s3332_s23  ;;  %s1724_s23 = scalar_lea.sflag [#allocation8], %s2364_s25 }
 0x204   : > { %v1247_v24 = vmul.f32 %v1245_v53, %v3360_v16 }
 0x205   : > { %v917_v38 = vpop.permute.xlu1 %916  ;;  %v1047_v32 = vpop.permute.xlu0 %1046 }
 0x206   : > { %v1052_v11 = vadd.f32 %v1047_v32, %v1038_v40  ;;  %v921_v58 = vadd.f32 %v917_v38, %v907_v31  ;;  %v1470_v40 = vmul.f32 %v1469_v25, %v3252_v12 }
 0x207   : > { %1396 = vrot.lane.b32.xlu1 %v1392_v35, %s3670_s13  ;;  %1614 = vrot.lane.b32.xlu0 %v1610_v22, %s3672_s20  ;;  %v3373_v35 = vld [vmem:[#allocation4 + $0x25] sm:$0xff]  ;;  %v1637_v22 = vstv %s3345_s18 }
 0x208   : > { %v1060_v7 = vadd.f32 %v1058_v51, %v1052_v11  ;;  %v1429_v51 = vmul.f32 %v1427_v42, %v3373_v35  ;;  %v1638_v19 = vmul.f32 %v1637_v22, %v3292_v48 }
 0x209   : > { %v931_v45 = vpop.permute.xlu1 %930  ;;  %v1069_v1 = vpop.permute.xlu0 %1068 }
 0x20a   : > { %v1074_v44 = vadd.f32 %v1069_v1, %v1060_v7  ;;  %v935_v8 = vadd.f32 %v931_v45, %v921_v58  ;;  %v1149_v7 = vstv %s3358_s4  ;;  %v1261_v58 = vmul.f32 %v1259_v0, %v3360_v16  ;;  %s2099_s4 = sshll.u32 %s2200_s17, 4  ;;  %s2100_s4 = int_to_ptr.vmem [resolvable:$false] %s2099_s4 }
 0x20b   : > { %1564 = vrot.lane.b32.xlu1 %v1560_v62, %s3675_s30  ;;  %1278 = vrot.lane.b32.xlu0 %v1274_v61, %s3673_s1  ;;  %v1301_v62 = vstv %s3363_s21  ;;  %v1150_v42 = vmul.f32 %v1149_v7, %v2967_v15  ;;  %v1443_v0 = vmul.f32 %v1441_v39, %v3373_v35  ;;  %s2101_s21 = scalar_lea.vmem %s2100_s4, 512 }
 0x20d   : > { %v945_v63 = vpop.permute.xlu1 %944  ;;  %v1083_v6 = vpop.permute.xlu0 %1082 }
 0x20e   : > { %v1088_v9 = vadd.f32 %v1083_v6, %v1074_v44  ;;  %v949_v17 = vadd.f32 %v945_v63, %v935_v8  ;;  %v1302_v63 = vmul.f32 %v1301_v62, %v3062_v41  ;;  %v1483_v8 = vstv %s3376_s10 }
 0x20f   : > { %1410 = vrot.lane.b32.xlu1 %v1406_v13, %s3671_s27  ;;  %1460 = vrot.lane.b32.xlu0 %v1456_v56, %s3673_s1 }
 0x211   : > { %v959_v55 = vpop.permute.xlu1 %958  ;;  %v1097_v27 = vpop.permute.xlu0 %1096 }
 0x212   : > { %v3342_v54 = vadd.f32 %v959_v55, %v949_v17  ;;  %v1102_v36 = vadd.f32 %v1097_v27, %v1088_v9  ;;  %v3416_v55 = vld [vmem:[#allocation4 + $0x26] sm:$0xff]  ;;  %v1651_v27 = vstv %s3388_s5 }
 0x213   : > { %1578 = vrot.lane.b32.xlu1 %v1574_v47, %s3670_s13  ;;  %1628 = vrot.lane.b32.xlu0 %v1624_v60, %s3674_s0  ;;  %v1611_v39 = vmul.f32 %v1609_v14, %v3416_v55 }
 0x215   : > { %v979_v23 = vpop.permute.xlu1 %978  ;;  %v1111_v33 = vpop.permute.xlu0 %1110 }
 0x216   : > { %v983_v49 = vadd.f32 %v979_v23, %v969_v2  ;;  %v1116_v10 = vadd.f32 %v1111_v33, %v1102_v36  ;;  %v1652_v36 = vmul.f32 %v1651_v27, %v3292_v48  ;;  %v1059_v33 = vmul.f32 %v1057_v52, %v3013_v5 }
 0x217   : > { %1592 = vrot.lane.b32.xlu1 %v1588_v29, %s3671_s27  ;;  %1292 = vrot.lane.b32.xlu0 %v1288_v59, %s3675_s30  ;;  %v1315_v29 = vstv %s3406_s28 }
 0x218   : > { %v1316_v5 = vmul.f32 %v1315_v29, %v3062_v41 }
 0x219   : > { %v993_v4 = vpop.permute.xlu1 %992  ;;  %v1125_v46 = vpop.permute.xlu0 %1124 }
 0x21a   : > { %v997_v38 = vadd.f32 %v993_v4, %v983_v49  ;;  %v1130_v32 = vadd.f32 %v1125_v46, %v1116_v10  ;;  %v1275_v10 = vmul.f32 %v1273_v50, %v3360_v16  ;;  %v1497_v46 = vstv %s3419_s22 }
 0x21b   : > { %1252 = vrot.lane.b32.xlu1 %v1247_v24, %s3672_s20  ;;  %1474 = vrot.lane.b32.xlu0 %v1470_v40, %s3675_s30  ;;  %v1457_v50 = vmul.f32 %v1455_v30, %v3373_v35  ;;  %v1625_v30 = vmul.f32 %v1623_v34, %v3416_v55  ;;  %v1289_v34 = vmul.f32 %v1287_v26, %v3360_v16 }
 0x21d   : > { %v1007_v11 = vpop.permute.xlu1 %1006  ;;  %v1139_v53 = vpop.permute.xlu0 %1138 }
 0x21e   : > { %v1011_v45 = vadd.f32 %v1007_v11, %v997_v38  ;;  %v1144_v1 = vadd.f32 %v1139_v53, %v1130_v32  ;;  %v1498_v38 = vmul.f32 %v1497_v46, %v3252_v12  ;;  %v1665_v53 = vstv %s3433_s16 }
 0x21f   : > { %1434 = vrot.lane.b32.xlu1 %v1429_v51, %s3672_s20  ;;  %1642 = vrot.lane.b32.xlu0 %v1638_v19, %s3673_s1  ;;  %v1239_v51 = vstv %s3437_s6 }
 0x220   : > { %v1694_v61 = vadd.f32 %v1144_v1, %v3223_v37  ;;  %v1666_v1 = vmul.f32 %v1665_v53, %v3292_v48 }
 0x221   : > { %v1021_v31 = vpop.permute.xlu1 %1020  ;;  %v1159_v44 = vpop.permute.xlu0 %1158 }
 0x222   : > { %v3403_v6 = vadd.f32 %v1694_v61, %v3050_v28  ;;  %v1025_v13 = vadd.f32 %v1021_v31, %v1011_v45  ;;  %v1164_v56 = vadd.f32 %v1159_v44, %v1150_v42  ;;  %v1484_v28 = vmul.f32 %v1483_v8, %v3252_v12 }
 0x223   : > { %1266 = vrot.lane.b32.xlu1 %v1261_v58, %s3674_s0  ;;  %1306 = vrot.lane.b32.xlu0 %v1302_v63, %s3670_s13  ;;  %v1240_v31 = vmul.f32 %v1239_v51, %v3062_v41  ;;  %v1331_v41 = vstv %s3460_s11 }
 0x225   : > { %v1035_v15 = vpop.permute.xlu1 %1034  ;;  %v1173_v37 = vpop.permute.xlu0 %1172 }
 0x226   : > { %v1039_v9 = vadd.f32 %v1035_v15, %v1025_v13  ;;  %v1178_v17 = vadd.f32 %v1173_v37, %v1164_v56 }
 0x227   : > { %1448 = vrot.lane.b32.xlu1 %v1443_v0, %s3674_s0  ;;  %1488 = vrot.lane.b32.xlu0 %v1484_v28, %s3670_s13  ;;  %v1333_v0 = vmul.f32 %v1331_v41, %v3077_v57 }
 0x229   : > { %v1049_v47 = vpop.permute.xlu1 %1048  ;;  %v1187_v60 = vpop.permute.xlu0 %1186 }
 0x22a   : > { %v1053_v2 = vadd.f32 %v1049_v47, %v1039_v9  ;;  %v1192_v23 = vadd.f32 %v1187_v60, %v1178_v17  ;;  %v1471_v9 = vmul.f32 %v1469_v25, %v3373_v35  ;;  %v1151_v25 = vmul.f32 %v1149_v7, %v3109_v21 }
 0x22b   : > { %1616 = vrot.lane.b32.xlu1 %v1611_v39, %s3672_s20  ;;  %1656 = vrot.lane.b32.xlu0 %v1652_v36, %s3675_s30  ;;  %s3446_s20 = sld [smem:[#allocation6 + $0x61]]  ;;  %v1639_v36 = vmul.f32 %v1637_v22, %v3416_v55  ;;  %v1303_v22 = vmul.f32 %v1301_v62, %v3360_v16  ;;  %v1485_v21 = vmul.f32 %v1483_v8, %v3373_v35 }
 0x22c   : > { %v1061_v14 = vadd.f32 %v1059_v33, %v1053_v2  ;;  %v1317_v8 = vmul.f32 %v1315_v29, %v3360_v16  ;;  %v1667_v29 = vmul.f32 %v1665_v53, %v3416_v55 }
 0x22d   : > { %v1071_v59 = vpop.permute.xlu1 %1070  ;;  %v1201_v49 = vpop.permute.xlu0 %1200 }
 0x22e   : > { %v1075_v52 = vadd.f32 %v1071_v59, %v1061_v14  ;;  %v1206_v4 = vadd.f32 %v1201_v49, %v1192_v23 }
 0x22f   : > { %1280 = vrot.lane.b32.xlu1 %v1275_v10, %s3673_s1  ;;  %1320 = vrot.lane.b32.xlu0 %v1316_v5, %s3671_s27 }
 0x231   : > { %v1085_v24 = vpop.permute.xlu1 %1084  ;;  %v1215_v40 = vpop.permute.xlu0 %1214  ;;  %v1679_v44 = vstv %s3446_s20 }
 0x232   : > { %v1089_v32 = vadd.f32 %v1085_v24, %v1075_v52  ;;  %v1220_v11 = vadd.f32 %v1215_v40, %v1206_v4  ;;  %v1680_v56 = vmul.f32 %v1679_v44, %v3292_v48 }
 0x233   : > { %1462 = vrot.lane.b32.xlu1 %v1457_v50, %s3673_s1  ;;  %1502 = vrot.lane.b32.xlu0 %v1498_v38, %s3671_s27 }
 0x235   : > { %v1099_v19 = vpop.permute.xlu1 %1098  ;;  %v1229_v45 = vpop.permute.xlu0 %1228 }
 0x236   : > { %v1103_v61 = vadd.f32 %v1099_v19, %v1089_v32  ;;  %v1234_v42 = vadd.f32 %v1229_v45, %v1220_v11 }
 0x237   : > { %1630 = vrot.lane.b32.xlu1 %v1625_v30, %s3674_s0  ;;  %1670 = vrot.lane.b32.xlu0 %v1666_v1, %s3670_s13  ;;  %s3485_s0 = sld [smem:[#allocation6 + $0x2a]] }
 0x238   : > { %v1242_v58 = vadd.f32 %v1240_v31, %v1234_v42 }
 0x239   : > { %v1113_v63 = vpop.permute.xlu1 %1112  ;;  %v1251_v13 = vpop.permute.xlu0 %1250 }
 0x23a   : > { %v1117_v15 = vadd.f32 %v1113_v63, %v1103_v61  ;;  %v3480_v37 = vadd.f32 %v1251_v13, %v1242_v58  ;;  %v1241_v13 = vmul.f32 %v1239_v51, %v3360_v16 }
 0x23b   : > { %1294 = vrot.lane.b32.xlu1 %v1289_v34, %s3675_s30  ;;  %1684 = vrot.lane.b32.xlu0 %v1680_v56, %s3671_s27 }
 0x23d   : > { %v1127_v26 = vpop.permute.xlu1 %1126  ;;  %v1343_v28 = vpop.permute.xlu0 %1342  ;;  %v1513_v57 = vstv %s3485_s0 }
 0x23e   : > { %v1131_v17 = vadd.f32 %v1127_v26, %v1117_v15  ;;  %v1347_v47 = vadd.f32 %v1343_v28, %v1333_v0  ;;  %v1515_v14 = vmul.f32 %v1513_v57, %v3111_v20  ;;  %v1681_v15 = vmul.f32 %v1679_v44, %v3416_v55 }
 0x23f   : > { %1476 = vrot.lane.b32.xlu1 %v1471_v9, %s3675_s30 }
 0x241   : > { %v1141_v60 = vpop.permute.xlu1 %1140  ;;  %v1357_v39 = vpop.permute.xlu0 %1356 }
 0x242   : > { %v1145_v2 = vadd.f32 %v1141_v60, %v1131_v17  ;;  %v1361_v23 = vadd.f32 %v1357_v39, %v1347_v47 }
 0x243   : > { %1644 = vrot.lane.b32.xlu1 %v1639_v36, %s3673_s1  ;;  %s3545_s1 = sld [smem:[#allocation6 + $0x5b]] }
 0x244   : > { %v1695_v33 = vadd.f32 %v1145_v2, %v3342_v54 }
 0x245   : > { %v1161_v59 = vpop.permute.xlu1 %1160  ;;  %v1525_v49 = vpop.permute.xlu0 %1524 }
 0x246   : > { %v3510_v10 = vadd.f32 %v1695_v33, %v3182_v43  ;;  %v1165_v5 = vadd.f32 %v1161_v59, %v1151_v25  ;;  %v1529_v52 = vadd.f32 %v1525_v49, %v1515_v14  ;;  %v1653_v43 = vmul.f32 %v1651_v27, %v3416_v55 }
 0x247   : > { %1308 = vrot.lane.b32.xlu1 %v1303_v22, %s3670_s13  ;;  %v1499_v27 = vmul.f32 %v1497_v46, %v3373_v35 }
 0x249   : > { %v1175_v54 = vpop.permute.xlu1 %1174  ;;  %v1371_v4 = vpop.permute.xlu0 %1370  ;;  %v1603_v36 = vstv %s3545_s1 }
 0x24a   : > { %v1179_v20 = vadd.f32 %v1175_v54, %v1165_v5  ;;  %v1375_v7 = vadd.f32 %v1371_v4, %v1361_v23  ;;  %v1605_v23 = vmul.f32 %v1603_v36, %v3416_v55  ;;  %v1332_v5 = vmul.f32 %v1331_v41, %v3195_v3 }
 0x24b   : > { %1490 = vrot.lane.b32.xlu1 %v1485_v21, %s3670_s13  ;;  %v1514_v55 = vmul.f32 %v1513_v57, %v3225_v18 }
 0x24d   : > { %v1189_v24 = vpop.permute.xlu1 %1188  ;;  %v1539_v62 = vpop.permute.xlu0 %1538 }
 0x24e   : > { %v1193_v40 = vadd.f32 %v1189_v24, %v1179_v20  ;;  %v1543_v50 = vadd.f32 %v1539_v62, %v1529_v52 }
 0x24f   : > { %1658 = vrot.lane.b32.xlu1 %v1653_v43, %s3675_s30  ;;  %s3532_s30 = sld [smem:[#allocation6 + $0x54]] }
 0x251   : > { %v1203_v38 = vpop.permute.xlu1 %1202  ;;  %v1385_v32 = vpop.permute.xlu0 %1384 }
 0x252   : > { %v1207_v11 = vadd.f32 %v1203_v38, %v1193_v40  ;;  %v1389_v19 = vadd.f32 %v1385_v32, %v1375_v7 }
 0x253   : > { %1322 = vrot.lane.b32.xlu1 %v1317_v8, %s3671_s27 }
 0x255   : > { %v1217_v45 = vpop.permute.xlu1 %1216  ;;  %v1553_v30 = vpop.permute.xlu0 %1552  ;;  %v1421_v28 = vstv %s3532_s30 }
 0x256   : > { %v1221_v1 = vadd.f32 %v1217_v45, %v1207_v11  ;;  %v1557_v61 = vadd.f32 %v1553_v30, %v1543_v50  ;;  %v1423_v16 = vmul.f32 %v1421_v28, %v3373_v35  ;;  %v1422_v8 = vmul.f32 %v1421_v28, %v3252_v12 }
 0x257   : > { %1504 = vrot.lane.b32.xlu1 %v1499_v27, %s3671_s27 }
 0x259   : > { %v1231_v42 = vpop.permute.xlu1 %1230  ;;  %v1399_v31 = vpop.permute.xlu0 %1398 }
 0x25a   : > { %v1235_v58 = vadd.f32 %v1231_v42, %v1221_v1  ;;  %v1403_v63 = vadd.f32 %v1399_v31, %v1389_v19  ;;  %v1604_v42 = vmul.f32 %v1603_v36, %v3292_v48 }
 0x25b   : > { %1672 = vrot.lane.b32.xlu1 %v1667_v29, %s3670_s13  ;;  %s3563_s13 = sld [smem:[#allocation5]] }
 0x25c   : > { %v3538_v46 = vadd.f32 %v1241_v13, %v1235_v58 }
 0x25d   : > { %v1341_v34 = vpop.permute.xlu1 %1340  ;;  %v1567_v56 = vpop.permute.xlu0 %1566 }
 0x25e   : > { %v1571_v0 = vadd.f32 %v1567_v56, %v1557_v61  ;;  %v1346_v52 = vadd.f32 %v1341_v34, %v1332_v5 }
 0x25f   : > { %1686 = vrot.lane.b32.xlu1 %v1681_v15, %s3671_s27  ;;  %s1844_s27 = sshll.u32 %s2364_s25, 4 }
 0x260   : > { %s217_s9 = scalar_lea.vmem [#allocation11], %s1844_s27 }
 0x261   : > { %v1355_v53 = vpop.permute.xlu1 %1354  ;;  %v1413_v26 = vpop.permute.xlu0 %1412  ;;  %s1737_s26 = sshll.u32 %s217_s9, 4  ;;  %s3579_s26 = int_to_ptr.vmem [resolvable:$true] %s1737_s26 }
 0x262   : > { %v1417_v9 = vadd.f32 %v1413_v26, %v1403_v63  ;;  %v1360_v21 = vadd.f32 %v1355_v53, %v1346_v52  ;;  %s2095_s18 = scalar_lea.vmem %s3579_s26, 256  ;;  %p2102_p4 = scmp.lt.s32.totalorder %s3579_s26, %s2100_s4 }
 0x263   : > { %p2096_p8 = scmp.ne.s32.totalorder %s3579_s26, %s2095_s18  ;;  %p2103_p9 = scmp.lt.s32.totalorder %s2101_s21, %s2095_s18 }
 0x264   : > { %v3548_v51 = vadd.f32 %v1423_v16, %v1417_v9 }
 0x265   : > { %v1523_v17 = vpop.permute.xlu1 %1522  ;;  %v1581_v47 = vpop.permute.xlu0 %1580  ;;  %p2097_p2 = pnand %p2096_p8, %p3676_p0  ;;  %p2104_p13 = por %p2103_p9, %p2102_p4 }
 0x266   : > { %v1585_v60 = vadd.f32 %v1581_v47, %v1571_v0  ;;  %v1528_v43 = vadd.f32 %v1523_v17, %v1514_v55 }
 0x267   : > { %p2098_p5 = pneg %p2097_p2 }
 0x269   : > { %v1369_v39 = vpop.permute.xlu1 %1368  ;;  %v1595_v44 = vpop.permute.xlu0 %1594  ;;  %p2105_p11 = pnand %p2104_p13, %p2098_p5 }
 0x26a   : > { %v1599_v2 = vadd.f32 %v1595_v44, %v1585_v60  ;;  %v1374_v20 = vadd.f32 %v1369_v39, %v1360_v21 }
 0x26c   : > { %v3552_v33 = vadd.f32 %v1605_v23, %v1599_v2 }
 0x26d   : > { %v1537_v25 = vpop.permute.xlu1 %1536  ;;  %v1433_v14 = vpop.permute.xlu0 %1432 }
 0x26e   : > { %v1542_v32 = vadd.f32 %v1537_v25, %v1528_v43 }
 0x271   : > { %v1383_v59 = vpop.permute.xlu1 %1382  ;;  %v1265_v49 = vpop.permute.xlu0 %1264 }
 0x272   : > { %v1388_v62 = vadd.f32 %v1383_v59, %v1374_v20  ;;  %v1270_v28 = vadd.f32 %v1265_v49, %v3480_v37 }
 0x275   : > { %v1551_v35 = vpop.permute.xlu1 %1550  ;;  %v1447_v22 = vpop.permute.xlu0 %1446 }
 0x276   : > { %v1556_v3 = vadd.f32 %v1551_v35, %v1542_v32 }
 0x279   : > { %v1397_v54 = vpop.permute.xlu1 %1396  ;;  %v1615_v4 = vpop.permute.xlu0 %1614 }
 0x27a   : > { %v1402_v40 = vadd.f32 %v1397_v54, %v1388_v62 }
 0x27d   : > { %v1565_v7 = vpop.permute.xlu1 %1564  ;;  %v1279_v24 = vpop.permute.xlu0 %1278 }
 0x27e   : > { %v1570_v30 = vadd.f32 %v1565_v7, %v1556_v3  ;;  %v1284_v9 = vadd.f32 %v1279_v24, %v1270_v28  ;;  %v1705_v7 = vstv %s3563_s13 }
 0x281   : > { %v1411_v50 = vpop.permute.xlu1 %1410  ;;  %v1461_v38 = vpop.permute.xlu0 %1460 }
 0x282   : > { %v1416_v11 = vadd.f32 %v1411_v50, %v1402_v40 }
 0x284   : > { %v1424_v41 = vadd.f32 %v1422_v8, %v1416_v11 }
 0x285   : > { %v1579_v19 = vpop.permute.xlu1 %1578  ;;  %v1629_v45 = vpop.permute.xlu0 %1628 }
 0x286   : > { %v1584_v27 = vadd.f32 %v1579_v19, %v1570_v30  ;;  %v1438_v12 = vadd.f32 %v1433_v14, %v1424_v41 }
 0x288   : > { %v1452_v0 = vadd.f32 %v1447_v22, %v1438_v12 }
 0x289   : > { %v1593_v1 = vpop.permute.xlu1 %1592  ;;  %v1293_v61 = vpop.permute.xlu0 %1292 }
 0x28a   : > { %v1598_v18 = vadd.f32 %v1593_v1, %v1584_v27  ;;  %v1466_v16 = vadd.f32 %v1461_v38, %v1452_v0  ;;  %v1298_v60 = vadd.f32 %v1293_v61, %v1284_v9 }
 0x28c   : > { %v1606_v57 = vadd.f32 %v1604_v42, %v1598_v18 }
 0x28d   : > { %v1253_v31 = vpop.permute.xlu1 %1252  ;;  %v1475_v29 = vpop.permute.xlu0 %1474 }
 0x28e   : > { %v1620_v17 = vadd.f32 %v1615_v4, %v1606_v57  ;;  %v1480_v39 = vadd.f32 %v1475_v29, %v1466_v16  ;;  %v1257_v32 = vadd.f32 %v1253_v31, %v3538_v46 }
 0x290   : > { %v1634_v44 = vadd.f32 %v1629_v45, %v1620_v17 }
 0x291   : > { %v1435_v58 = vpop.permute.xlu1 %1434  ;;  %v1643_v63 = vpop.permute.xlu0 %1642 }
 0x292   : > { %v1648_v35 = vadd.f32 %v1643_v63, %v1634_v44  ;;  %v1439_v8 = vadd.f32 %v1435_v58, %v3548_v51 }
 0x295   : > { %v1267_v13 = vpop.permute.xlu1 %1266  ;;  %v1307_v34 = vpop.permute.xlu0 %1306 }
 0x296   : > { %v1312_v36 = vadd.f32 %v1307_v34, %v1298_v60  ;;  %v1271_v41 = vadd.f32 %v1267_v13, %v1257_v32 }
 0x299   : > { %v1449_v56 = vpop.permute.xlu1 %1448  ;;  %v1489_v15 = vpop.permute.xlu0 %1488 }
 0x29a   : > { %v1494_v2 = vadd.f32 %v1489_v15, %v1480_v39  ;;  %v1453_v19 = vadd.f32 %v1449_v56, %v1439_v8 }
 0x29d   : > { %v1617_v53 = vpop.permute.xlu1 %1616  ;;  %v1657_v26 = vpop.permute.xlu0 %1656 }
 0x29e   : > { %v1662_v37 = vadd.f32 %v1657_v26, %v1648_v35  ;;  %v1621_v42 = vadd.f32 %v1617_v53, %v3552_v33 }
 0x2a1   : > { %v1281_v48 = vpop.permute.xlu1 %1280  ;;  %v1321_v47 = vpop.permute.xlu0 %1320 }
 0x2a2   : > { %v1326_v14 = vadd.f32 %v1321_v47, %v1312_v36  ;;  %v1285_v30 = vadd.f32 %v1281_v48, %v1271_v41 }
 0x2a5   : > { %v1463_v23 = vpop.permute.xlu1 %1462  ;;  %v1503_v25 = vpop.permute.xlu0 %1502 }
 0x2a6   : > { %v1508_v59 = vadd.f32 %v1503_v25, %v1494_v2  ;;  %v1467_v27 = vadd.f32 %v1463_v23, %v1453_v19 }
 0x2a8   : > { %v1696_v22 = vadd.f32 %v1508_v59, %v1326_v14 }
 0x2a9   : > { %v1631_v5 = vpop.permute.xlu1 %1630  ;;  %v1671_v52 = vpop.permute.xlu0 %1670 }
 0x2aa   : > { %v1676_v49 = vadd.f32 %v1671_v52, %v1662_v37  ;;  %v1635_v46 = vadd.f32 %v1631_v5, %v1621_v42 }
 0x2ad   : > { %v1295_v54 = vpop.permute.xlu1 %1294  ;;  %v1685_v4 = vpop.permute.xlu0 %1684 }
 0x2ae   : > { %v1690_v21 = vadd.f32 %v1685_v4, %v1676_v49  ;;  %v1299_v1 = vadd.f32 %v1295_v54, %v1285_v30 }
 0x2b0   : > { %v1700_v20 = vadd.f32 %v1696_v22, %v1690_v21 }
 0x2b1   : > { %v1477_v24 = vpop.permute.xlu1 %1476 }
 0x2b2   : > { %v1702_v55 = vadd.f32 %v1700_v20, %v3403_v6  ;;  %v1481_v61 = vadd.f32 %v1477_v24, %v1467_v27 }
 0x2b4   : > { %v1706_v62 = vadd.f32 %v1705_v7, %v1702_v55 }
 0x2b5   : > { %v1645_v43 = vpop.permute.xlu1 %1644 }
 0x2b6   : > { %v1942_v40 = vmul.f32 -1.442695, %v1706_v62  ;;  %v1649_v58 = vadd.f32 %v1645_v43, %v1635_v46 }
 0x2b8   : > { %2042 = vpow2.f32 %v1942_v40 }
 0x2b9   : > { %v1309_v50 = vpop.permute.xlu1 %1308 }
 0x2ba   : > { %v1313_v18 = vadd.f32 %v1309_v50, %v1299_v1 }
 0x2bd   : > { %v1491_v38 = vpop.permute.xlu1 %1490 }
 0x2be   : > { %v1495_v57 = vadd.f32 %v1491_v38, %v1481_v61 }
 0x2c1   : > { %v1659_v11 = vpop.permute.xlu1 %1658 }
 0x2c2   : > { %v2043_v3 = vpop.eup %2042  ;;  %v1663_v34 = vadd.f32 %v1659_v11, %v1649_v58 }
 0x2c3   : > { %v1714_v45 = vadd.f32 1.0, %v2043_v3 }
 0x2c5   : > { %2044 = vrcp.f32 %v1714_v45  ;;  %v1323_v6 = vpop.permute.xlu1 %1322 }
 0x2c6   : > { %v1327_v31 = vadd.f32 %v1323_v6, %v1313_v18 }
 0x2c9   : > { %v1505_v29 = vpop.permute.xlu1 %1504 }
 0x2ca   : > { %v1509_v51 = vadd.f32 %v1505_v29, %v1495_v57 }
 0x2cc   : > { %v1697_v63 = vadd.f32 %v1509_v51, %v1327_v31 }
 0x2cd   : > { %v1673_v13 = vpop.permute.xlu1 %1672 }
 0x2ce   : > { %v1677_v56 = vadd.f32 %v1673_v13, %v1663_v34 }
 0x2cf   : > { %v2045_v12 = vpop.eup %2044 }
 0x2d0   : > { %1721 = vst.msk [vmem:[%s217_s9] sm:$0xff] %vm1720_vm4, %v2045_v12 }
 0x2d1   : > { %v1687_v15 = vpop.permute.xlu1 %1686 }
 0x2d2   : > { %v1691_v33 = vadd.f32 %v1687_v15, %v1677_v56 }
 0x2d4   : > { %v1701_v0 = vadd.f32 %v1697_v63, %v1691_v33 }
 0x2d6   : > { %v1703_v53 = vadd.f32 %v1701_v0, %v3510_v10 }
 0x2d8   : > { %v1707_v26 = vadd.f32 %v1705_v7, %v1703_v53 }
 0x2da   : > { %v1943_v28 = vmul.f32 -1.442695, %v1707_v26 }
 0x2dc   : > { %2046 = vpow2.f32 %v1943_v28 }
 0x2e6   : > { %v2047_v9 = vpop.eup %2046 }
 0x2e7   : > { %v1715_v16 = vadd.f32 1.0, %v2047_v9 }
 0x2e9   : > { %2048 = vrcp.f32 %v1715_v16 }
 0x2f3   : > { %v2049_v10 = vpop.eup %2048 }
 0x2f4   : > { %1722 = vst.msk [vmem:[%s217_s9 + $0x8] sm:$0xff] %vm1720_vm4, %v2049_v10 }
 0x2f5   : > { %2108 = shalt.err (!%p2105_p11)
}
 0x2f6   : > { %s2109_s10 = scalar_lea.hbm %s3577_s29, 256  ;;  %s2113_s22 = scalar_lea.hbm %s3632_s3, 512 }
 0x2f7   : > { %p2110_p3 = scmp.ne.s32.totalorder %s3577_s29, %s2109_s10  ;;  %p2114_p6 = scmp.lt.u32.totalorder %s3577_s29, %s3632_s3 }
 0x2f8   : > { %p2115_p12 = scmp.lt.u32.totalorder %s2113_s22, %s2109_s10  ;;  %p2117_p8 = scmp.lt.u32.totalorder %s2109_s10, %s3577_s29 }
 0x2f9   : > { %p2111_p7 = pnand %p2110_p3, %p3676_p0 }
 0x2fa   : > { %p2116_p1 = por %p2115_p12, %p2114_p6 }
 0x2fb   : > { %p2112_p10 = pneg %p2111_p7 }
 0x2fc   : > { %p2118_p2 = por %p2117_p8, %p2116_p1 }
 0x2fe   : > { %p2119_p5 = pnand %p2118_p2, %p2112_p10 }
 0x300   : > { %2122 = shalt.err (!%p2119_p5)
}
 0x301   : > { %s2201_s20 = smov 128   ;;  %s2202_s11 = smov 8  }
 0x302   : > { %1957 = dma.vmem_to_hbm [thread:$0]  (%p3676_p0), %s3579_s26, 256, %s3577_s29, %s1724_s23, %s2201_s20, %s2201_s20, %s2202_s11  }
 0x303 PF: > { %s1752_s0 = sand.u32 1, %s2161_s14   ;;  %p3677_p4 = scmp.ne.s32.totalorder %s3659_s24, 0 }
 0x304   : > { %p3678_p9 = scmp.ge.s32.totalorder %s2181_s19, 2  ;;  %s1753_s30 = scalar_lea.sflag [#allocation8], %s1752_s0 }
 0x306   : > { %p1968_p13 = pnand %p3678_p9, %p3677_p4 }
 0x308   : > { %2156 = dma.done.wait (!%p1968_p13), %s1753_s30, 256  }
 0x309   : > { %2158 = vsyncadd (!%p1968_p13), %s1753_s30, 4294967040  ;;  %s21_s19 = sadd.s32 1, %s2181_s19   ;;  %s3679_s1 = sld [smem:[#allocation15_spill]] }
 0x30a   : > { %p18_p11 = scmp.ge.s32.totalorder %s21_s19, 4   ;;  %s3680_s16 = sld [smem:[#allocation18_spill]] }
 0x30b   : > { %s3681_s17 = sld [smem:[#allocation16_spill]]  ;;  %s3682_s18 = sld [smem:[#allocation17_spill]] }
 0x30c   : > { %s3683_s14 = smov %s2165_s15  ;;  %20 = sbr.rel (!%p18_p11) target bundleno = 11 (0xb), region = 92 }
 0x30f   : > { %s3684_s15 = smov %s3679_s1 }
 0x313   :  { %1758 = vsyncpa [#allocation7], 1 }
 0x314   :  { %1760 = vsyncpa [#allocation7 + $0x1], 1 }
 0x315   :  { %1761 = vsyncpa [#allocation8], 1 }
 0x316   :  { %1763 = vsyncpa [#allocation8 + $0x1], 1 }
 0x317   :  { %1764 = vsyncpa [#allocation9], 1 }
 0x318   :  { %1766 = vsyncpa [#allocation9 + $0x1], 1 }

</bundles_post_ra>
